<compile_context>
chip_gen: v6e
topology: v6e:2x2x1
jax: 0.10.0
libtpu: 0.0.40
codegen_flags: <defaults>
</compile_context>

<pallas_src>
import math
import functools

import jax
import jax.numpy as jnp
from jax.experimental import pallas as pl
from jax.experimental.pallas import tpu as pltpu


def _round_up(x, m):
    return (x + m - 1) // m * m


_VMEM_LIMIT = 32 * 1024 * 1024  # safe on v5e/v6e/v7x


# ----------------------------- Linear kernels -----------------------------

def _linear_kernel(x_ref, w_ref, b_ref, o_ref):
    # x: (TM, K) bf16, w: (K, N) bf16, b: (1, N) f32 -> o: (TM, N)
    acc = jnp.dot(x_ref[...], w_ref[...], preferred_element_type=jnp.float32)
    o_ref[...] = (acc + b_ref[...].astype(jnp.float32)).astype(o_ref.dtype)


def _linear_ln_kernel(x_ref, w_ref, b_ref, g_ref, bb_ref, o_ref, *, eps):
    # Linear + fused LayerNorm epilogue (full channel dim per tile, f32 stats).
    acc = jnp.dot(x_ref[...], w_ref[...], preferred_element_type=jnp.float32)
    acc = acc + b_ref[...].astype(jnp.float32)
    mean = jnp.mean(acc, axis=-1, keepdims=True)
    var = jnp.mean(jnp.square(acc - mean), axis=-1, keepdims=True)
    y = (acc - mean) * jax.lax.rsqrt(var + eps)
    o_ref[...] = (y * g_ref[...].astype(jnp.float32)
                  + bb_ref[...].astype(jnp.float32)).astype(o_ref.dtype)


def linear(x2d, w, b, ln=None, eps=1e-5, tile_m=None, out_dtype=None):
    """y = x2d @ w + b, optionally followed by LayerNorm over the out dim."""
    M, K = x2d.shape
    N = w.shape[1]
    out_dtype = out_dtype or x2d.dtype

    if tile_m is None:
        # Target ~8 MiB for the double-buffered activation slab; bf16 halves it.
        budget = 8 * 1024 * 1024
        tile_m = budget // max(1, 2 * K * x2d.dtype.itemsize)
        tile_m = max(128, min(2048, tile_m))
        tile_m = (tile_m // 8) * 8
    tm = min(tile_m, _round_up(M, 8))
    Mp = _round_up(M, tm)
    if Mp != M:
        x2d = jnp.pad(x2d, ((0, Mp - M), (0, 0)))

    if ln is None:
        kernel = _linear_kernel
        extra_args = []
        extra_specs = []
    else:
        gamma, beta = ln
        kernel = functools.partial(_linear_ln_kernel, eps=eps)
        extra_args = [gamma.reshape(1, N), beta.reshape(1, N)]
        extra_specs = [pl.BlockSpec((1, N), lambda i: (0, 0)),
                       pl.BlockSpec((1, N), lambda i: (0, 0))]

    out = pl.pallas_call(
        kernel,
        out_shape=jax.ShapeDtypeStruct((Mp, N), out_dtype),
        grid_spec=pltpu.PrefetchScalarGridSpec(
            num_scalar_prefetch=0,
            grid=(Mp // tm,),
            in_specs=[
                pl.BlockSpec((tm, K), lambda i: (i, 0)),
                # NOTE: on v7x these constant blocks could be pl.Buffered(1).
                pl.BlockSpec((K, N), lambda i: (0, 0)),
                pl.BlockSpec((1, N), lambda i: (0, 0)),
            ] + extra_specs,
            out_specs=pl.BlockSpec((tm, N), lambda i: (i, 0)),
        ),
        compiler_params=pltpu.CompilerParams(
            dimension_semantics=("parallel",),
            vmem_limit_bytes=_VMEM_LIMIT),
    )(x2d, w, b.reshape(1, N).astype(jnp.float32), *extra_args)
    return out[:M] if Mp != M else out


# ------------------------ Fused Q-proj + attention + O-proj ------------------------

def _attn_kernel(x_ref, qw_ref, qb_ref, k_ref, v_ref, ow_ref, ob_ref, o_ref,
                 *, num_heads):
    # x: (tq, C) bf16 hidden-states tile.
    # qw: (H, C, D) bf16 (1/sqrt(D) folded in), qb: (H, 1, D) f32.
    # k, v: (H, Nk, D) bf16 (resident across query tiles of a batch).
    # ow: (H, D, C) bf16, ob: (1, C) f32.
    # o: (tq, C) final attention output tile.
    x = x_ref[...]
    cdt = x.dtype
    acc = None
    for h in range(num_heads):
        # Q projection for this head (scale pre-folded into qw).
        q = jnp.dot(x, qw_ref[h], preferred_element_type=jnp.float32)      # (tq, D)
        q = (q + qb_ref[h]).astype(cdt)
        # Scores: contract over the shared last dim (no in-kernel K transpose).
        s = jax.lax.dot_general(q, k_ref[h], (((1,), (1,)), ((), ())),
                                preferred_element_type=jnp.float32)         # (tq, Nk)
        # Softmax with f32 statistics; attention-prob dropout is identity (eval).
        m = jnp.max(s, axis=-1, keepdims=True)
        e = jnp.exp(s - m)
        p = e * pl.reciprocal(jnp.sum(e, axis=-1, keepdims=True), approx=True)
        ctx = jnp.dot(p.astype(cdt), v_ref[h],
                      preferred_element_type=jnp.float32)                   # (tq, D)
        # Output projection per head, accumulated lane-dense (no concat).
        contrib = jnp.dot(ctx.astype(cdt), ow_ref[h],
                          preferred_element_type=jnp.float32)               # (tq, C)
        acc = contrib if acc is None else acc + contrib
    o_ref[...] = (acc + ob_ref[...].astype(jnp.float32)).astype(o_ref.dtype)


def attention_fused(x, qw, qb, k, v, ow, ob, num_heads, out_dtype, tq=512):
    """x: (B, Nq, C) bf16; k/v: (B, H, Nk, D) bf16 -> (B, Nq, C) out_dtype."""
    B, Nq, C = x.shape
    _, H, Nk, D = k.shape
    tq = min(tq, _round_up(Nq, 8))
    Nq_p = _round_up(Nq, tq)
    if Nq_p != Nq:
        x = jnp.pad(x, ((0, 0), (0, Nq_p - Nq), (0, 0)))

    out = pl.pallas_call(
        functools.partial(_attn_kernel, num_heads=num_heads),
        out_shape=jax.ShapeDtypeStruct((B, Nq_p, C), out_dtype),
        grid_spec=pltpu.PrefetchScalarGridSpec(
            num_scalar_prefetch=0,
            grid=(B, Nq_p // tq),
            in_specs=[
                pl.BlockSpec((None, tq, C), lambda b, i: (b, i, 0)),        # x tile
                pl.BlockSpec((H, C, D), lambda b, i: (0, 0, 0)),            # q_w (resident)
                pl.BlockSpec((H, 1, D), lambda b, i: (0, 0, 0)),            # q_b
                pl.BlockSpec((None, H, Nk, D), lambda b, i: (b, 0, 0, 0)),  # k (per batch)
                pl.BlockSpec((None, H, Nk, D), lambda b, i: (b, 0, 0, 0)),  # v (per batch)
                pl.BlockSpec((H, D, C), lambda b, i: (0, 0, 0)),            # o_w (resident)
                pl.BlockSpec((1, C), lambda b, i: (0, 0)),                  # o_b
            ],
            out_specs=pl.BlockSpec((None, tq, C), lambda b, i: (b, i, 0)),
        ),
        compiler_params=pltpu.CompilerParams(
            dimension_semantics=("parallel", "parallel"),
            vmem_limit_bytes=_VMEM_LIMIT),
    )(x, qw, qb, k, v, ow, ob)
    return out[:, :Nq, :] if Nq_p != Nq else out


# ----------------------------- Parameters -----------------------------

def init_segformer_attention_params(key, hidden_size, sr_ratio, dtype=jnp.float32):
    ks = jax.random.split(key, 8)
    C = hidden_size

    def w(k, shape):
        return (0.02 * jax.random.normal(k, shape)).astype(dtype)

    params = {
        # Linear weights stored as (in, out) so y = x @ w + b
        "q_w": w(ks[0], (C, C)), "q_b": jnp.zeros((C,), dtype),
        "k_w": w(ks[1], (C, C)), "k_b": jnp.zeros((C,), dtype),
        "v_w": w(ks[2], (C, C)), "v_b": jnp.zeros((C,), dtype),
        "o_w": w(ks[3], (C, C)), "o_b": jnp.zeros((C,), dtype),
    }
    if sr_ratio > 1:
        R = sr_ratio
        params["sr_w"] = w(ks[4], (C, C, R, R))   # Conv2d weight (out, in, kh, kw)
        params["sr_b"] = jnp.zeros((C,), dtype)
        params["ln_g"] = jnp.ones((C,), dtype)
        params["ln_b"] = jnp.zeros((C,), dtype)
    return params


def prepare_params(params, num_heads, sr_ratio, compute_dtype=jnp.bfloat16):
    """One-time derivation: scale fold, per-head reshapes, KV fusion, bf16 cast."""
    C = params["q_w"].shape[0]
    H = num_heads
    D = C // H
    scale = 1.0 / math.sqrt(D)

    prep = {
        # Q weights per head with 1/sqrt(D) folded in BEFORE the bf16 cast.
        "q_w": (params["q_w"] * scale).reshape(C, H, D).transpose(1, 0, 2)
                 .astype(compute_dtype),                                    # (H, C, D)
        "q_b": (params["q_b"] * scale).reshape(H, 1, D).astype(jnp.float32),
        # Fused K/V projection weights: one (C, 2C) matmul.
        "kv_w": jnp.concatenate([params["k_w"], params["v_w"]], axis=1)
                  .astype(compute_dtype),
        "kv_b": jnp.concatenate([params["k_b"], params["v_b"]], axis=0)
                  .astype(jnp.float32),
        # O weights per head so the kernel accumulates ctx_h @ o_w[h].
        "o_w": params["o_w"].reshape(H, D, C).astype(compute_dtype),        # (H, D, C)
        "o_b": params["o_b"].reshape(1, C).astype(jnp.float32),
    }
    if sr_ratio > 1:
        R = sr_ratio
        # Conv weight (C_out, C_in, kh, kw) -> (kh, kw, C_in, C_out) -> (R*R*C, C)
        prep["sr_w"] = (params["sr_w"].transpose(2, 3, 1, 0)
                        .reshape(R * R * C, C).astype(compute_dtype))
        prep["sr_b"] = params["sr_b"].astype(jnp.float32)
        prep["ln_g"] = params["ln_g"].astype(jnp.float32)
        prep["ln_b"] = params["ln_b"].astype(jnp.float32)
    return prep


# ----------------------------- Forward -----------------------------

@functools.partial(jax.jit,
                   static_argnames=("height", "width", "num_heads", "sr_ratio"))
def segformer_attention_forward(hidden_states, prep, height, width,
                                num_heads, sr_ratio):
    """Equivalent of SegformerAttention.forward(hidden_states, H, W).

    hidden_states: (B, N, C) with N = height * width.
    Returns attention_output of shape (B, N, C).
    """
    B, N, C = hidden_states.shape
    H = num_heads
    D = C // H
    out_dtype = hidden_states.dtype
    compute_dtype = prep["q_w"].dtype
    x = hidden_states.astype(compute_dtype)

    if sr_ratio > 1:
        R = sr_ratio
        Hp, Wp = height // R, width // R
        Nk = Hp * Wp
        # (B, N, C) is already (B, H, W, C) row-major -> patchify without the
        # channel-major NCHW transpose; only the small (R, Wp) axes are swapped.
        # TODO(synk): express this patch gather via the linear kernel's
        # index_map to remove the remaining XLA transpose pass entirely.
        patches = (x.reshape(B, Hp, R, Wp, R, C)
                    .transpose(0, 1, 3, 2, 4, 5)           # (B, Hp, Wp, kh, kw, C)
                    .reshape(B * Nk, R * R * C))
        # Sequence-reduction conv as a matmul with LayerNorm fused as epilogue.
        kv_in = linear(patches, prep["sr_w"], prep["sr_b"],
                       ln=(prep["ln_g"], prep["ln_b"]), eps=1e-5)           # (B*Nk, C)
    else:
        Nk = N
        kv_in = x.reshape(B * N, C)

    # Fused K/V projection: one (C, 2C) matmul.
    kv = linear(kv_in, prep["kv_w"], prep["kv_b"])                          # (B*Nk, 2C)
    k = kv[:, :C].reshape(B, Nk, H, D).transpose(0, 2, 1, 3)                # (B, H, Nk, D)
    v = kv[:, C:].reshape(B, Nk, H, D).transpose(0, 2, 1, 3)

    # Fused Q-projection + attention + output-projection kernel.
    return attention_fused(x, prep["q_w"], prep["q_b"], k, v,
                           prep["o_w"], prep["o_b"], H, out_dtype)


# ----------------------------- Pure-JAX reference -----------------------------

def _reference_forward(hidden_states, params, height, width, num_heads, sr_ratio):
    B, N, C = hidden_states.shape
    D = C // num_heads
    q = hidden_states @ params["q_w"] + params["q_b"]
    if sr_ratio > 1:
        R = sr_ratio
        xx = hidden_states.transpose(0, 2, 1).reshape(B, C, height, width)
        kv = jax.lax.conv_general_dilated(
            xx, params["sr_w"], window_strides=(R, R), padding="VALID",
            dimension_numbers=("NCHW", "OIHW", "NCHW")) + params["sr_b"][None, :, None, None]
        kv = kv.reshape(B, C, -1).transpose(0, 2, 1)
        mean = kv.mean(-1, keepdims=True)
        var = ((kv - mean) ** 2).mean(-1, keepdims=True)
        kv = (kv - mean) / jnp.sqrt(var + 1e-5) * params["ln_g"] + params["ln_b"]
    else:
        kv = hidden_states
    Nk = kv.shape[1]
    k = kv @ params["k_w"] + params["k_b"]
    v = kv @ params["v_w"] + params["v_b"]
    qh = q.reshape(B, N, num_heads, D).transpose(0, 2, 1, 3)
    kh = k.reshape(B, Nk, num_heads, D).transpose(0, 2, 1, 3)
    vh = v.reshape(B, Nk, num_heads, D).transpose(0, 2, 1, 3)
    s = jnp.einsum("bhqd,bhkd->bhqk", qh, kh) / math.sqrt(D)
    p = jax.nn.softmax(s, axis=-1)
    ctx = jnp.einsum("bhqk,bhkd->bhqd", p, vh).transpose(0, 2, 1, 3).reshape(B, N, C)
    return ctx @ params["o_w"] + params["o_b"]


# ----------------------------- Main -----------------------------

if __name__ == "__main__":
    B = 2
    hidden_size = 32
    num_heads = 2
    height = width = 16
    sr_ratio = 4
    N = height * width

    key = jax.random.PRNGKey(0)
    k_in, k_par = jax.random.split(key)
    hidden_states = jax.random.normal(k_in, (B, N, hidden_size), dtype=jnp.float32)
    params = init_segformer_attention_params(k_par, hidden_size, sr_ratio)
    prep = prepare_params(params, num_heads, sr_ratio)

    out = segformer_attention_forward(hidden_states, prep, height, width,
                                      num_heads, sr_ratio)
    out = jax.block_until_ready(out)

    ref = _reference_forward(hidden_states, params, height, width, num_heads, sr_ratio)
    assert out.shape == (B, N, hidden_size)
    max_err = float(jnp.max(jnp.abs(out - ref)))
    # Tolerance accounts for the bf16 matmul dataflow (f32 accumulation / f32
    # softmax+LN statistics) and the EUP approx-reciprocal softmax denominator.
    assert jnp.allclose(out, ref, atol=5e-3, rtol=5e-3), max_err

    print("KERNEL_OK")
</pallas_src>

<mosaic_0001>
module attributes {stable_mosaic.version = 11 : i64} {
  func.func @_linear_ln_kernel(%arg0: i32, %arg1: memref<32x512xbf16, #tpu.memory_space<vmem>>, %arg2: memref<512x32xbf16, #tpu.memory_space<vmem>>, %arg3: memref<1x32xf32, #tpu.memory_space<vmem>>, %arg4: memref<1x32xf32, #tpu.memory_space<vmem>>, %arg5: memref<1x32xf32, #tpu.memory_space<vmem>>, %arg6: memref<32x32xbf16, #tpu.memory_space<vmem>>) attributes {dimension_semantics = [#tpu.dimension_semantics<parallel>], iteration_bounds = array<i64: 1>, scalar_prefetch = 0 : i64, scratch_operands = 0 : i64, tpu.core_type = #tpu.core_type<tc>, window_params = [{transform_indices = @transform_0, window_bounds = array<i64: 32, 512>}, {pipeline_mode = #tpu.pipeline_mode<synchronous>, transform_indices = @transform_1, window_bounds = array<i64: 512, 32>}, {pipeline_mode = #tpu.pipeline_mode<synchronous>, transform_indices = @transform_2, window_bounds = array<i64: 1, 32>}, {pipeline_mode = #tpu.pipeline_mode<synchronous>, transform_indices = @transform_3, window_bounds = array<i64: 1, 32>}, {pipeline_mode = #tpu.pipeline_mode<synchronous>, transform_indices = @transform_4, window_bounds = array<i64: 1, 32>}, {transform_indices = @transform_5, window_bounds = array<i64: 32, 32>}]} {
    %c0 = arith.constant 0 : index
    %c0_0 = arith.constant 0 : index
    %0 = vector.load %arg1[%c0, %c0_0] : memref<32x512xbf16, #tpu.memory_space<vmem>>, vector<32x512xbf16>
    %c0_1 = arith.constant 0 : index
    %c0_2 = arith.constant 0 : index
    %1 = vector.load %arg2[%c0_1, %c0_2] : memref<512x32xbf16, #tpu.memory_space<vmem>>, vector<512x32xbf16>
    %cst = arith.constant dense<0.000000e+00> : vector<32x32xf32>
    %2 = tpu.matmul %0, %1, %cst {dimension_numbers = #tpu.dot_dimension_numbers<[1], [0], [0], [1], [0, 0, 1, 1], [], []>} : vector<32x512xbf16>, vector<512x32xbf16>, vector<32x32xf32> -> vector<32x32xf32>
    %c0_3 = arith.constant 0 : index
    %c0_4 = arith.constant 0 : index
    %3 = vector.load %arg3[%c0_3, %c0_4] : memref<1x32xf32, #tpu.memory_space<vmem>>, vector<1x32xf32>
    %4 = vector.broadcast %3 : vector<1x32xf32> to vector<32x32xf32>
    %5 = arith.addf %2, %4 : vector<32x32xf32>
    %cst_5 = arith.constant dense<0.000000e+00> : vector<32xf32>
    %6 = vector.multi_reduction <add>, %5, %cst_5 [1] : vector<32x32xf32> to vector<32xf32>
    %7 = vector.shape_cast %6 : vector<32xf32> to vector<32x1xf32>
    %cst_6 = arith.constant 3.200000e+01 : f32
    %8 = vector.broadcast %cst_6 : f32 to vector<32x1xf32>
    %9 = arith.divf %7, %8 : vector<32x1xf32>
    %10 = vector.broadcast %9 : vector<32x1xf32> to vector<32x32xf32>
    %11 = arith.subf %5, %10 : vector<32x32xf32>
    %12 = arith.mulf %11, %11 : vector<32x32xf32>
    %cst_7 = arith.constant dense<0.000000e+00> : vector<32xf32>
    %13 = vector.multi_reduction <add>, %12, %cst_7 [1] : vector<32x32xf32> to vector<32xf32>
    %14 = vector.shape_cast %13 : vector<32xf32> to vector<32x1xf32>
    %cst_8 = arith.constant 3.200000e+01 : f32
    %15 = vector.broadcast %cst_8 : f32 to vector<32x1xf32>
    %16 = arith.divf %14, %15 : vector<32x1xf32>
    %17 = vector.broadcast %9 : vector<32x1xf32> to vector<32x32xf32>
    %18 = arith.subf %5, %17 : vector<32x32xf32>
    %cst_9 = arith.constant 9.99999974E-6 : f32
    %19 = vector.broadcast %cst_9 : f32 to vector<32x1xf32>
    %20 = arith.addf %16, %19 : vector<32x1xf32>
    %21 = math.rsqrt %20 : vector<32x1xf32>
    %22 = vector.broadcast %21 : vector<32x1xf32> to vector<32x32xf32>
    %23 = arith.mulf %18, %22 : vector<32x32xf32>
    %c0_10 = arith.constant 0 : index
    %c0_11 = arith.constant 0 : index
    %24 = vector.load %arg4[%c0_10, %c0_11] : memref<1x32xf32, #tpu.memory_space<vmem>>, vector<1x32xf32>
    %25 = vector.broadcast %24 : vector<1x32xf32> to vector<32x32xf32>
    %26 = arith.mulf %23, %25 : vector<32x32xf32>
    %c0_12 = arith.constant 0 : index
    %c0_13 = arith.constant 0 : index
    %27 = vector.load %arg5[%c0_12, %c0_13] : memref<1x32xf32, #tpu.memory_space<vmem>>, vector<1x32xf32>
    %28 = vector.broadcast %27 : vector<1x32xf32> to vector<32x32xf32>
    %29 = arith.addf %26, %28 : vector<32x32xf32>
    %30 = arith.truncf %29 : vector<32x32xf32> to vector<32x32xbf16>
    %c0_14 = arith.constant 0 : index
    %c0_15 = arith.constant 0 : index
    %31 = vector.load %arg6[%c0_14, %c0_15] : memref<32x32xbf16, #tpu.memory_space<vmem>>, vector<32x32xbf16>
    tpu.vector_store %arg6[%c0_14, %c0_15], %30 {strides = array<i32>} : memref<32x32xbf16, #tpu.memory_space<vmem>>, vector<32x32xbf16>,
    return
  }
  func.func @transform_0(%arg0: i32) -> (i32, i32) {
    %c0_i32 = arith.constant 0 : i32
    %c0_i32_0 = arith.constant 0 : i32
    return %arg0, %c0_i32 : i32, i32
  }
  func.func @transform_1(%arg0: i32) -> (i32, i32) {
    %c0_i32 = arith.constant 0 : i32
    %c0_i32_0 = arith.constant 0 : i32
    %c0_i32_1 = arith.constant 0 : i32
    return %c0_i32, %c0_i32_0 : i32, i32
  }
  func.func @transform_2(%arg0: i32) -> (i32, i32) {
    %c0_i32 = arith.constant 0 : i32
    %c0_i32_0 = arith.constant 0 : i32
    %c0_i32_1 = arith.constant 0 : i32
    return %c0_i32, %c0_i32_0 : i32, i32
  }
  func.func @transform_3(%arg0: i32) -> (i32, i32) {
    %c0_i32 = arith.constant 0 : i32
    %c0_i32_0 = arith.constant 0 : i32
    %c0_i32_1 = arith.constant 0 : i32
    return %c0_i32, %c0_i32_0 : i32, i32
  }
  func.func @transform_4(%arg0: i32) -> (i32, i32) {
    %c0_i32 = arith.constant 0 : i32
    %c0_i32_0 = arith.constant 0 : i32
    %c0_i32_1 = arith.constant 0 : i32
    return %c0_i32, %c0_i32_0 : i32, i32
  }
  func.func @transform_5(%arg0: i32) -> (i32, i32) {
    %c0_i32 = arith.constant 0 : i32
    %c0_i32_0 = arith.constant 0 : i32
    return %arg0, %c0_i32 : i32, i32
  }
}

module attributes {stable_mosaic.version = 11 : i64} {
  func.func @_linear_kernel(%arg0: i32, %arg1: memref<32x32xbf16, #tpu.memory_space<vmem>>, %arg2: memref<32x64xbf16, #tpu.memory_space<vmem>>, %arg3: memref<1x64xf32, #tpu.memory_space<vmem>>, %arg4: memref<32x64xbf16, #tpu.memory_space<vmem>>) attributes {dimension_semantics = [#tpu.dimension_semantics<parallel>], iteration_bounds = array<i64: 1>, scalar_prefetch = 0 : i64, scratch_operands = 0 : i64, tpu.core_type = #tpu.core_type<tc>, window_params = [{transform_indices = @transform_0, window_bounds = array<i64: 32, 32>}, {pipeline_mode = #tpu.pipeline_mode<synchronous>, transform_indices = @transform_1, window_bounds = array<i64: 32, 64>}, {pipeline_mode = #tpu.pipeline_mode<synchronous>, transform_indices = @transform_2, window_bounds = array<i64: 1, 64>}, {transform_indices = @transform_3, window_bounds = array<i64: 32, 64>}]} {
    %c0 = arith.constant 0 : index
    %c0_0 = arith.constant 0 : index
    %0 = vector.load %arg1[%c0, %c0_0] : memref<32x32xbf16, #tpu.memory_space<vmem>>, vector<32x32xbf16>
    %c0_1 = arith.constant 0 : index
    %c0_2 = arith.constant 0 : index
    %1 = vector.load %arg2[%c0_1, %c0_2] : memref<32x64xbf16, #tpu.memory_space<vmem>>, vector<32x64xbf16>
    %cst = arith.constant dense<0.000000e+00> : vector<32x64xf32>
    %2 = tpu.matmul %0, %1, %cst {dimension_numbers = #tpu.dot_dimension_numbers<[1], [0], [0], [1], [0, 0, 1, 1], [], []>} : vector<32x32xbf16>, vector<32x64xbf16>, vector<32x64xf32> -> vector<32x64xf32>
    %c0_3 = arith.constant 0 : index
    %c0_4 = arith.constant 0 : index
    %3 = vector.load %arg3[%c0_3, %c0_4] : memref<1x64xf32, #tpu.memory_space<vmem>>, vector<1x64xf32>
    %4 = vector.broadcast %3 : vector<1x64xf32> to vector<32x64xf32>
    %5 = arith.addf %2, %4 : vector<32x64xf32>
    %6 = arith.truncf %5 : vector<32x64xf32> to vector<32x64xbf16>
    %c0_5 = arith.constant 0 : index
    %c0_6 = arith.constant 0 : index
    %7 = vector.load %arg4[%c0_5, %c0_6] : memref<32x64xbf16, #tpu.memory_space<vmem>>, vector<32x64xbf16>
    tpu.vector_store %arg4[%c0_5, %c0_6], %6 {strides = array<i32>} : memref<32x64xbf16, #tpu.memory_space<vmem>>, vector<32x64xbf16>,
    return
  }
  func.func @transform_0(%arg0: i32) -> (i32, i32) {
    %c0_i32 = arith.constant 0 : i32
    %c0_i32_0 = arith.constant 0 : i32
    return %arg0, %c0_i32 : i32, i32
  }
  func.func @transform_1(%arg0: i32) -> (i32, i32) {
    %c0_i32 = arith.constant 0 : i32
    %c0_i32_0 = arith.constant 0 : i32
    %c0_i32_1 = arith.constant 0 : i32
    return %c0_i32, %c0_i32_0 : i32, i32
  }
  func.func @transform_2(%arg0: i32) -> (i32, i32) {
    %c0_i32 = arith.constant 0 : i32
    %c0_i32_0 = arith.constant 0 : i32
    %c0_i32_1 = arith.constant 0 : i32
    return %c0_i32, %c0_i32_0 : i32, i32
  }
  func.func @transform_3(%arg0: i32) -> (i32, i32) {
    %c0_i32 = arith.constant 0 : i32
    %c0_i32_0 = arith.constant 0 : i32
    return %arg0, %c0_i32 : i32, i32
  }
}

module attributes {stable_mosaic.version = 11 : i64} {
  func.func @_attn_kernel(%arg0: i32, %arg1: i32, %arg2: memref<1x256x32xbf16, #tpu.memory_space<vmem>>, %arg3: memref<2x32x16xbf16, #tpu.memory_space<vmem>>, %arg4: memref<2x1x16xf32, #tpu.memory_space<vmem>>, %arg5: memref<1x2x16x16xbf16, #tpu.memory_space<vmem>>, %arg6: memref<1x2x16x16xbf16, #tpu.memory_space<vmem>>, %arg7: memref<2x16x32xbf16, #tpu.memory_space<vmem>>, %arg8: memref<1x32xf32, #tpu.memory_space<vmem>>, %arg9: memref<1x256x32xf32, #tpu.memory_space<vmem>>) attributes {dimension_semantics = [#tpu.dimension_semantics<parallel>, #tpu.dimension_semantics<parallel>], iteration_bounds = array<i64: 2, 1>, scalar_prefetch = 0 : i64, scratch_operands = 0 : i64, tpu.core_type = #tpu.core_type<tc>, window_params = [{transform_indices = @transform_0, window_bounds = array<i64: 1, 256, 32>}, {pipeline_mode = #tpu.pipeline_mode<synchronous>, transform_indices = @transform_1, window_bounds = array<i64: 2, 32, 16>}, {pipeline_mode = #tpu.pipeline_mode<synchronous>, transform_indices = @transform_2, window_bounds = array<i64: 2, 1, 16>}, {transform_indices = @transform_3, window_bounds = array<i64: 1, 2, 16, 16>}, {transform_indices = @transform_4, window_bounds = array<i64: 1, 2, 16, 16>}, {pipeline_mode = #tpu.pipeline_mode<synchronous>, transform_indices = @transform_5, window_bounds = array<i64: 2, 16, 32>}, {pipeline_mode = #tpu.pipeline_mode<synchronous>, transform_indices = @transform_6, window_bounds = array<i64: 1, 32>}, {transform_indices = @transform_7, window_bounds = array<i64: 1, 256, 32>}]} {
    %c0 = arith.constant 0 : index
    %c0_0 = arith.constant 0 : index
    %c0_1 = arith.constant 0 : index
    %0 = vector.load %arg2[%c0, %c0_0, %c0_1] : memref<1x256x32xbf16, #tpu.memory_space<vmem>>, vector<1x256x32xbf16>
    %1 = vector.shape_cast %0 : vector<1x256x32xbf16> to vector<256x32xbf16>
    %c0_2 = arith.constant 0 : index
    %c0_3 = arith.constant 0 : index
    %c0_4 = arith.constant 0 : index
    %2 = vector.load %arg3[%c0_2, %c0_3, %c0_4] : memref<2x32x16xbf16, #tpu.memory_space<vmem>>, vector<1x32x16xbf16>
    %3 = vector.shape_cast %2 : vector<1x32x16xbf16> to vector<32x16xbf16>
    %cst = arith.constant dense<0.000000e+00> : vector<256x16xf32>
    %4 = tpu.matmul %1, %3, %cst {dimension_numbers = #tpu.dot_dimension_numbers<[1], [0], [0], [1], [0, 0, 1, 1], [], []>} : vector<256x32xbf16>, vector<32x16xbf16>, vector<256x16xf32> -> vector<256x16xf32>
    %c0_5 = arith.constant 0 : index
    %c0_6 = arith.constant 0 : index
    %c0_7 = arith.constant 0 : index
    %5 = vector.load %arg4[%c0_5, %c0_6, %c0_7] : memref<2x1x16xf32, #tpu.memory_space<vmem>>, vector<1x1x16xf32>
    %6 = vector.shape_cast %5 : vector<1x1x16xf32> to vector<1x16xf32>
    %7 = vector.broadcast %6 : vector<1x16xf32> to vector<256x16xf32>
    %8 = arith.addf %4, %7 : vector<256x16xf32>
    %9 = arith.truncf %8 : vector<256x16xf32> to vector<256x16xbf16>
    %c0_8 = arith.constant 0 : index
    %c0_9 = arith.constant 0 : index
    %c0_10 = arith.constant 0 : index
    %c0_11 = arith.constant 0 : index
    %10 = vector.load %arg5[%c0_8, %c0_9, %c0_10, %c0_11] : memref<1x2x16x16xbf16, #tpu.memory_space<vmem>>, vector<1x1x16x16xbf16>
    %11 = vector.shape_cast %10 : vector<1x1x16x16xbf16> to vector<16x16xbf16>
    %cst_12 = arith.constant dense<0.000000e+00> : vector<256x16xf32>
    %12 = tpu.matmul %9, %11, %cst_12 {dimension_numbers = #tpu.dot_dimension_numbers<[1], [1], [0], [0], [0, 0, 1, 0], [], []>} : vector<256x16xbf16>, vector<16x16xbf16>, vector<256x16xf32> -> vector<256x16xf32>
    %cst_13 = arith.constant dense<0xFF800000> : vector<256xf32>
    %13 = vector.multi_reduction <maximumf>, %12, %cst_13 [1] : vector<256x16xf32> to vector<256xf32>
    %14 = vector.shape_cast %13 : vector<256xf32> to vector<256x1xf32>
    %15 = vector.broadcast %14 : vector<256x1xf32> to vector<256x16xf32>
    %16 = arith.subf %12, %15 : vector<256x16xf32>
    %17 = math.exp %16 : vector<256x16xf32>
    %cst_14 = arith.constant dense<0.000000e+00> : vector<256xf32>
    %18 = vector.multi_reduction <add>, %17, %cst_14 [1] : vector<256x16xf32> to vector<256xf32>
    %19 = vector.shape_cast %18 : vector<256xf32> to vector<256x1xf32>
    %20 = tpu.reciprocal %19 {approx = true} : vector<256x1xf32> -> vector<256x1xf32>
    %21 = vector.broadcast %20 : vector<256x1xf32> to vector<256x16xf32>
    %22 = arith.mulf %17, %21 : vector<256x16xf32>
    %23 = arith.truncf %22 : vector<256x16xf32> to vector<256x16xbf16>
    %c0_15 = arith.constant 0 : index
    %c0_16 = arith.constant 0 : index
    %c0_17 = arith.constant 0 : index
    %c0_18 = arith.constant 0 : index
    %24 = vector.load %arg6[%c0_15, %c0_16, %c0_17, %c0_18] : memref<1x2x16x16xbf16, #tpu.memory_space<vmem>>, vector<1x1x16x16xbf16>
    %25 = vector.shape_cast %24 : vector<1x1x16x16xbf16> to vector<16x16xbf16>
    %cst_19 = arith.constant dense<0.000000e+00> : vector<256x16xf32>
    %26 = tpu.matmul %23, %25, %cst_19 {dimension_numbers = #tpu.dot_dimension_numbers<[1], [0], [0], [1], [0, 0, 1, 1], [], []>} : vector<256x16xbf16>, vector<16x16xbf16>, vector<256x16xf32> -> vector<256x16xf32>
    %27 = arith.truncf %26 : vector<256x16xf32> to vector<256x16xbf16>
    %c0_20 = arith.constant 0 : index
    %c0_21 = arith.constant 0 : index
    %c0_22 = arith.constant 0 : index
    %28 = vector.load %arg7[%c0_20, %c0_21, %c0_22] : memref<2x16x32xbf16, #tpu.memory_space<vmem>>, vector<1x16x32xbf16>
    %29 = vector.shape_cast %28 : vector<1x16x32xbf16> to vector<16x32xbf16>
    %cst_23 = arith.constant dense<0.000000e+00> : vector<256x32xf32>
    %30 = tpu.matmul %27, %29, %cst_23 {dimension_numbers = #tpu.dot_dimension_numbers<[1], [0], [0], [1], [0, 0, 1, 1], [], []>} : vector<256x16xbf16>, vector<16x32xbf16>, vector<256x32xf32> -> vector<256x32xf32>
    %c1 = arith.constant 1 : index
    %c0_24 = arith.constant 0 : index
    %c0_25 = arith.constant 0 : index
    %31 = vector.load %arg3[%c1, %c0_24, %c0_25] : memref<2x32x16xbf16, #tpu.memory_space<vmem>>, vector<1x32x16xbf16>
    %32 = vector.shape_cast %31 : vector<1x32x16xbf16> to vector<32x16xbf16>
    %cst_26 = arith.constant dense<0.000000e+00> : vector<256x16xf32>
    %33 = tpu.matmul %1, %32, %cst_26 {dimension_numbers = #tpu.dot_dimension_numbers<[1], [0], [0], [1], [0, 0, 1, 1], [], []>} : vector<256x32xbf16>, vector<32x16xbf16>, vector<256x16xf32> -> vector<256x16xf32>
    %c1_27 = arith.constant 1 : index
    %c0_28 = arith.constant 0 : index
    %c0_29 = arith.constant 0 : index
    %34 = vector.load %arg4[%c1_27, %c0_28, %c0_29] : memref<2x1x16xf32, #tpu.memory_space<vmem>>, vector<1x1x16xf32>
    %35 = vector.shape_cast %34 : vector<1x1x16xf32> to vector<1x16xf32>
    %36 = vector.broadcast %35 : vector<1x16xf32> to vector<256x16xf32>
    %37 = arith.addf %33, %36 : vector<256x16xf32>
    %38 = arith.truncf %37 : vector<256x16xf32> to vector<256x16xbf16>
    %c0_30 = arith.constant 0 : index
    %c1_31 = arith.constant 1 : index
    %c0_32 = arith.constant 0 : index
    %c0_33 = arith.constant 0 : index
    %39 = vector.load %arg5[%c0_30, %c1_31, %c0_32, %c0_33] : memref<1x2x16x16xbf16, #tpu.memory_space<vmem>>, vector<1x1x16x16xbf16>
    %40 = vector.shape_cast %39 : vector<1x1x16x16xbf16> to vector<16x16xbf16>
    %cst_34 = arith.constant dense<0.000000e+00> : vector<256x16xf32>
    %41 = tpu.matmul %38, %40, %cst_34 {dimension_numbers = #tpu.dot_dimension_numbers<[1], [1], [0], [0], [0, 0, 1, 0], [], []>} : vector<256x16xbf16>, vector<16x16xbf16>, vector<256x16xf32> -> vector<256x16xf32>
    %cst_35 = arith.constant dense<0xFF800000> : vector<256xf32>
    %42 = vector.multi_reduction <maximumf>, %41, %cst_35 [1] : vector<256x16xf32> to vector<256xf32>
    %43 = vector.shape_cast %42 : vector<256xf32> to vector<256x1xf32>
    %44 = vector.broadcast %43 : vector<256x1xf32> to vector<256x16xf32>
    %45 = arith.subf %41, %44 : vector<256x16xf32>
    %46 = math.exp %45 : vector<256x16xf32>
    %cst_36 = arith.constant dense<0.000000e+00> : vector<256xf32>
    %47 = vector.multi_reduction <add>, %46, %cst_36 [1] : vector<256x16xf32> to vector<256xf32>
    %48 = vector.shape_cast %47 : vector<256xf32> to vector<256x1xf32>
    %49 = tpu.reciprocal %48 {approx = true} : vector<256x1xf32> -> vector<256x1xf32>
    %50 = vector.broadcast %49 : vector<256x1xf32> to vector<256x16xf32>
    %51 = arith.mulf %46, %50 : vector<256x16xf32>
    %52 = arith.truncf %51 : vector<256x16xf32> to vector<256x16xbf16>
    %c0_37 = arith.constant 0 : index
    %c1_38 = arith.constant 1 : index
    %c0_39 = arith.constant 0 : index
    %c0_40 = arith.constant 0 : index
    %53 = vector.load %arg6[%c0_37, %c1_38, %c0_39, %c0_40] : memref<1x2x16x16xbf16, #tpu.memory_space<vmem>>, vector<1x1x16x16xbf16>
    %54 = vector.shape_cast %53 : vector<1x1x16x16xbf16> to vector<16x16xbf16>
    %cst_41 = arith.constant dense<0.000000e+00> : vector<256x16xf32>
    %55 = tpu.matmul %52, %54, %cst_41 {dimension_numbers = #tpu.dot_dimension_numbers<[1], [0], [0], [1], [0, 0, 1, 1], [], []>} : vector<256x16xbf16>, vector<16x16xbf16>, vector<256x16xf32> -> vector<256x16xf32>
    %56 = arith.truncf %55 : vector<256x16xf32> to vector<256x16xbf16>
    %c1_42 = arith.constant 1 : index
    %c0_43 = arith.constant 0 : index
    %c0_44 = arith.constant 0 : index
    %57 = vector.load %arg7[%c1_42, %c0_43, %c0_44] : memref<2x16x32xbf16, #tpu.memory_space<vmem>>, vector<1x16x32xbf16>
    %58 = vector.shape_cast %57 : vector<1x16x32xbf16> to vector<16x32xbf16>
    %cst_45 = arith.constant dense<0.000000e+00> : vector<256x32xf32>
    %59 = tpu.matmul %56, %58, %cst_45 {dimension_numbers = #tpu.dot_dimension_numbers<[1], [0], [0], [1], [0, 0, 1, 1], [], []>} : vector<256x16xbf16>, vector<16x32xbf16>, vector<256x32xf32> -> vector<256x32xf32>
    %60 = arith.addf %30, %59 : vector<256x32xf32>
    %c0_46 = arith.constant 0 : index
    %c0_47 = arith.constant 0 : index
    %61 = vector.load %arg8[%c0_46, %c0_47] : memref<1x32xf32, #tpu.memory_space<vmem>>, vector<1x32xf32>
    %62 = vector.broadcast %61 : vector<1x32xf32> to vector<256x32xf32>
    %63 = arith.addf %60, %62 : vector<256x32xf32>
    %c0_48 = arith.constant 0 : index
    %c0_49 = arith.constant 0 : index
    %c0_50 = arith.constant 0 : index
    %64 = vector.load %arg9[%c0_48, %c0_49, %c0_50] : memref<1x256x32xf32, #tpu.memory_space<vmem>>, vector<1x256x32xf32>
    %65 = vector.shape_cast %64 : vector<1x256x32xf32> to vector<256x32xf32>
    %66 = vector.shape_cast %63 : vector<256x32xf32> to vector<1x256x32xf32>
    tpu.vector_store %arg9[%c0_48, %c0_49, %c0_50], %66 {strides = array<i32>} : memref<1x256x32xf32, #tpu.memory_space<vmem>>, vector<1x256x32xf32>,
    return
  }
  func.func @transform_0(%arg0: i32, %arg1: i32) -> (i32, i32, i32) {
    %c0_i32 = arith.constant 0 : i32
    %c0_i32_0 = arith.constant 0 : i32
    return %arg0, %arg1, %c0_i32 : i32, i32, i32
  }
  func.func @transform_1(%arg0: i32, %arg1: i32) -> (i32, i32, i32) {
    %c0_i32 = arith.constant 0 : i32
    %c0_i32_0 = arith.constant 0 : i32
    %c0_i32_1 = arith.constant 0 : i32
    %c0_i32_2 = arith.constant 0 : i32
    return %c0_i32, %c0_i32_0, %c0_i32_1 : i32, i32, i32
  }
  func.func @transform_2(%arg0: i32, %arg1: i32) -> (i32, i32, i32) {
    %c0_i32 = arith.constant 0 : i32
    %c0_i32_0 = arith.constant 0 : i32
    %c0_i32_1 = arith.constant 0 : i32
    %c0_i32_2 = arith.constant 0 : i32
    return %c0_i32, %c0_i32_0, %c0_i32_1 : i32, i32, i32
  }
  func.func @transform_3(%arg0: i32, %arg1: i32) -> (i32, i32, i32, i32) {
    %c0_i32 = arith.constant 0 : i32
    %c0_i32_0 = arith.constant 0 : i32
    %c0_i32_1 = arith.constant 0 : i32
    %c0_i32_2 = arith.constant 0 : i32
    return %arg0, %c0_i32, %c0_i32_0, %c0_i32_1 : i32, i32, i32, i32
  }
  func.func @transform_4(%arg0: i32, %arg1: i32) -> (i32, i32, i32, i32) {
    %c0_i32 = arith.constant 0 : i32
    %c0_i32_0 = arith.constant 0 : i32
    %c0_i32_1 = arith.constant 0 : i32
    %c0_i32_2 = arith.constant 0 : i32
    return %arg0, %c0_i32, %c0_i32_0, %c0_i32_1 : i32, i32, i32, i32
  }
  func.func @transform_5(%arg0: i32, %arg1: i32) -> (i32, i32, i32) {
    %c0_i32 = arith.constant 0 : i32
    %c0_i32_0 = arith.constant 0 : i32
    %c0_i32_1 = arith.constant 0 : i32
    %c0_i32_2 = arith.constant 0 : i32
    return %c0_i32, %c0_i32_0, %c0_i32_1 : i32, i32, i32
  }
  func.func @transform_6(%arg0: i32, %arg1: i32) -> (i32, i32) {
    %c0_i32 = arith.constant 0 : i32
    %c0_i32_0 = arith.constant 0 : i32
    %c0_i32_1 = arith.constant 0 : i32
    return %c0_i32, %c0_i32_0 : i32, i32
  }
  func.func @transform_7(%arg0: i32, %arg1: i32) -> (i32, i32, i32) {
    %c0_i32 = arith.constant 0 : i32
    %c0_i32_0 = arith.constant 0 : i32
    return %arg0, %arg1, %c0_i32 : i32, i32, i32
  }
}

</mosaic_0001>

<bundles_post_ra>
// kernel: segformer_attention_forward.4
= control target key start
LH: loop header
LB: loop body
LE: loop exit
PB: predicated region body
PF: predicated region fallthrough
CT: control target
= control target key end

     0   :  { %vm52_vm0 = vcmask 261120   ;;  %vm124_vm1 = vcmask 519168   ;;  %s211_s1 = inlined_call_operand.vmem [shape: bf16[32,64], index: 1, kind: input, shape index: {}]   ;;  %s212_s0 = inlined_call_operand.vmem [shape: bf16[32,32], index: 0, kind: input, shape index: {}]   ;;  %s213_s2 = inlined_call_operand.vmem [shape: f32[1,64], index: 2, kind: input, shape index: {}]   ;;  %s214_s3 = inlined_call_operand.vmem [shape: bf16[32,64], index: 3, kind: output, shape index: {}]  }
   0x1   :  { %v160_v0 = vld [vmem:[%s211_s1 + $0x8] sm:$0xff]   ;;  %v161_v1 = vld [vmem:[%s211_s1] sm:$0xff]  }
   0x2   :  { %152 = vmatprep.subr.bf16.mxu0 %v160_v0  ;;  %v162_v2 = vld [vmem:[%s212_s0] sm:$0xff]   ;;  %v163_v3 = vld [vmem:[%s212_s0 + $0x8] sm:$0xff]  }
   0x3   :  { %153 = vmatpush3.bf16.msra.mxu0 %v160_v0  ;;  %156 = vmatprep.mubr.msk.bf16.mxu0 %vm52_vm0, %v162_v2  ;;  %v133_v4 = vld [vmem:[%s213_s2] ss:$0 sm:$0xff] }
   0x4   :  { %154 = vmatprep.subr.bf16.mxu0 %v161_v1 }
   0x7   :  { %155 = vmatpush3.bf16.msra.mxu0 %v161_v1 }
   0xa   :  { %157 = vmatmul.mubr.msk.bf16.vlgmr.msra.gmra.mxu0 %vm52_vm0, %v163_v3 }
  0xca   :  { %v158_v5 = vpop.f32.mrf.mxu0 }
  0xcb   :  { %v102_v6 = vadd.f32 %v158_v5, %v133_v4 }
  0xcc   :  { %v93_v7 = vpop.f32.mrf.mxu0 }
  0xcd   :  { %v146_v8 = vpack.c.bf16 %v102_v6, %v102_v6  ;;  %v94_v9 = vadd.f32 %v133_v4, %v93_v7 }
  0xce   :  { %v159_v10 = vpop.f32.mrf.mxu0 }
  0xcf   :  { %127 = vst.msk [vmem:[%s214_s3 + $0x8] sm:$0xf] %vm124_vm1, %v146_v8  ;;  %v144_v11 = vpack.c.bf16 %v94_v9, %v94_v9  ;;  %v105_v12 = vadd.f32 %v159_v10, %v133_v4 }
  0xd0   :  { %v96_v13 = vpop.f32.mrf.mxu0 }
  0xd1   :  { %125 = vst.msk [vmem:[%s214_s3] sm:$0xf] %vm124_vm1, %v144_v11  ;;  %v147_v14 = vpack.c.bf16 %v105_v12, %v105_v12  ;;  %v97_v15 = vadd.f32 %v133_v4, %v96_v13 }
  0xd3   :  { %128 = vst.msk [vmem:[%s214_s3 + $0xc] sm:$0xf] %vm124_vm1, %v147_v14  ;;  %v145_v16 = vpack.c.bf16 %v97_v15, %v97_v15 }
  0xd5   :  { %126 = vst.msk [vmem:[%s214_s3 + $0x4] sm:$0xf] %vm124_vm1, %v145_v16 }

// kernel: segformer_attention_forward.3
= control target key start
LH: loop header
LB: loop body
LE: loop exit
PB: predicated region body
PF: predicated region fallthrough
CT: control target
= control target key end

     0   :  { %vm430_vm0 = vcmask 261120   ;;  %vm522_vm1 = vcmask 257024   ;;  %s873_s1 = inlined_call_operand.vmem [shape: bf16[512,32], index: 1, kind: input, shape index: {}]   ;;  %s874_s0 = inlined_call_operand.vmem [shape: bf16[32,512], index: 0, kind: input, shape index: {}]   ;;  %s875_s2 = inlined_call_operand.vmem [shape: f32[1,32], index: 2, kind: input, shape index: {}]   ;;  %s876_s3 = inlined_call_operand.vmem [shape: f32[1,32], index: 3, kind: input, shape index: {}]   ;;  %s877_s4 = inlined_call_operand.vmem [shape: f32[1,32], index: 4, kind: input, shape index: {}]   ;;  %s878_s5 = inlined_call_operand.vmem [shape: bf16[32,32], index: 5, kind: output, shape index: {}]  }
   0x1   :  { %v638_v0 = vld [vmem:[%s873_s1 + $0x78] sm:$0xff]   ;;  %v642_v4 = vld [vmem:[%s873_s1 + $0x70] sm:$0xff]   ;;  %v646_v8 = vld [vmem:[%s873_s1 + $0x68] sm:$0xff]  }
   0x2   :  { %v639_v1 = vld [vmem:[%s873_s1 + $0xf8] sm:$0xff]   ;;  %582 = vmatprep.subr.bf16.mxu0 %v638_v0  ;;  %v643_v5 = vld [vmem:[%s873_s1 + $0xf0] sm:$0xff]   ;;  %v647_v9 = vld [vmem:[%s873_s1 + $0xe8] sm:$0xff]  }
   0x3   :  { %v640_v2 = vld [vmem:[%s873_s1 + $0x38] sm:$0xff]   ;;  %610 = vmatprep.subr.bf16.mxu1 %v639_v1  ;;  %v644_v6 = vld [vmem:[%s873_s1 + $0x30] sm:$0xff]   ;;  %v648_v10 = vld [vmem:[%s873_s1 + $0x28] sm:$0xff]  }
   0x4   :  { %v641_v3 = vld [vmem:[%s873_s1 + $0xb8] sm:$0xff]   ;;  %583 = vmatpush3.bf16.msra.mxu0 %v640_v2  ;;  %v645_v7 = vld [vmem:[%s873_s1 + $0xb0] sm:$0xff]   ;;  %v649_v11 = vld [vmem:[%s873_s1 + $0xa8] sm:$0xff]  }
   0x5   :  { %611 = vmatpush3.bf16.msra.mxu1 %v641_v3  ;;  %584 = vmatprep.subr.bf16.mxu0 %v642_v4  ;;  %v650_v12 = vld [vmem:[%s873_s1 + $0x60] sm:$0xff]   ;;  %v654_v16 = vld [vmem:[%s873_s1 + $0x58] sm:$0xff]   ;;  %v658_v20 = vld [vmem:[%s873_s1 + $0x50] sm:$0xff]  }
   0x6   :  { %612 = vmatprep.subr.bf16.mxu1 %v643_v5  ;;  %v651_v13 = vld [vmem:[%s873_s1 + $0xe0] sm:$0xff]   ;;  %v655_v17 = vld [vmem:[%s873_s1 + $0xd8] sm:$0xff]   ;;  %v659_v21 = vld [vmem:[%s873_s1 + $0xd0] sm:$0xff]  }
   0x7   :  { %v652_v14 = vld [vmem:[%s873_s1 + $0x20] sm:$0xff]   ;;  %v656_v18 = vld [vmem:[%s873_s1 + $0x18] sm:$0xff]   ;;  %v660_v22 = vld [vmem:[%s873_s1 + $0x10] sm:$0xff]  }
   0x8   :  { %585 = vmatpush3.bf16.msra.mxu0 %v644_v6  ;;  %v653_v15 = vld [vmem:[%s873_s1 + $0xa0] sm:$0xff]   ;;  %v657_v19 = vld [vmem:[%s873_s1 + $0x98] sm:$0xff]   ;;  %v661_v23 = vld [vmem:[%s873_s1 + $0x90] sm:$0xff]  }
   0x9   :  { %613 = vmatpush3.bf16.msra.mxu1 %v645_v7  ;;  %586 = vmatprep.subr.bf16.mxu0 %v646_v8  ;;  %v662_v24 = vld [vmem:[%s873_s1 + $0x48] sm:$0xff]   ;;  %v666_v28 = vld [vmem:[%s873_s1 + $0x40] sm:$0xff]  }
   0xa   :  { %614 = vmatprep.subr.bf16.mxu1 %v647_v9  ;;  %v663_v25 = vld [vmem:[%s873_s1 + $0xc8] sm:$0xff]   ;;  %v667_v29 = vld [vmem:[%s873_s1 + $0xc0] sm:$0xff]  }
   0xb   :  { %v664_v26 = vld [vmem:[%s873_s1 + $0x8] sm:$0xff]   ;;  %v668_v30 = vld [vmem:[%s873_s1] sm:$0xff]  }
   0xc   :  { %587 = vmatpush3.bf16.msra.mxu0 %v648_v10  ;;  %v665_v27 = vld [vmem:[%s873_s1 + $0x88] sm:$0xff]   ;;  %v669_v31 = vld [vmem:[%s873_s1 + $0x80] sm:$0xff]  }
   0xd   :  { %615 = vmatpush3.bf16.msra.mxu1 %v649_v11  ;;  %588 = vmatprep.subr.bf16.mxu0 %v650_v12  ;;  %v670_v32 = vld [vmem:[%s874_s0] ss:$16 sps:$4 sm:$0xff]   ;;  %v672_v33 = vld [vmem:[%s874_s0 + $0x4] ss:$16 sps:$4 sm:$0xff]   ;;  %v673_v34 = vld [vmem:[%s874_s0 + $0x8] ss:$16 sps:$4 sm:$0xff]  }
   0xe   :  { %616 = vmatprep.subr.bf16.mxu1 %v651_v13  ;;  %v675_v35 = vld [vmem:[%s874_s0 + $0xc] ss:$16 sps:$4 sm:$0xff]   ;;  %364 = vmatprep.mubr.bf16.mxu0 %v672_v33  ;;  %v676_v36 = vld [vmem:[%s874_s0 + $0x24] ss:$16 sps:$4 sm:$0xff]   ;;  %v680_v38 = vld [vmem:[%s874_s0 + $0x20] ss:$16 sps:$4 sm:$0xff]  }
   0xf   :  { %413 = vmatprep.mubr.bf16.mxu1 %v675_v35  ;;  %v678_v37 = vld [vmem:[%s874_s0 + $0x2c] ss:$16 sps:$4 sm:$0xff]   ;;  %v681_v39 = vld [vmem:[%s874_s0 + $0x28] ss:$16 sps:$4 sm:$0xff]   ;;  %v531_v42 = vld [vmem:[%s875_s2] ss:$0 sm:$0xff] }
  0x10   :  { %589 = vmatpush3.bf16.msra.mxu0 %v652_v14 }
  0x11   :  { %617 = vmatpush3.bf16.msra.mxu1 %v653_v15  ;;  %590 = vmatprep.subr.bf16.mxu0 %v654_v16 }
  0x12   :  { %618 = vmatprep.subr.bf16.mxu1 %v655_v17 }
  0x14   :  { %591 = vmatpush3.bf16.msra.mxu0 %v656_v18 }
  0x15   :  { %619 = vmatpush3.bf16.msra.mxu1 %v657_v19  ;;  %592 = vmatprep.subr.bf16.mxu0 %v658_v20 }
  0x16   :  { %620 = vmatprep.subr.bf16.mxu1 %v659_v21 }
  0x18   :  { %593 = vmatpush3.bf16.msra.mxu0 %v660_v22 }
  0x19   :  { %621 = vmatpush3.bf16.msra.mxu1 %v661_v23  ;;  %594 = vmatprep.subr.bf16.mxu0 %v662_v24 }
  0x1a   :  { %622 = vmatprep.subr.bf16.mxu1 %v663_v25 }
  0x1c   :  { %595 = vmatpush3.bf16.msra.mxu0 %v664_v26 }
  0x1d   :  { %623 = vmatpush3.bf16.msra.mxu1 %v665_v27  ;;  %596 = vmatprep.subr.bf16.mxu0 %v666_v28 }
  0x1e   :  { %624 = vmatprep.subr.bf16.mxu1 %v667_v29 }
  0x20   :  { %597 = vmatpush3.bf16.msra.mxu0 %v668_v30 }
  0x21   :  { %625 = vmatpush3.bf16.msra.mxu1 %v669_v31 }
  0x23   :  { %365 = vmatmul.mubr.bf16.vlgmr.msra.gmra.mxu0 %v670_v32 }
  0x24   :  { %414 = vmatmul.mubr.bf16.vlgmr.msra.gmra.mxu1 %v673_v34  ;;  %372 = vmatprep.mubr.bf16.mxu0 %v676_v36 }
  0x25   :  { %421 = vmatprep.mubr.bf16.mxu1 %v678_v37 }
  0x2b   :  { %373 = vmatmul.mubr.bf16.gmra.mxu0 %v680_v38 }
  0x2c   :  { %422 = vmatmul.mubr.bf16.gmra.mxu1 %v681_v39 }
  0xe3   :  { %v598_v40 = vpop.f32.mrf.mxu0 }
  0xe4   :  { %v626_v41 = vpop.f32.mrf.mxu1 }
  0xe5   :  { %v599_v43 = vpop.f32.mrf.mxu0 }
  0xe6   :  { %v600_v44 = vadd.f32 %v599_v43, %v598_v40  ;;  %v627_v45 = vpop.f32.mrf.mxu1 }
  0xe7   :  { %v601_v46 = vpop.f32.mrf.mxu0  ;;  %v628_v48 = vadd.f32 %v627_v45, %v626_v41 }
  0xe8   :  { %v367_v47 = vadd.f32 %v600_v44, %v531_v42  ;;  %v629_v49 = vpop.f32.mrf.mxu1 }
  0xe9   :  { %v602_v50 = vpop.f32.mrf.mxu0 }
  0xea   :  { %v603_v51 = vadd.f32 %v602_v50, %v601_v46  ;;  %v630_v52 = vpop.f32.mrf.mxu1  ;;  %v416_v53 = vadd.f32 %v628_v48, %v367_v47  ;;  %v572_v46 = vld [vmem:[%s876_s3] ss:$0 sm:$0xff] }
  0xeb   :  { %v604_v54 = vpop.f32.mrf.mxu0  ;;  %v631_v56 = vadd.f32 %v630_v52, %v629_v49  ;;  %v573_v48 = vld [vmem:[%s877_s4] ss:$0 sm:$0xff] }
  0xec   :  { %v370_v55 = vadd.f32 %v603_v51, %v531_v42  ;;  %v632_v57 = vpop.f32.mrf.mxu1  ;;  %v431_v58 = vsel %vm430_vm0, %v416_v53, 0.0 }
  0xed   :  { %v605_v59 = vpop.f32.mrf.mxu0  ;;  %432 = vadd.xlane.f32.xlu0 %v431_v58 }
  0xee   :  { %v606_v60 = vadd.f32 %v605_v59, %v604_v54  ;;  %v633_v61 = vpop.f32.mrf.mxu1  ;;  %v419_v62 = vadd.f32 %v631_v56, %v370_v55 }
  0xef   :  { %v607_v63 = vpop.f32.mrf.mxu0  ;;  %v634_v1 = vadd.f32 %v633_v61, %v632_v57 }
  0xf0   :  { %v375_v0 = vadd.f32 %v606_v60, %v531_v42  ;;  %v635_v2 = vpop.f32.mrf.mxu1  ;;  %v434_v3 = vsel %vm430_vm0, %v419_v62, 0.0 }
  0xf1   :  { %v608_v4 = vpop.f32.mrf.mxu0  ;;  %435 = vadd.xlane.f32.xlu0 %v434_v3 }
  0xf2   :  { %v609_v5 = vadd.f32 %v608_v4, %v607_v63  ;;  %v636_v6 = vpop.f32.mrf.mxu1  ;;  %v424_v7 = vadd.f32 %v634_v1, %v375_v0 }
  0xf3   :  { %v637_v9 = vadd.f32 %v636_v6, %v635_v2 }
  0xf4   :  { %v378_v8 = vadd.f32 %v609_v5, %v531_v42  ;;  %v437_v10 = vsel %vm430_vm0, %v424_v7, 0.0 }
  0xf5   :  { %438 = vadd.xlane.f32.xlu1 %v437_v10 }
  0xf6   :  { %v427_v11 = vadd.f32 %v637_v9, %v378_v8 }
  0xf8   :  { %v440_v12 = vsel %vm430_vm0, %v427_v11, 0.0 }
  0xf9   :  { %441 = vadd.xlane.f32.xlu1 %v440_v12 }
 0x176   :  { %v433_v13 = vpop.xlane.xlu0 %432 }
 0x177   :  { %v444_v14 = vmul.f32 0.03125, %v433_v13 }
 0x179   :  { %v448_v15 = vsub.f32 %v416_v53, %v444_v14 }
 0x17a   :  { %v436_v16 = vpop.xlane.xlu0 %435 }
 0x17b   :  { %v445_v17 = vmul.f32 0.03125, %v436_v16  ;;  %v452_v18 = vmul.f32 %v448_v15, %v448_v15 }
 0x17d   :  { %v449_v19 = vsub.f32 %v419_v62, %v445_v17  ;;  %v456_v20 = vsel %vm430_vm0, %v452_v18, 0.0 }
 0x17e   :  { %v439_v21 = vpop.xlane.xlu1 %438  ;;  %457 = vadd.xlane.f32.xlu0 %v456_v20 }
 0x17f   :  { %v446_v22 = vmul.f32 0.03125, %v439_v21  ;;  %v453_v23 = vmul.f32 %v449_v19, %v449_v19 }
 0x181   :  { %v450_v24 = vsub.f32 %v424_v7, %v446_v22  ;;  %v459_v25 = vsel %vm430_vm0, %v453_v23, 0.0 }
 0x182   :  { %v442_v26 = vpop.xlane.xlu1 %441  ;;  %460 = vadd.xlane.f32.xlu1 %v459_v25 }
 0x183   :  { %v447_v27 = vmul.f32 0.03125, %v442_v26  ;;  %v454_v28 = vmul.f32 %v450_v24, %v450_v24 }
 0x185   :  { %v451_v29 = vsub.f32 %v427_v11, %v447_v27  ;;  %v462_v30 = vsel %vm430_vm0, %v454_v28, 0.0 }
 0x186   :  { %463 = vadd.xlane.f32.xlu0 %v462_v30 }
 0x187   :  { %v455_v31 = vmul.f32 %v451_v29, %v451_v29 }
 0x189   :  { %v465_v32 = vsel %vm430_vm0, %v455_v31, 0.0 }
 0x18a   :  { %466 = vadd.xlane.f32.xlu1 %v465_v32 }
 0x207   :  { %v458_v33 = vpop.xlane.xlu0 %457 }
 0x208   :  { %v468_v34 = vmul.f32 0.03125, %v458_v33 }
 0x20a   :  { %v472_v35 = vadd.f32 1e-05, %v468_v34 }
 0x20b   :  { %v461_v36 = vpop.xlane.xlu1 %460 }
 0x20c   :  { %682 = vrsqrt.f32 %v472_v35  ;;  %v469_v37 = vmul.f32 0.03125, %v461_v36 }
 0x20e   :  { %v473_v38 = vadd.f32 1e-05, %v469_v37 }
 0x20f   :  { %v464_v39 = vpop.xlane.xlu0 %463 }
 0x210   :  { %684 = vrsqrt.f32 %v473_v38  ;;  %v470_v40 = vmul.f32 0.03125, %v464_v39 }
 0x212   :  { %v474_v41 = vadd.f32 1e-05, %v470_v40 }
 0x213   :  { %v467_v42 = vpop.xlane.xlu1 %466 }
 0x214   :  { %686 = vrsqrt.f32 %v474_v41  ;;  %v471_v43 = vmul.f32 0.03125, %v467_v42 }
 0x216   :  { %v475_v44 = vadd.f32 1e-05, %v471_v43 }
 0x218   :  { %688 = vrsqrt.f32 %v475_v44 }
 0x219   :  { %v683_v45 = vpop.eup %682 }
 0x21a   :  { %v480_v47 = vmul.f32 %v683_v45, %v448_v15 }
 0x21c   :  { %v491_v49 = vmul.f32 %v572_v46, %v480_v47 }
 0x21d   :  { %v685_v50 = vpop.eup %684 }
 0x21e   :  { %v502_v51 = vadd.f32 %v573_v48, %v491_v49  ;;  %v481_v52 = vmul.f32 %v685_v50, %v449_v19 }
 0x220   :  { %v578_v53 = vpack.c.bf16 %v502_v51, %v502_v51  ;;  %v492_v54 = vmul.f32 %v572_v46, %v481_v52 }
 0x221   :  { %v687_v55 = vpop.eup %686 }
 0x222   :  { %523 = vst.msk [vmem:[%s878_s5] sm:$0xf] %vm522_vm1, %v578_v53  ;;  %v503_v56 = vadd.f32 %v573_v48, %v492_v54  ;;  %v482_v57 = vmul.f32 %v687_v55, %v450_v24 }
 0x224   :  { %v579_v58 = vpack.c.bf16 %v503_v56, %v503_v56  ;;  %v493_v59 = vmul.f32 %v572_v46, %v482_v57 }
 0x225   :  { %v689_v60 = vpop.eup %688 }
 0x226   :  { %524 = vst.msk [vmem:[%s878_s5 + $0x4] sm:$0xf] %vm522_vm1, %v579_v58  ;;  %v504_v61 = vadd.f32 %v573_v48, %v493_v59  ;;  %v483_v62 = vmul.f32 %v689_v60, %v451_v29 }
 0x228   :  { %v580_v63 = vpack.c.bf16 %v504_v61, %v504_v61  ;;  %v494_v0 = vmul.f32 %v572_v46, %v483_v62 }
 0x22a   :  { %525 = vst.msk [vmem:[%s878_s5 + $0x8] sm:$0xf] %vm522_vm1, %v580_v63  ;;  %v505_v1 = vadd.f32 %v573_v48, %v494_v0 }
 0x22c   :  { %v581_v2 = vpack.c.bf16 %v505_v1, %v505_v1 }
 0x22e   :  { %526 = vst.msk [vmem:[%s878_s5 + $0xc] sm:$0xf] %vm522_vm1, %v581_v2 }

// kernel: segformer_attention_forward.5
= control target key start
LH: loop header
LB: loop body
LE: loop exit
PB: predicated region body
PF: predicated region fallthrough
CT: control target
= control target key end

     0   :  { %s4155_s24 = smov 0   ;;  %s4157_s25 = smov 0   ;;  %s5467_s0 = inlined_call_operand.vmem [shape: bf16[2,256,32], index: 0, kind: input, shape index: {}]   ;;  %s5468_s1 = inlined_call_operand.vmem [shape: bf16[2,32,16], index: 1, kind: input, shape index: {}]   ;;  %s5469_s2 = inlined_call_operand.vmem [shape: f32[2,1,16], index: 2, kind: input, shape index: {}]   ;;  %s5470_s3 = inlined_call_operand.vmem [shape: bf16[2,2,16,16], index: 3, kind: input, shape index: {}]   ;;  %s5471_s4 = inlined_call_operand.vmem [shape: bf16[2,2,16,16], index: 4, kind: input, shape index: {}]   ;;  %s5472_s5 = inlined_call_operand.vmem [shape: bf16[2,16,32], index: 5, kind: input, shape index: {}]   ;;  %s5473_s6 = inlined_call_operand.vmem [shape: f32[1,32], index: 6, kind: input, shape index: {}]   ;;  %s5474_s7 = inlined_call_operand.vmem [shape: f32[2,256,32], index: 7, kind: output, shape index: {}]  }
   0x1   :  { %s4159_s26 = smov 0  }
   0x2 LB: > { %s29_s27 = sadd.s32 1, %s4109_s25  ;;  %p3186_p0 = scmp.ge.s32.totalorder %s4113_s26, 1  ;;  %s4113_s26 = sphi %s4159_s26, %s17_s26   ;;  %s4109_s25 = sphi %s4157_s25, %s5534_s25   ;;  %s4105_s24 = sphi %s4155_s24, %s5533_s24  }
   0x3   : > { %p31_p1 = scmp.ge.s32.totalorder %s29_s27, 2  ;;  %p278_p2 = scmp.lt.s32.totalorder %s4113_s26, 3 }
   0x5   : > { %s5536_s27 = smov (%p31_p1, %s29_s27), 0  ;;  %p279_p3 = pnand %p3186_p0, %p278_p2 }
   0x7   : > { %282 = sbr.rel (%p279_p3) target bundleno = 1787 (0x6fb), region = 48 }
   0xc   : > { %v3809_v0 = vld [vmem:[%s5468_s1 + $0x8] sm:$0xff]   ;;  %p329_p4 = scmp.lt.s32.totalorder %s4105_s24, 1  ;;  %v3810_v1 = vld [vmem:[%s5468_s1] sm:$0xff]   ;;  %vm494_vm0 = vcmask 261120   ;;  %vm727_vm1 = vcmask 130048  }
   0xd   : > { %3507 = vmatprep.subr.bf16.mxu0 %v3809_v0  ;;  %v4284_v23 = vld [vmem:[%s5469_s2] ss:$0 sm:$0xff] }
   0xe   : > { %s5538_s24 = smov (!%p329_p4, %s4105_s24), 1  ;;  %3508 = vmatpush3.bf16.msra.mxu0 %v3809_v0 }
   0xf   : > { %3509 = vmatprep.subr.bf16.mxu0 %v3810_v1  ;;  %s3365_s9 = sshll.u32 %s5538_s24, 7  ;;  %s3366_s13 = sshll.u32 %s5538_s24, 4 }
  0x10   : > { %s4185_s12 = scalar_lea.vmem %s5467_s0, %s3365_s9  ;;  %s4271_s16 = scalar_lea.vmem %s5470_s3, %s3366_s13 }
  0x11   : > { %v4188_v2 = vld [vmem:[%s4185_s12] sm:$0xff]   ;;  %v4191_v3 = vld [vmem:[%s4185_s12 + $0x8] sm:$0xff]   ;;  %v4196_v4 = vld [vmem:[%s4185_s12 + $0x10] sm:$0xff]   ;;  %s4279_s19 = scalar_lea.vmem %s5471_s4, %s3366_s13  ;;  %s3368_s13 = sshll.u32 %s5538_s24, 8 }
  0x12   : > { %3510 = vmatpush3.bf16.msra.mxu0 %v3810_v1  ;;  %3511 = vmatprep.mubr.msk.bf16.mxu0 %vm494_vm0, %v4188_v2  ;;  %v4203_v5 = vld [vmem:[%s4185_s12 + $0x18] sm:$0xff]   ;;  %v4206_v6 = vld [vmem:[%s4185_s12 + $0x20] sm:$0xff]   ;;  %v4213_v7 = vld [vmem:[%s4185_s12 + $0x28] sm:$0xff]   ;;  %s5353_s18 = scalar_lea.vmem %s5474_s7, %s3368_s13 }
  0x13   : > { %v4216_v8 = vld [vmem:[%s4185_s12 + $0x30] sm:$0xff]   ;;  %v4223_v9 = vld [vmem:[%s4185_s12 + $0x38] sm:$0xff]   ;;  %v4226_v10 = vld [vmem:[%s4185_s12 + $0x40] sm:$0xff]  }
  0x14   : > { %v4233_v11 = vld [vmem:[%s4185_s12 + $0x48] sm:$0xff]   ;;  %v4236_v12 = vld [vmem:[%s4185_s12 + $0x50] sm:$0xff]   ;;  %v4243_v13 = vld [vmem:[%s4185_s12 + $0x58] sm:$0xff]  }
  0x15   : > { %3512 = vmatmul.mubr.msk.bf16.vlgmr.msra.gmra.mxu0 %vm494_vm0, %v4191_v3  ;;  %v4246_v14 = vld [vmem:[%s4185_s12 + $0x60] sm:$0xff]   ;;  %v4253_v15 = vld [vmem:[%s4185_s12 + $0x68] sm:$0xff]   ;;  %v4256_v16 = vld [vmem:[%s4185_s12 + $0x70] sm:$0xff]  }
  0x16   : > { %3515 = vmatprep.mubr.msk.bf16.mxu0 %vm494_vm0, %v4196_v4  ;;  %v4263_v17 = vld [vmem:[%s4185_s12 + $0x78] sm:$0xff]   ;;  %v3827_v18 = vld [vmem:[%s4271_s16] sm:$0xff]  }
  0x17   : > { %3783 = vmatprep.subr.msk.bf16.mxu1 %vm727_vm1, %v3827_v18  ;;  %v777_v19 = vsel %vm727_vm1, %v3827_v18, 0 }
  0x18   : > { %3544 = vmatpush3.bf16.xpose.msra.mxu1 %v777_v19 }
  0x1d   : > { %3516 = vmatmul.mubr.msk.bf16.gmra.mxu0 %vm494_vm0, %v4203_v5 }
  0x1e   : > { %3519 = vmatprep.mubr.msk.bf16.mxu0 %vm494_vm0, %v4206_v6 }
  0x25   : > { %3520 = vmatmul.mubr.msk.bf16.gmra.mxu0 %vm494_vm0, %v4213_v7 }
  0x26   : > { %3523 = vmatprep.mubr.msk.bf16.mxu0 %vm494_vm0, %v4216_v8 }
  0x2d   : > { %3524 = vmatmul.mubr.msk.bf16.gmra.mxu0 %vm494_vm0, %v4223_v9 }
  0x2e   : > { %3527 = vmatprep.mubr.msk.bf16.mxu0 %vm494_vm0, %v4226_v10 }
  0x35   : > { %3528 = vmatmul.mubr.msk.bf16.gmra.mxu0 %vm494_vm0, %v4233_v11 }
  0x36   : > { %3531 = vmatprep.mubr.msk.bf16.mxu0 %vm494_vm0, %v4236_v12 }
  0x3d   : > { %3532 = vmatmul.mubr.msk.bf16.gmra.mxu0 %vm494_vm0, %v4243_v13 }
  0x3e   : > { %3535 = vmatprep.mubr.msk.bf16.mxu0 %vm494_vm0, %v4246_v14 }
  0x45   : > { %3536 = vmatmul.mubr.msk.bf16.gmra.mxu0 %vm494_vm0, %v4253_v15 }
  0x46   : > { %3539 = vmatprep.mubr.msk.bf16.mxu0 %vm494_vm0, %v4256_v16 }
  0x4d   : > { %3540 = vmatmul.mubr.msk.bf16.gmra.mxu0 %vm494_vm0, %v4263_v17 }
  0xd5   : > { %v3513_v20 = vpop.f32.mrf.mxu0 }
  0xd6   : > { %v586_v28 = vadd.f32 %v3513_v20, %v4284_v23 }
  0xd7   : > { %v577_v21 = vpop.f32.mrf.mxu0 }
  0xd8   : > { %v578_v26 = vadd.f32 %v4284_v23, %v577_v21 }
  0xd9   : > { %v3514_v22 = vpop.f32.mrf.mxu0 }
  0xda   : > { %v589_v24 = vadd.f32 %v3514_v22, %v4284_v23 }
  0xdb   : > { %v580_v25 = vpop.f32.mrf.mxu0 }
  0xdc   : > { %v581_v27 = vadd.f32 %v4284_v23, %v580_v25  ;;  %v705_v31 = vpack.c.bf16 %v589_v24, %v586_v28 }
  0xdd   : > { %v3517_v29 = vpop.f32.mrf.mxu0 }
  0xde   : > { %v704_v30 = vpack.c.bf16 %v581_v27, %v578_v26  ;;  %v602_v38 = vadd.f32 %v3517_v29, %v4284_v23 }
  0xdf   : > { %v593_v32 = vpop.f32.mrf.mxu0 }
  0xe0   : > { %3545 = vmatprep.mubr.msk.bf16.mxu1 %vm727_vm1, %v704_v30  ;;  %v594_v36 = vadd.f32 %v4284_v23, %v593_v32 }
  0xe1   : > { %v3518_v33 = vpop.f32.mrf.mxu0  ;;  %3546 = vmatmul.mubr.msk.bf16.vlgmr.msra.gmra.mxu1 %vm727_vm1, %v705_v31 }
  0xe2   : > { %v605_v34 = vadd.f32 %v3518_v33, %v4284_v23 }
  0xe3   : > { %v596_v35 = vpop.f32.mrf.mxu0 }
  0xe4   : > { %v597_v37 = vadd.f32 %v4284_v23, %v596_v35  ;;  %v707_v41 = vpack.c.bf16 %v605_v34, %v602_v38 }
  0xe5   : > { %v3521_v39 = vpop.f32.mrf.mxu0 }
  0xe6   : > { %v706_v40 = vpack.c.bf16 %v597_v37, %v594_v36  ;;  %v618_v48 = vadd.f32 %v3521_v39, %v4284_v23 }
  0xe7   : > { %v609_v42 = vpop.f32.mrf.mxu0 }
  0xe8   : > { %3549 = vmatprep.mubr.msk.bf16.mxu1 %vm727_vm1, %v706_v40  ;;  %v610_v46 = vadd.f32 %v4284_v23, %v609_v42 }
  0xe9   : > { %v3522_v43 = vpop.f32.mrf.mxu0  ;;  %3550 = vmatmul.mubr.msk.bf16.gmra.mxu1 %vm727_vm1, %v707_v41 }
  0xea   : > { %v621_v44 = vadd.f32 %v3522_v43, %v4284_v23 }
  0xeb   : > { %v612_v45 = vpop.f32.mrf.mxu0 }
  0xec   : > { %v613_v47 = vadd.f32 %v4284_v23, %v612_v45  ;;  %v709_v51 = vpack.c.bf16 %v621_v44, %v618_v48 }
  0xed   : > { %v3525_v49 = vpop.f32.mrf.mxu0 }
  0xee   : > { %v708_v50 = vpack.c.bf16 %v613_v47, %v610_v46  ;;  %v634_v58 = vadd.f32 %v3525_v49, %v4284_v23 }
  0xef   : > { %v625_v52 = vpop.f32.mrf.mxu0 }
  0xf0   : > { %3553 = vmatprep.mubr.msk.bf16.mxu1 %vm727_vm1, %v708_v50  ;;  %v626_v56 = vadd.f32 %v4284_v23, %v625_v52 }
  0xf1   : > { %v3526_v53 = vpop.f32.mrf.mxu0  ;;  %3554 = vmatmul.mubr.msk.bf16.gmra.mxu1 %vm727_vm1, %v709_v51 }
  0xf2   : > { %v637_v54 = vadd.f32 %v3526_v53, %v4284_v23 }
  0xf3   : > { %v628_v55 = vpop.f32.mrf.mxu0 }
  0xf4   : > { %v629_v57 = vadd.f32 %v4284_v23, %v628_v55  ;;  %v711_v61 = vpack.c.bf16 %v637_v54, %v634_v58  ;;  %v3828_v54 = vld [vmem:[%s5468_s1 + $0x18] sm:$0xff]  }
  0xf5   : > { %v3529_v59 = vpop.f32.mrf.mxu0  ;;  %3611 = vmatprep.subr.bf16.mxu1 %v3828_v54 }
  0xf6   : > { %v710_v60 = vpack.c.bf16 %v629_v57, %v626_v56  ;;  %v650_v20 = vadd.f32 %v3529_v59, %v4284_v23  ;;  %3612 = vmatpush3.bf16.msra.mxu1 %v3828_v54 }
  0xf7   : > { %v641_v62 = vpop.f32.mrf.mxu0 }
  0xf8   : > { %3557 = vmatprep.mubr.msk.bf16.mxu1 %vm727_vm1, %v710_v60  ;;  %v642_v18 = vadd.f32 %v4284_v23, %v641_v62 }
  0xf9   : > { %v3530_v63 = vpop.f32.mrf.mxu0  ;;  %3558 = vmatmul.mubr.msk.bf16.gmra.mxu1 %vm727_vm1, %v711_v61 }
  0xfa   : > { %v653_v0 = vadd.f32 %v3530_v63, %v4284_v23 }
  0xfb   : > { %v644_v1 = vpop.f32.mrf.mxu0 }
  0xfc   : > { %v645_v19 = vadd.f32 %v4284_v23, %v644_v1  ;;  %v713_v24 = vpack.c.bf16 %v653_v0, %v650_v20 }
  0xfd   : > { %v3533_v21 = vpop.f32.mrf.mxu0 }
  0xfe   : > { %v712_v22 = vpack.c.bf16 %v645_v19, %v642_v18  ;;  %v666_v31 = vadd.f32 %v3533_v21, %v4284_v23 }
  0xff   : > { %v657_v25 = vpop.f32.mrf.mxu0 }
 0x100   : > { %3561 = vmatprep.mubr.msk.bf16.mxu1 %vm727_vm1, %v712_v22  ;;  %v658_v29 = vadd.f32 %v4284_v23, %v657_v25 }
 0x101   : > { %v3534_v26 = vpop.f32.mrf.mxu0  ;;  %3562 = vmatmul.mubr.msk.bf16.gmra.mxu1 %vm727_vm1, %v713_v24 }
 0x102   : > { %v669_v27 = vadd.f32 %v3534_v26, %v4284_v23 }
 0x103   : > { %v660_v28 = vpop.f32.mrf.mxu0 }
 0x104   : > { %v661_v30 = vadd.f32 %v4284_v23, %v660_v28  ;;  %v715_v34 = vpack.c.bf16 %v669_v27, %v666_v31  ;;  %v3829_v31 = vld [vmem:[%s5468_s1 + $0x10] sm:$0xff]  }
 0x105   : > { %v3537_v32 = vpop.f32.mrf.mxu0  ;;  %3613 = vmatprep.subr.bf16.mxu1 %v3829_v31 }
 0x106   : > { %v714_v33 = vpack.c.bf16 %v661_v30, %v658_v29  ;;  %v682_v41 = vadd.f32 %v3537_v32, %v4284_v23  ;;  %3614 = vmatpush3.bf16.msra.mxu1 %v3829_v31 }
 0x107   : > { %v673_v35 = vpop.f32.mrf.mxu0 }
 0x108   : > { %3565 = vmatprep.mubr.msk.bf16.mxu1 %vm727_vm1, %v714_v33  ;;  %v674_v39 = vadd.f32 %v4284_v23, %v673_v35 }
 0x109   : > { %v3538_v36 = vpop.f32.mrf.mxu0  ;;  %3566 = vmatmul.mubr.msk.bf16.gmra.mxu1 %vm727_vm1, %v715_v34 }
 0x10a   : > { %v685_v37 = vadd.f32 %v3538_v36, %v4284_v23 }
 0x10b   : > { %v676_v38 = vpop.f32.mrf.mxu0 }
 0x10c   : > { %v677_v40 = vadd.f32 %v4284_v23, %v676_v38  ;;  %v717_v44 = vpack.c.bf16 %v685_v37, %v682_v41 }
 0x10d   : > { %v3541_v42 = vpop.f32.mrf.mxu0 }
 0x10e   : > { %v716_v43 = vpack.c.bf16 %v677_v40, %v674_v39  ;;  %v698_v51 = vadd.f32 %v3541_v42, %v4284_v23 }
 0x10f   : > { %v689_v45 = vpop.f32.mrf.mxu0 }
 0x110   : > { %3569 = vmatprep.mubr.msk.bf16.mxu1 %vm727_vm1, %v716_v43  ;;  %v690_v49 = vadd.f32 %v4284_v23, %v689_v45 }
 0x111   : > { %v3542_v46 = vpop.f32.mrf.mxu0  ;;  %3570 = vmatmul.mubr.msk.bf16.gmra.mxu1 %vm727_vm1, %v717_v44 }
 0x112   : > { %v701_v47 = vadd.f32 %v3542_v46, %v4284_v23 }
 0x113   : > { %v692_v48 = vpop.f32.mrf.mxu0 }
 0x114   : > { %v693_v50 = vadd.f32 %v4284_v23, %v692_v48  ;;  %v719_v53 = vpack.c.bf16 %v701_v47, %v698_v51 }
 0x116   : > { %v718_v52 = vpack.c.bf16 %v693_v50, %v690_v49 }
 0x118   : > { %3573 = vmatprep.mubr.msk.bf16.mxu1 %vm727_vm1, %v718_v52 }
 0x119   : > { %3574 = vmatmul.mubr.msk.bf16.gmra.mxu1 %vm727_vm1, %v719_v53 }
 0x11a   : > { %3615 = vmatprep.mubr.msk.bf16.mxu1 %vm494_vm0, %v4188_v2 }
 0x121   : > { %3616 = vmatmul.mubr.msk.bf16.vlgmr.msra.gmra.mxu1 %vm494_vm0, %v4191_v3 }
 0x122   : > { %3619 = vmatprep.mubr.msk.bf16.mxu1 %vm494_vm0, %v4196_v4 }
 0x129   : > { %3620 = vmatmul.mubr.msk.bf16.gmra.mxu1 %vm494_vm0, %v4203_v5 }
 0x12a   : > { %3623 = vmatprep.mubr.msk.bf16.mxu1 %vm494_vm0, %v4206_v6 }
 0x131   : > { %3624 = vmatmul.mubr.msk.bf16.gmra.mxu1 %vm494_vm0, %v4213_v7 }
 0x132   : > { %3627 = vmatprep.mubr.msk.bf16.mxu1 %vm494_vm0, %v4216_v8 }
 0x139   : > { %3628 = vmatmul.mubr.msk.bf16.gmra.mxu1 %vm494_vm0, %v4223_v9 }
 0x13a   : > { %3631 = vmatprep.mubr.msk.bf16.mxu1 %vm494_vm0, %v4226_v10 }
 0x141   : > { %3632 = vmatmul.mubr.msk.bf16.gmra.mxu1 %vm494_vm0, %v4233_v11  ;;  %v3830_v11 = vld [vmem:[%s4279_s19] sm:$0xff]  }
 0x142   : > { %3635 = vmatprep.mubr.msk.bf16.mxu1 %vm494_vm0, %v4236_v12  ;;  %3577 = vmatprep.subr.bf16.mxu0 %v3830_v11 }
 0x143   : > { %3578 = vmatpush3.bf16.msra.mxu0 %v3830_v11 }
 0x149   : > { %3636 = vmatmul.mubr.msk.bf16.gmra.mxu1 %vm494_vm0, %v4243_v13 }
 0x14a   : > { %3639 = vmatprep.mubr.msk.bf16.mxu1 %vm494_vm0, %v4246_v14 }
 0x151   : > { %3640 = vmatmul.mubr.msk.bf16.gmra.mxu1 %vm494_vm0, %v4253_v15 }
 0x152   : > { %3643 = vmatprep.mubr.msk.bf16.mxu1 %vm494_vm0, %v4256_v16 }
 0x159   : > { %3644 = vmatmul.mubr.msk.bf16.gmra.mxu1 %vm494_vm0, %v4263_v17 }
 0x1a1   : > { %v4339_v55 = vpop.f32.mrf.mxu1 }
 0x1a2   : > { %v946_v23 = vsel %vm727_vm1, %v4339_v55, -inf }
 0x1a3   : > { %947 = vmax.xlane.f32.xlu1 %v946_v23  ;;  %v4343_v56 = vpop.f32.mrf.mxu1 }
 0x1a4   : > { %v940_v57 = vsel %vm727_vm1, %v4343_v56, -inf }
 0x1a5   : > { %941 = vmax.xlane.f32.xlu0 %v940_v57  ;;  %v4347_v58 = vpop.f32.mrf.mxu1 }
 0x1a6   : > { %v949_v2 = vsel %vm727_vm1, %v4347_v58, -inf }
 0x1a7   : > { %950 = vmax.xlane.f32.xlu1 %v949_v2  ;;  %v4351_v59 = vpop.f32.mrf.mxu1 }
 0x1a8   : > { %v943_v60 = vsel %vm727_vm1, %v4351_v59, -inf }
 0x1a9   : > { %944 = vmax.xlane.f32.xlu0 %v943_v60  ;;  %v4355_v61 = vpop.f32.mrf.mxu1 }
 0x1aa   : > { %v958_v18 = vsel %vm727_vm1, %v4355_v61, -inf }
 0x1ab   : > { %v4357_v62 = vpop.f32.mrf.mxu1 }
 0x1ac   : > { %v952_v63 = vsel %vm727_vm1, %v4357_v62, -inf }
 0x1ad   : > { %953 = vmax.xlane.f32.xlu0 %v952_v63  ;;  %v4361_v0 = vpop.f32.mrf.mxu1 }
 0x1ae   : > { %v961_v22 = vsel %vm727_vm1, %v4361_v0, -inf }
 0x1af   : > { %v4363_v1 = vpop.f32.mrf.mxu1 }
 0x1b0   : > { %v955_v19 = vsel %vm727_vm1, %v4363_v1, -inf }
 0x1b1   : > { %959 = vmax.xlane.f32.xlu0 %v958_v18  ;;  %956 = vmax.xlane.f32.xlu1 %v955_v19  ;;  %v4369_v20 = vpop.f32.mrf.mxu1 }
 0x1b2   : > { %v970_v27 = vsel %vm727_vm1, %v4369_v20, -inf }
 0x1b3   : > { %v4371_v21 = vpop.f32.mrf.mxu1 }
 0x1b4   : > { %v964_v24 = vsel %vm727_vm1, %v4371_v21, -inf }
 0x1b5   : > { %962 = vmax.xlane.f32.xlu1 %v961_v22  ;;  %965 = vmax.xlane.f32.xlu0 %v964_v24  ;;  %v4377_v25 = vpop.f32.mrf.mxu1 }
 0x1b6   : > { %v973_v32 = vsel %vm727_vm1, %v4377_v25, -inf }
 0x1b7   : > { %v4379_v26 = vpop.f32.mrf.mxu1 }
 0x1b8   : > { %v967_v28 = vsel %vm727_vm1, %v4379_v26, -inf }
 0x1b9   : > { %971 = vmax.xlane.f32.xlu0 %v970_v27  ;;  %968 = vmax.xlane.f32.xlu1 %v967_v28  ;;  %v4385_v29 = vpop.f32.mrf.mxu1 }
 0x1ba   : > { %v982_v36 = vsel %vm727_vm1, %v4385_v29, -inf }
 0x1bb   : > { %v4387_v30 = vpop.f32.mrf.mxu1 }
 0x1bc   : > { %v976_v33 = vsel %vm727_vm1, %v4387_v30, -inf }
 0x1bd   : > { %974 = vmax.xlane.f32.xlu1 %v973_v32  ;;  %977 = vmax.xlane.f32.xlu0 %v976_v33  ;;  %v4396_v34 = vpop.f32.mrf.mxu1 }
 0x1be   : > { %v985_v40 = vsel %vm727_vm1, %v4396_v34, -inf }
 0x1bf   : > { %v4398_v35 = vpop.f32.mrf.mxu1 }
 0x1c0   : > { %v979_v37 = vsel %vm727_vm1, %v4398_v35, -inf }
 0x1c1   : > { %983 = vmax.xlane.f32.xlu0 %v982_v36  ;;  %980 = vmax.xlane.f32.xlu1 %v979_v37  ;;  %v4404_v38 = vpop.f32.mrf.mxu1 }
 0x1c2   : > { %v994_v3 = vsel %vm727_vm1, %v4404_v38, -inf }
 0x1c3   : > { %v4408_v39 = vpop.f32.mrf.mxu1 }
 0x1c4   : > { %v988_v41 = vsel %vm727_vm1, %v4408_v39, -inf }
 0x1c5   : > { %986 = vmax.xlane.f32.xlu1 %v985_v40  ;;  %989 = vmax.xlane.f32.xlu0 %v988_v41  ;;  %v4416_v42 = vpop.f32.mrf.mxu1 }
 0x1c6   : > { %v997_v46 = vsel %vm727_vm1, %v4416_v42, -inf }
 0x1c7   : > { %v4418_v43 = vpop.f32.mrf.mxu1 }
 0x1c8   : > { %v991_v44 = vsel %vm727_vm1, %v4418_v43, -inf }
 0x1c9   : > { %995 = vmax.xlane.f32.xlu0 %v994_v3  ;;  %992 = vmax.xlane.f32.xlu1 %v991_v44  ;;  %v4424_v4 = vpop.f32.mrf.mxu1 }
 0x1ca   : > { %v1006_v5 = vsel %vm727_vm1, %v4424_v4, -inf }
 0x1cb   : > { %v4428_v45 = vpop.f32.mrf.mxu1 }
 0x1cc   : > { %v1000_v47 = vsel %vm727_vm1, %v4428_v45, -inf }
 0x1cd   : > { %998 = vmax.xlane.f32.xlu1 %v997_v46  ;;  %1001 = vmax.xlane.f32.xlu0 %v1000_v47  ;;  %v4436_v48 = vpop.f32.mrf.mxu1 }
 0x1ce   : > { %v1009_v52 = vsel %vm727_vm1, %v4436_v48, -inf }
 0x1cf   : > { %v4438_v49 = vpop.f32.mrf.mxu1 }
 0x1d0   : > { %v1003_v50 = vsel %vm727_vm1, %v4438_v49, -inf }
 0x1d1   : > { %1007 = vmax.xlane.f32.xlu0 %v1006_v5  ;;  %1004 = vmax.xlane.f32.xlu1 %v1003_v50  ;;  %v4444_v6 = vpop.f32.mrf.mxu1 }
 0x1d2   : > { %v1018_v7 = vsel %vm727_vm1, %v4444_v6, -inf }
 0x1d3   : > { %v4448_v51 = vpop.f32.mrf.mxu1 }
 0x1d4   : > { %v1012_v53 = vsel %vm727_vm1, %v4448_v51, -inf }
 0x1d5   : > { %1010 = vmax.xlane.f32.xlu1 %v1009_v52  ;;  %1013 = vmax.xlane.f32.xlu0 %v1012_v53  ;;  %v4456_v54 = vpop.f32.mrf.mxu1 }
 0x1d6   : > { %v1021_v60 = vsel %vm727_vm1, %v4456_v54, -inf }
 0x1d7   : > { %v4458_v23 = vpop.f32.mrf.mxu1 }
 0x1d8   : > { %v1015_v57 = vsel %vm727_vm1, %v4458_v23, -inf }
 0x1d9   : > { %1019 = vmax.xlane.f32.xlu0 %v1018_v7  ;;  %1016 = vmax.xlane.f32.xlu1 %v1015_v57  ;;  %v4464_v8 = vpop.f32.mrf.mxu1 }
 0x1da   : > { %v1030_v9 = vsel %vm727_vm1, %v4464_v8, -inf }
 0x1db   : > { %v4468_v2 = vpop.f32.mrf.mxu1 }
 0x1dc   : > { %v1024_v63 = vsel %vm727_vm1, %v4468_v2, -inf }
 0x1dd   : > { %1022 = vmax.xlane.f32.xlu1 %v1021_v60  ;;  %1025 = vmax.xlane.f32.xlu0 %v1024_v63  ;;  %v4476_v18 = vpop.f32.mrf.mxu1 }
 0x1de   : > { %v1033_v10 = vsel %vm727_vm1, %v4476_v18, -inf }
 0x1df   : > { %v4478_v19 = vpop.f32.mrf.mxu1 }
 0x1e0   : > { %v1027_v22 = vsel %vm727_vm1, %v4478_v19, -inf }
 0x1e1   : > { %1031 = vmax.xlane.f32.xlu0 %v1030_v9  ;;  %1028 = vmax.xlane.f32.xlu1 %v1027_v22 }
 0x1e5   : > { %1034 = vmax.xlane.f32.xlu1 %v1033_v10 }
 0x22c   : > { %v948_v12 = vpop.xlane.xlu1 %947 }
 0x22d   : > { %v1038_v24 = vsub.f32 %v4339_v55, %v948_v12 }
 0x22e   : > { %v942_v27 = vpop.xlane.xlu0 %941 }
 0x22f   : > { %v1036_v13 = vsub.f32 %v4343_v56, %v942_v27  ;;  %v1072_v14 = vmul.f32 1.442695, %v1038_v24 }
 0x230   : > { %v951_v28 = vpop.xlane.xlu1 %950 }
 0x231   : > { %v1068_v31 = vmul.f32 1.442695, %v1036_v13  ;;  %v1039_v15 = vsub.f32 %v4347_v58, %v951_v28 }
 0x232   : > { %v945_v32 = vpop.xlane.xlu0 %944 }
 0x233   : > { %3835 = vpow2.f32 %v1068_v31  ;;  %v1037_v16 = vsub.f32 %v4351_v59, %v945_v32  ;;  %v1074_v17 = vmul.f32 1.442695, %v1039_v15 }
 0x234   : > { %3837 = vpow2.f32 %v1072_v14 }
 0x235   : > { %v1070_v33 = vmul.f32 1.442695, %v1037_v16 }
 0x236   : > { %v954_v36 = vpop.xlane.xlu0 %953 }
 0x237   : > { %3839 = vpow2.f32 %v1070_v33  ;;  %v1040_v37 = vsub.f32 %v4357_v62, %v954_v36 }
 0x238   : > { %3841 = vpow2.f32 %v1074_v17 }
 0x239   : > { %v1076_v55 = vmul.f32 1.442695, %v1040_v37 }
 0x23a   : > { %v960_v40 = vpop.xlane.xlu0 %959  ;;  %v957_v56 = vpop.xlane.xlu1 %956 }
 0x23b   : > { %3843 = vpow2.f32 %v1076_v55  ;;  %v1042_v41 = vsub.f32 %v4355_v61, %v960_v40  ;;  %v1041_v58 = vsub.f32 %v4363_v1, %v957_v56 }
 0x23d   : > { %v1080_v3 = vmul.f32 1.442695, %v1042_v41  ;;  %v1078_v44 = vmul.f32 1.442695, %v1041_v58 }
 0x23e   : > { %v963_v46 = vpop.xlane.xlu1 %962  ;;  %v966_v59 = vpop.xlane.xlu0 %965 }
 0x23f   : > { %3845 = vpow2.f32 %v1080_v3  ;;  %v1043_v47 = vsub.f32 %v4361_v0, %v963_v46  ;;  %v1044_v5 = vsub.f32 %v4371_v21, %v966_v59 }
 0x240   : > { %v4510_v50 = vpop.eup %3835  ;;  %3847 = vpow2.f32 %v1078_v44 }
 0x241   : > { %v1082_v62 = vmul.f32 1.442695, %v1043_v47  ;;  %v1084_v52 = vmul.f32 1.442695, %v1044_v5  ;;  %v1132_v53 = vsel %vm727_vm1, %v4510_v50, 0.0  ;;  %v4514_v61 = vpop.eup %3837 }
 0x242   : > { %v972_v1 = vpop.xlane.xlu0 %971  ;;  %v969_v7 = vpop.xlane.xlu1 %968  ;;  %1133 = vadd.xlane.f32.xlu0 %v1132_v53  ;;  %v1138_v9 = vsel %vm727_vm1, %v4514_v61, 0.0 }
 0x243   : > { %3849 = vpow2.f32 %v1082_v62  ;;  %v1046_v57 = vsub.f32 %v4369_v20, %v972_v1  ;;  %v1045_v0 = vsub.f32 %v4379_v26, %v969_v7 }
 0x244   : > { %v4518_v60 = vpop.eup %3839  ;;  %3851 = vpow2.f32 %v1084_v52 }
 0x245   : > { %v1088_v21 = vmul.f32 1.442695, %v1046_v57  ;;  %v1086_v63 = vmul.f32 1.442695, %v1045_v0  ;;  %v1135_v22 = vsel %vm727_vm1, %v4518_v60, 0.0  ;;  %v4524_v10 = vpop.eup %3841 }
 0x246   : > { %v975_v11 = vpop.xlane.xlu1 %974  ;;  %v978_v12 = vpop.xlane.xlu0 %977  ;;  %1139 = vadd.xlane.f32.xlu0 %v1138_v9  ;;  %1136 = vadd.xlane.f32.xlu1 %v1135_v22  ;;  %v1141_v14 = vsel %vm727_vm1, %v4524_v10, 0.0 }
 0x247   : > { %3853 = vpow2.f32 %v1088_v21  ;;  %v1047_v20 = vsub.f32 %v4377_v25, %v975_v11  ;;  %v1048_v26 = vsub.f32 %v4387_v30, %v978_v12 }
 0x248   : > { %v4528_v24 = vpop.eup %3843  ;;  %3855 = vpow2.f32 %v1086_v63 }
 0x249   : > { %v1090_v27 = vmul.f32 1.442695, %v1047_v20  ;;  %v1092_v13 = vmul.f32 1.442695, %v1048_v26  ;;  %v1144_v28 = vsel %vm727_vm1, %v4528_v24, 0.0 }
 0x24a   : > { %v984_v31 = vpop.xlane.xlu0 %983  ;;  %v981_v15 = vpop.xlane.xlu1 %980  ;;  %1145 = vadd.xlane.f32.xlu0 %v1144_v28  ;;  %1142 = vadd.xlane.f32.xlu1 %v1141_v14 }
 0x24b   : > { %3857 = vpow2.f32 %v1090_v27  ;;  %v1050_v25 = vsub.f32 %v4385_v29, %v984_v31  ;;  %v1049_v30 = vsub.f32 %v4398_v35, %v981_v15 }
 0x24c   : > { %v4536_v32 = vpop.eup %3845  ;;  %3859 = vpow2.f32 %v1092_v13 }
 0x24d   : > { %v4538_v16 = vpop.eup %3847  ;;  %v1096_v17 = vmul.f32 1.442695, %v1050_v25  ;;  %v1094_v33 = vmul.f32 1.442695, %v1049_v30  ;;  %v1150_v36 = vsel %vm727_vm1, %v4536_v32, 0.0 }
 0x24e   : > { %v987_v37 = vpop.xlane.xlu1 %986  ;;  %v990_v55 = vpop.xlane.xlu0 %989  ;;  %1151 = vadd.xlane.f32.xlu0 %v1150_v36  ;;  %v1147_v40 = vsel %vm727_vm1, %v4538_v16, 0.0 }
 0x24f   : > { %3861 = vpow2.f32 %v1096_v17  ;;  %v1051_v29 = vsub.f32 %v4396_v34, %v987_v37  ;;  %v1052_v35 = vsub.f32 %v4408_v39, %v990_v55  ;;  %1148 = vadd.xlane.f32.xlu1 %v1147_v40 }
 0x250   : > { %v4546_v56 = vpop.eup %3849  ;;  %3863 = vpow2.f32 %v1094_v33 }
 0x251   : > { %v4548_v41 = vpop.eup %3851  ;;  %v1098_v58 = vmul.f32 1.442695, %v1051_v29  ;;  %v1100_v3 = vmul.f32 1.442695, %v1052_v35  ;;  %v1153_v44 = vsel %vm727_vm1, %v4546_v56, 0.0 }
 0x252   : > { %v996_v46 = vpop.xlane.xlu0 %995  ;;  %v993_v59 = vpop.xlane.xlu1 %992  ;;  %v1156_v47 = vsel %vm727_vm1, %v4548_v41, 0.0 }
 0x253   : > { %3865 = vpow2.f32 %v1098_v58  ;;  %v1054_v34 = vsub.f32 %v4404_v38, %v996_v46  ;;  %v1053_v39 = vsub.f32 %v4418_v43, %v993_v59  ;;  %1157 = vadd.xlane.f32.xlu0 %v1156_v47  ;;  %1154 = vadd.xlane.f32.xlu1 %v1153_v44 }
 0x254   : > { %v4556_v5 = vpop.eup %3853  ;;  %3867 = vpow2.f32 %v1100_v3 }
 0x255   : > { %v4558_v62 = vpop.eup %3855  ;;  %v1104_v52 = vmul.f32 1.442695, %v1054_v34  ;;  %v1102_v53 = vmul.f32 1.442695, %v1053_v39  ;;  %v1162_v1 = vsel %vm727_vm1, %v4556_v5, 0.0 }
 0x256   : > { %v999_v7 = vpop.xlane.xlu1 %998  ;;  %v1002_v57 = vpop.xlane.xlu0 %1001  ;;  %v1159_v0 = vsel %vm727_vm1, %v4558_v62, 0.0 }
 0x257   : > { %3869 = vpow2.f32 %v1104_v52  ;;  %v1055_v38 = vsub.f32 %v4416_v42, %v999_v7  ;;  %v1056_v43 = vsub.f32 %v4428_v45, %v1002_v57  ;;  %1163 = vadd.xlane.f32.xlu0 %v1162_v1  ;;  %1160 = vadd.xlane.f32.xlu1 %v1159_v0 }
 0x258   : > { %v4566_v21 = vpop.eup %3857  ;;  %3871 = vpow2.f32 %v1102_v53 }
 0x259   : > { %v4568_v63 = vpop.eup %3859  ;;  %v1106_v9 = vmul.f32 1.442695, %v1055_v38  ;;  %v1108_v22 = vmul.f32 1.442695, %v1056_v43  ;;  %v1165_v11 = vsel %vm727_vm1, %v4566_v21, 0.0 }
 0x25a   : > { %v1008_v12 = vpop.xlane.xlu0 %1007  ;;  %v1005_v20 = vpop.xlane.xlu1 %1004  ;;  %v1168_v26 = vsel %vm727_vm1, %v4568_v63, 0.0 }
 0x25b   : > { %3873 = vpow2.f32 %v1106_v9  ;;  %v1058_v42 = vsub.f32 %v4424_v4, %v1008_v12  ;;  %v1057_v45 = vsub.f32 %v4438_v49, %v1005_v20  ;;  %1169 = vadd.xlane.f32.xlu0 %v1168_v26  ;;  %1166 = vadd.xlane.f32.xlu1 %v1165_v11 }
 0x25c   : > { %v4576_v27 = vpop.eup %3861  ;;  %3875 = vpow2.f32 %v1108_v22 }
 0x25d   : > { %v4578_v13 = vpop.eup %3863  ;;  %v1112_v28 = vmul.f32 1.442695, %v1058_v42  ;;  %v1110_v14 = vmul.f32 1.442695, %v1057_v45  ;;  %v1174_v31 = vsel %vm727_vm1, %v4576_v27, 0.0 }
 0x25e   : > { %v1011_v15 = vpop.xlane.xlu1 %1010  ;;  %v1014_v25 = vpop.xlane.xlu0 %1013  ;;  %v1171_v30 = vsel %vm727_vm1, %v4578_v13, 0.0 }
 0x25f   : > { %3877 = vpow2.f32 %v1112_v28  ;;  %v1059_v4 = vsub.f32 %v4436_v48, %v1011_v15  ;;  %v1060_v49 = vsub.f32 %v4448_v51, %v1014_v25  ;;  %1175 = vadd.xlane.f32.xlu0 %v1174_v31  ;;  %1172 = vadd.xlane.f32.xlu1 %v1171_v30 }
 0x260   : > { %v4586_v17 = vpop.eup %3865  ;;  %3879 = vpow2.f32 %v1110_v14 }
 0x261   : > { %v4588_v33 = vpop.eup %3867  ;;  %v1114_v36 = vmul.f32 1.442695, %v1059_v4  ;;  %v1116_v37 = vmul.f32 1.442695, %v1060_v49  ;;  %v1177_v55 = vsel %vm727_vm1, %v4586_v17, 0.0 }
 0x262   : > { %v1020_v40 = vpop.xlane.xlu0 %1019  ;;  %v1017_v29 = vpop.xlane.xlu1 %1016  ;;  %v1180_v48 = vsel %vm727_vm1, %v4588_v33, 0.0 }
 0x263   : > { %3881 = vpow2.f32 %v1114_v36  ;;  %v1062_v51 = vsub.f32 %v4444_v6, %v1020_v40  ;;  %v1061_v35 = vsub.f32 %v4458_v23, %v1017_v29  ;;  %1181 = vadd.xlane.f32.xlu0 %v1180_v48  ;;  %1178 = vadd.xlane.f32.xlu1 %v1177_v55  ;;  %v4605_v6 = vld [vmem:[%s4271_s16 + $0x8] sm:$0xff]  }
 0x264   : > { %v4596_v58 = vpop.eup %3869  ;;  %3883 = vpow2.f32 %v1116_v37  ;;  %3784 = vmatprep.subr.msk.bf16.mxu0 %vm727_vm1, %v4605_v6 }
 0x265   : > { %v4598_v3 = vpop.eup %3871  ;;  %v1120_v44 = vmul.f32 1.442695, %v1062_v51  ;;  %v1118_v46 = vmul.f32 1.442695, %v1061_v35  ;;  %v1186_v59 = vsel %vm727_vm1, %v4596_v58, 0.0 }
 0x266   : > { %v1023_v47 = vpop.xlane.xlu1 %1022  ;;  %v1026_v34 = vpop.xlane.xlu0 %1025  ;;  %v1183_v39 = vsel %vm727_vm1, %v4598_v3, 0.0 }
 0x267   : > { %3885 = vpow2.f32 %v1120_v44  ;;  %v1063_v23 = vsub.f32 %v4456_v54, %v1023_v47  ;;  %1187 = vadd.xlane.f32.xlu0 %v1186_v59  ;;  %v1064_v52 = vsub.f32 %v4468_v2, %v1026_v34  ;;  %1184 = vadd.xlane.f32.xlu1 %v1183_v39  ;;  %v4666_v34 = vpop.f32.mrf.mxu1 }
 0x268   : > { %v4609_v53 = vpop.eup %3873  ;;  %3887 = vpow2.f32 %v1118_v46 }
 0x269   : > { %v4613_v1 = vpop.eup %3875  ;;  %v1122_v7 = vmul.f32 1.442695, %v1063_v23  ;;  %v1124_v57 = vmul.f32 1.442695, %v1064_v52  ;;  %v1189_v0 = vsel %vm727_vm1, %v4609_v53, 0.0  ;;  %v4668_v52 = vpop.f32.mrf.mxu1 }
 0x26a   : > { %v1192_v54 = vsel %vm727_vm1, %v4613_v1, 0.0  ;;  %v1032_v38 = vpop.xlane.xlu0 %1031  ;;  %v1029_v43 = vpop.xlane.xlu1 %1028 }
 0x26b   : > { %3889 = vpow2.f32 %v1122_v7  ;;  %1193 = vadd.xlane.f32.xlu0 %v1192_v54  ;;  %v1066_v2 = vsub.f32 %v4464_v8, %v1032_v38  ;;  %1190 = vadd.xlane.f32.xlu1 %v1189_v0  ;;  %v1065_v9 = vsub.f32 %v4478_v19, %v1029_v43  ;;  %v4670_v0 = vpop.f32.mrf.mxu1 }
 0x26c   : > { %v4621_v22 = vpop.eup %3877  ;;  %3891 = vpow2.f32 %v1124_v57 }
 0x26d   : > { %v4623_v11 = vpop.eup %3879  ;;  %v1128_v12 = vmul.f32 1.442695, %v1066_v2  ;;  %v1126_v20 = vmul.f32 1.442695, %v1065_v9  ;;  %v1198_v26 = vsel %vm727_vm1, %v4621_v22, 0.0  ;;  %v4672_v9 = vpop.f32.mrf.mxu1 }
 0x26e   : > { %v1195_v42 = vsel %vm727_vm1, %v4623_v11, 0.0  ;;  %v1035_v45 = vpop.xlane.xlu1 %1034 }
 0x26f   : > { %3893 = vpow2.f32 %v1128_v12  ;;  %1199 = vadd.xlane.f32.xlu0 %v1198_v26  ;;  %1196 = vadd.xlane.f32.xlu1 %v1195_v42  ;;  %v1067_v8 = vsub.f32 %v4476_v18, %v1035_v45 }
 0x270   : > { %v4630_v19 = vpop.eup %3881  ;;  %3895 = vpow2.f32 %v1126_v20 }
 0x271   : > { %v4632_v28 = vpop.eup %3883  ;;  %v1130_v14 = vmul.f32 1.442695, %v1067_v8  ;;  %v1201_v31 = vsel %vm727_vm1, %v4630_v19, 0.0 }
 0x272   : > { %v1204_v15 = vsel %vm727_vm1, %v4632_v28, 0.0 }
 0x273   : > { %3897 = vpow2.f32 %v1130_v14  ;;  %1205 = vadd.xlane.f32.xlu0 %v1204_v15  ;;  %1202 = vadd.xlane.f32.xlu1 %v1201_v31  ;;  %v4676_v31 = vpop.f32.mrf.mxu1 }
 0x274   : > { %v4638_v25 = vpop.eup %3885 }
 0x275   : > { %v4640_v30 = vpop.eup %3887  ;;  %v1210_v18 = vsel %vm727_vm1, %v4638_v25, 0.0 }
 0x276   : > { %v1207_v4 = vsel %vm727_vm1, %v4640_v30, 0.0 }
 0x277   : > { %1211 = vadd.xlane.f32.xlu0 %v1210_v18  ;;  %1208 = vadd.xlane.f32.xlu1 %v1207_v4 }
 0x278   : > { %v4646_v49 = vpop.eup %3889 }
 0x279   : > { %v4648_v36 = vpop.eup %3891  ;;  %v1213_v37 = vsel %vm727_vm1, %v4646_v49, 0.0 }
 0x27a   : > { %v1216_v55 = vsel %vm727_vm1, %v4648_v36, 0.0 }
 0x27b   : > { %1217 = vadd.xlane.f32.xlu0 %v1216_v55  ;;  %1214 = vadd.xlane.f32.xlu1 %v1213_v37  ;;  %v1802_v55 = vsel %vm727_vm1, %v4605_v6, 0 }
 0x27c   : > { %v4654_v40 = vpop.eup %3893 }
 0x27d   : > { %v4656_v29 = vpop.eup %3895  ;;  %v1222_v48 = vsel %vm727_vm1, %v4654_v40, 0.0 }
 0x27e   : > { %v1219_v51 = vsel %vm727_vm1, %v4656_v29, 0.0 }
 0x27f   : > { %1223 = vadd.xlane.f32.xlu0 %v1222_v48  ;;  %1220 = vadd.xlane.f32.xlu1 %v1219_v51  ;;  %v4683_v51 = vpop.f32.mrf.mxu1 }
 0x280   : > { %v4662_v35 = vpop.eup %3897 }
 0x281   : > { %v1225_v44 = vsel %vm727_vm1, %v4662_v35, 0.0 }
 0x283   : > { %1226 = vadd.xlane.f32.xlu1 %v1225_v44 }
 0x2cb   : > { %v1134_v46 = vpop.xlane.xlu0 %1133 }
 0x2cc   : > { %3899 = vrcp.f32 %v1134_v46 }
 0x2cf   : > { %v1140_v59 = vpop.xlane.xlu0 %1139  ;;  %v1137_v47 = vpop.xlane.xlu1 %1136 }
 0x2d0   : > { %3901 = vrcp.f32 %v1137_v47 }
 0x2d1   : > { %3903 = vrcp.f32 %v1140_v59 }
 0x2d3   : > { %v1146_v39 = vpop.xlane.xlu0 %1145  ;;  %v1143_v23 = vpop.xlane.xlu1 %1142 }
 0x2d4   : > { %3905 = vrcp.f32 %v1143_v23 }
 0x2d5   : > { %3907 = vrcp.f32 %v1146_v39  ;;  %v4688_v39 = vpop.f32.mrf.mxu1 }
 0x2d7   : > { %v1152_v7 = vpop.xlane.xlu0 %1151 }
 0x2d8   : > { %v1149_v57 = vpop.xlane.xlu1 %1148 }
 0x2d9   : > { %3909 = vrcp.f32 %v1149_v57  ;;  %v3900_v54 = vpop.eup %3899 }
 0x2da   : > { %3911 = vrcp.f32 %v1152_v7  ;;  %v1260_v12 = vmul.f32 %v3900_v54, %v4510_v50 }
 0x2dc   : > { %v1158_v38 = vpop.xlane.xlu0 %1157  ;;  %v1155_v43 = vpop.xlane.xlu1 %1154 }
 0x2dd   : > { %v3902_v2 = vpop.eup %3901  ;;  %3913 = vrcp.f32 %v1155_v43 }
 0x2de   : > { %v1261_v20 = vmul.f32 %v3902_v2, %v4518_v60  ;;  %v3904_v26 = vpop.eup %3903  ;;  %3915 = vrcp.f32 %v1158_v38  ;;  %v4693_v38 = vpop.f32.mrf.mxu1 }
 0x2df   : > { %v1262_v15 = vmul.f32 %v3904_v26, %v4514_v61 }
 0x2e0   : > { %v1164_v42 = vpop.xlane.xlu0 %1163  ;;  %v1161_v45 = vpop.xlane.xlu1 %1160  ;;  %v1292_v8 = vpack.c.bf16 %v1261_v20, %v1260_v12 }
 0x2e1   : > { %v3906_v14 = vpop.eup %3905  ;;  %3917 = vrcp.f32 %v1161_v45  ;;  %v4698_v45 = vpop.f32.mrf.mxu1 }
 0x2e2   : > { %v1263_v18 = vmul.f32 %v3906_v14, %v4524_v10  ;;  %3579 = vmatprep.mubr.msk.bf16.mxu0 %vm727_vm1, %v1292_v8  ;;  %v3908_v4 = vpop.eup %3907  ;;  %3919 = vrcp.f32 %v1164_v42 }
 0x2e3   : > { %v1264_v61 = vmul.f32 %v3908_v4, %v4528_v24 }
 0x2e4   : > { %v1170_v50 = vpop.xlane.xlu0 %1169  ;;  %v1167_v37 = vpop.xlane.xlu1 %1166  ;;  %v1293_v60 = vpack.c.bf16 %v1263_v18, %v1262_v15 }
 0x2e5   : > { %3921 = vrcp.f32 %v1167_v37 }
 0x2e6   : > { %v3910_v48 = vpop.eup %3909  ;;  %3580 = vmatmul.mubr.msk.bf16.vlgmr.msra.gmra.mxu0 %vm727_vm1, %v1293_v60  ;;  %3923 = vrcp.f32 %v1170_v50  ;;  %v4703_v50 = vpop.f32.mrf.mxu1 }
 0x2e7   : > { %v1265_v10 = vmul.f32 %v3910_v48, %v4538_v16  ;;  %3648 = vmatpush3.bf16.xpose.msra.mxu0 %v1802_v55  ;;  %v3912_v59 = vpop.eup %3911 }
 0x2e8   : > { %v1176_v44 = vpop.xlane.xlu0 %1175  ;;  %v1173_v46 = vpop.xlane.xlu1 %1172  ;;  %v1266_v57 = vmul.f32 %v3912_v59, %v4536_v32 }
 0x2e9   : > { %v1294_v47 = vpack.c.bf16 %v1265_v10, %v1264_v61  ;;  %3925 = vrcp.f32 %v1173_v46  ;;  %v4708_v10 = vpop.f32.mrf.mxu1 }
 0x2ea   : > { %v3914_v6 = vpop.eup %3913  ;;  %3927 = vrcp.f32 %v1176_v44 }
 0x2eb   : > { %3583 = vmatprep.mubr.msk.bf16.mxu0 %vm727_vm1, %v1294_v47  ;;  %v1267_v24 = vmul.f32 %v3914_v6, %v4546_v56  ;;  %v3916_v16 = vpop.eup %3915 }
 0x2ec   : > { %v1182_v23 = vpop.xlane.xlu0 %1181  ;;  %v1179_v7 = vpop.xlane.xlu1 %1178  ;;  %v1268_v20 = vmul.f32 %v3916_v16, %v4548_v41 }
 0x2ed   : > { %3929 = vrcp.f32 %v1179_v7  ;;  %v1295_v54 = vpack.c.bf16 %v1267_v24, %v1266_v57 }
 0x2ee   : > { %v3918_v43 = vpop.eup %3917  ;;  %3931 = vrcp.f32 %v1182_v23  ;;  %v4713_v23 = vpop.f32.mrf.mxu1 }
 0x2ef   : > { %3584 = vmatmul.mubr.msk.bf16.gmra.mxu0 %vm727_vm1, %v1295_v54  ;;  %v1269_v26 = vmul.f32 %v3918_v43, %v4558_v62  ;;  %v3920_v42 = vpop.eup %3919 }
 0x2f0   : > { %v1188_v2 = vpop.xlane.xlu0 %1187  ;;  %v1185_v12 = vpop.xlane.xlu1 %1184  ;;  %v1270_v15 = vmul.f32 %v3920_v42, %v4556_v5 }
 0x2f1   : > { %3933 = vrcp.f32 %v1185_v12  ;;  %v1296_v32 = vpack.c.bf16 %v1269_v26, %v1268_v20  ;;  %v4718_v43 = vpop.f32.mrf.mxu1 }
 0x2f2   : > { %v3922_v56 = vpop.eup %3921  ;;  %3935 = vrcp.f32 %v1188_v2 }
 0x2f3   : > { %3587 = vmatprep.mubr.msk.bf16.mxu0 %vm727_vm1, %v1296_v32  ;;  %v1271_v18 = vmul.f32 %v3922_v56, %v4566_v21  ;;  %v3924_v4 = vpop.eup %3923  ;;  %v4723_v32 = vpop.f32.mrf.mxu1 }
 0x2f4   : > { %v1194_v8 = vpop.xlane.xlu0 %1193  ;;  %v1191_v14 = vpop.xlane.xlu1 %1190  ;;  %v1272_v55 = vmul.f32 %v3924_v4, %v4568_v63 }
 0x2f5   : > { %3937 = vrcp.f32 %v1191_v14  ;;  %v1297_v41 = vpack.c.bf16 %v1271_v18, %v1270_v15  ;;  %v4728_v4 = vpop.f32.mrf.mxu1 }
 0x2f6   : > { %v3926_v62 = vpop.eup %3925  ;;  %3939 = vrcp.f32 %v1194_v8 }
 0x2f7   : > { %3588 = vmatmul.mubr.msk.bf16.gmra.mxu0 %vm727_vm1, %v1297_v41  ;;  %v1273_v48 = vmul.f32 %v3926_v62, %v4578_v13  ;;  %v3928_v61 = vpop.eup %3927 }
 0x2f8   : > { %v1200_v37 = vpop.xlane.xlu0 %1199  ;;  %v1197_v60 = vpop.xlane.xlu1 %1196  ;;  %v1274_v59 = vmul.f32 %v3928_v61, %v4576_v27 }
 0x2f9   : > { %3941 = vrcp.f32 %v1197_v60  ;;  %v1298_v5 = vpack.c.bf16 %v1273_v48, %v1272_v55 }
 0x2fa   : > { %v3930_v21 = vpop.eup %3929  ;;  %3943 = vrcp.f32 %v1200_v37 }
 0x2fb   : > { %3591 = vmatprep.mubr.msk.bf16.mxu0 %vm727_vm1, %v1298_v5  ;;  %v1275_v47 = vmul.f32 %v3930_v21, %v4586_v17  ;;  %v3932_v6 = vpop.eup %3931 }
 0x2fc   : > { %v1206_v44 = vpop.xlane.xlu0 %1205  ;;  %v1203_v46 = vpop.xlane.xlu1 %1202  ;;  %v1276_v24 = vmul.f32 %v3932_v6, %v4588_v33 }
 0x2fd   : > { %3945 = vrcp.f32 %v1203_v46  ;;  %v1299_v63 = vpack.c.bf16 %v1275_v47, %v1274_v59  ;;  %v4744_v47 = vld [vmem:[%s5469_s2 + $0x1] ss:$0 sm:$0xff] }
 0x2fe   : > { %v3934_v13 = vpop.eup %3933  ;;  %3947 = vrcp.f32 %v1206_v44 }
 0x2ff   : > { %3592 = vmatmul.mubr.msk.bf16.gmra.mxu0 %vm727_vm1, %v1299_v63  ;;  %v1277_v16 = vmul.f32 %v3934_v13, %v4598_v3  ;;  %v3936_v54 = vpop.eup %3935 }
 0x300   : > { %v1212_v7 = vpop.xlane.xlu0 %1211  ;;  %v1209_v57 = vpop.xlane.xlu1 %1208  ;;  %v1278_v20 = vmul.f32 %v3936_v54, %v4596_v58 }
 0x301   : > { %3949 = vrcp.f32 %v1209_v57  ;;  %v1300_v27 = vpack.c.bf16 %v1277_v16, %v1276_v24 }
 0x302   : > { %v3938_v17 = vpop.eup %3937  ;;  %3951 = vrcp.f32 %v1212_v7 }
 0x303   : > { %3595 = vmatprep.mubr.msk.bf16.mxu0 %vm727_vm1, %v1300_v27  ;;  %v1279_v26 = vmul.f32 %v3938_v17, %v4609_v53  ;;  %v3940_v42 = vpop.eup %3939 }
 0x304   : > { %v1218_v2 = vpop.xlane.xlu0 %1217  ;;  %v1215_v12 = vpop.xlane.xlu1 %1214  ;;  %v1280_v14 = vmul.f32 %v3940_v42, %v4613_v1 }
 0x305   : > { %3953 = vrcp.f32 %v1215_v12  ;;  %v1301_v33 = vpack.c.bf16 %v1279_v26, %v1278_v20  ;;  %v1653_v1 = vpop.f32.mrf.mxu1 }
 0x306   : > { %v3942_v3 = vpop.eup %3941  ;;  %3955 = vrcp.f32 %v1218_v2 }
 0x307   : > { %3596 = vmatmul.mubr.msk.bf16.gmra.mxu0 %vm727_vm1, %v1301_v33  ;;  %v1281_v15 = vmul.f32 %v3942_v3, %v4623_v11  ;;  %v3944_v18 = vpop.eup %3943  ;;  %v4736_v44 = vpop.f32.mrf.mxu1 }
 0x308   : > { %v1224_v56 = vpop.xlane.xlu0 %1223  ;;  %v1221_v8 = vpop.xlane.xlu1 %1220  ;;  %v1282_v62 = vmul.f32 %v3944_v18, %v4621_v22 }
 0x309   : > { %3957 = vrcp.f32 %v1221_v8  ;;  %v1302_v58 = vpack.c.bf16 %v1281_v15, %v1280_v14  ;;  %v1666_v6 = vpop.f32.mrf.mxu1  ;;  %v1654_v8 = vadd.f32 %v4744_v47, %v1653_v1  ;;  %v1675_v1 = vadd.f32 %v4736_v44, %v4744_v47 }
 0x30a   : > { %v3946_v53 = vpop.eup %3945  ;;  %3959 = vrcp.f32 %v1224_v56 }
 0x30b   : > { %3599 = vmatprep.mubr.msk.bf16.mxu0 %vm727_vm1, %v1302_v58  ;;  %v1283_v37 = vmul.f32 %v3946_v53, %v4630_v19  ;;  %v3948_v60 = vpop.eup %3947  ;;  %v3634_v16 = vpop.f32.mrf.mxu1  ;;  %v1667_v58 = vadd.f32 %v4744_v47, %v1666_v6  ;;  %v1659_v53 = vadd.f32 %v4718_v43, %v4744_v47 }
 0x30c   : > { %v1227_v41 = vpop.xlane.xlu1 %1226  ;;  %v1284_v11 = vmul.f32 %v3948_v60, %v4632_v28  ;;  %v1678_v43 = vadd.f32 %v3634_v16, %v4744_v47 }
 0x30d   : > { %3961 = vrcp.f32 %v1227_v41  ;;  %v1303_v55 = vpack.c.bf16 %v1283_v37, %v1282_v62 }
 0x30e   : > { %v3950_v48 = vpop.eup %3949 }
 0x30f   : > { %3600 = vmatmul.mubr.msk.bf16.gmra.mxu0 %vm727_vm1, %v1303_v55  ;;  %v1285_v61 = vmul.f32 %v3950_v48, %v4640_v30  ;;  %v3952_v5 = vpop.eup %3951 }
 0x310   : > { %v1286_v22 = vmul.f32 %v3952_v5, %v4638_v25  ;;  %v1603_v25 = vadd.f32 %v4744_v47, %v4668_v52  ;;  %v1622_v52 = vadd.f32 %v4744_v47, %v4693_v38  ;;  %v1638_v38 = vadd.f32 %v4744_v47, %v4713_v23 }
 0x311   : > { %v1304_v21 = vpack.c.bf16 %v1285_v61, %v1284_v11  ;;  %v1643_v23 = vadd.f32 %v4698_v45, %v4744_v47  ;;  %v1662_v45 = vadd.f32 %v4728_v4, %v4744_v47  ;;  %v1738_v4 = vpack.c.bf16 %v1678_v43, %v1675_v1 }
 0x312   : > { %v3954_v46 = vpop.eup %3953 }
 0x313   : > { %3603 = vmatprep.mubr.msk.bf16.mxu0 %vm727_vm1, %v1304_v21  ;;  %v1287_v19 = vmul.f32 %v3954_v46, %v4646_v49  ;;  %v3956_v59 = vpop.eup %3955  ;;  %v1606_v49 = vadd.f32 %v4744_v47, %v4672_v9  ;;  %v1736_v62 = vpack.c.bf16 %v1662_v45, %v1659_v53 }
 0x314   : > { %v1288_v13 = vmul.f32 %v3956_v59, %v4648_v36  ;;  %v1669_v36 = vpop.f32.mrf.mxu1 }
 0x315   : > { %v1305_v28 = vpack.c.bf16 %v1287_v19, %v1286_v22  ;;  %v1729_v17 = vpack.c.bf16 %v1606_v49, %v1603_v25 }
 0x316   : > { %v3958_v30 = vpop.eup %3957  ;;  %v3637_v9 = vpop.f32.mrf.mxu1 }
 0x317   : > { %v3960_v63 = vpop.eup %3959  ;;  %3604 = vmatmul.mubr.msk.bf16.gmra.mxu0 %vm727_vm1, %v1305_v28  ;;  %v1289_v7 = vmul.f32 %v3958_v30, %v4656_v29  ;;  %v1619_v29 = vadd.f32 %v4744_v47, %v4683_v51  ;;  %v1635_v51 = vadd.f32 %v4744_v47, %v4703_v50  ;;  %v1651_v50 = vadd.f32 %v4744_v47, %v4723_v32 }
 0x318   : > { %v1290_v54 = vmul.f32 %v3960_v63, %v4654_v40  ;;  %v1611_v40 = vadd.f32 %v4666_v34, %v4744_v47  ;;  %v1682_v26 = vpop.f32.mrf.mxu1  ;;  %v1627_v34 = vadd.f32 %v4676_v31, %v4744_v47  ;;  %v1646_v31 = vadd.f32 %v4708_v10, %v4744_v47 }
 0x319   : > { %v1306_v24 = vpack.c.bf16 %v1289_v7, %v1288_v13  ;;  %v1731_v12 = vpack.c.bf16 %v1622_v52, %v1619_v29  ;;  %v1733_v33 = vpack.c.bf16 %v1638_v38, %v1635_v51  ;;  %v1735_v14 = vpack.c.bf16 %v1654_v8, %v1651_v50 }
 0x31a   : > { %v3962_v57 = vpop.eup %3961  ;;  %v3638_v42 = vpop.f32.mrf.mxu1  ;;  %v1734_v15 = vpack.c.bf16 %v1646_v31, %v1643_v23  ;;  %v1670_v32 = vadd.f32 %v4744_v47, %v1669_v36  ;;  %v1683_v60 = vadd.f32 %v4744_v47, %v1682_v26  ;;  %v1691_v46 = vadd.f32 %v3637_v9, %v4744_v47 }
 0x31b   : > { %v1291_v27 = vmul.f32 %v3962_v57, %v4662_v35  ;;  %3607 = vmatprep.mubr.msk.bf16.mxu0 %vm727_vm1, %v1306_v24  ;;  %v1614_v35 = vadd.f32 %v4670_v0, %v4744_v47  ;;  %v1630_v0 = vadd.f32 %v4688_v39, %v4744_v47  ;;  %v1694_v22 = vadd.f32 %v3638_v42, %v4744_v47 }
 0x31c   : > { %v1685_v56 = vpop.f32.mrf.mxu1  ;;  %v1737_v10 = vpack.c.bf16 %v1670_v32, %v1667_v58 }
 0x31d   : > { %v1307_v2 = vpack.c.bf16 %v1291_v27, %v1290_v54  ;;  %v1730_v20 = vpack.c.bf16 %v1614_v35, %v1611_v40  ;;  %v1732_v3 = vpack.c.bf16 %v1630_v0, %v1627_v34  ;;  %v1686_v55 = vadd.f32 %v4744_v47, %v1685_v56 }
 0x31e   : > { %v3641_v39 = vpop.f32.mrf.mxu1  ;;  %v1740_v59 = vpack.c.bf16 %v1694_v22, %v1691_v46 }
 0x31f   : > { %3608 = vmatmul.mubr.msk.bf16.gmra.mxu0 %vm727_vm1, %v1307_v2  ;;  %v1739_v11 = vpack.c.bf16 %v1686_v55, %v1683_v60  ;;  %v1707_v63 = vadd.f32 %v3641_v39, %v4744_v47 }
 0x320   : > { %3649 = vmatprep.mubr.msk.bf16.mxu0 %vm727_vm1, %v1729_v17  ;;  %v1698_v18 = vpop.f32.mrf.mxu1 }
 0x321   : > { %v1699_v5 = vadd.f32 %v4744_v47, %v1698_v18 }
 0x322   : > { %v3642_v41 = vpop.f32.mrf.mxu1 }
 0x323   : > { %v1710_v13 = vadd.f32 %v3642_v41, %v4744_v47 }
 0x324   : > { %v1701_v37 = vpop.f32.mrf.mxu1 }
 0x325   : > { %v1702_v21 = vadd.f32 %v4744_v47, %v1701_v37  ;;  %v1742_v25 = vpack.c.bf16 %v1710_v13, %v1707_v63 }
 0x326   : > { %v3645_v48 = vpop.f32.mrf.mxu1 }
 0x327   : > { %3650 = vmatmul.mubr.msk.bf16.vlgmr.msra.gmra.mxu0 %vm727_vm1, %v1730_v20  ;;  %v1741_v44 = vpack.c.bf16 %v1702_v21, %v1699_v5  ;;  %v1723_v49 = vadd.f32 %v3645_v48, %v4744_v47 }
 0x328   : > { %3653 = vmatprep.mubr.msk.bf16.mxu0 %vm727_vm1, %v1731_v12  ;;  %v1714_v61 = vpop.f32.mrf.mxu1 }
 0x329   : > { %v1715_v6 = vadd.f32 %v4744_v47, %v1714_v61 }
 0x32a   : > { %v3646_v19 = vpop.f32.mrf.mxu1 }
 0x32b   : > { %v1726_v57 = vadd.f32 %v3646_v19, %v4744_v47 }
 0x32c   : > { %v1717_v28 = vpop.f32.mrf.mxu1 }
 0x32d   : > { %v1718_v30 = vadd.f32 %v4744_v47, %v1717_v28  ;;  %v1744_v24 = vpack.c.bf16 %v1726_v57, %v1723_v49 }
 0x32f   : > { %3654 = vmatmul.mubr.msk.bf16.gmra.mxu0 %vm727_vm1, %v1732_v3  ;;  %v1743_v7 = vpack.c.bf16 %v1718_v30, %v1715_v6 }
 0x330   : > { %3657 = vmatprep.mubr.msk.bf16.mxu0 %vm727_vm1, %v1733_v33 }
 0x337   : > { %3658 = vmatmul.mubr.msk.bf16.gmra.mxu0 %vm727_vm1, %v1734_v15 }
 0x338   : > { %3661 = vmatprep.mubr.msk.bf16.mxu0 %vm727_vm1, %v1735_v14 }
 0x33f   : > { %3662 = vmatmul.mubr.msk.bf16.gmra.mxu0 %vm727_vm1, %v1736_v62 }
 0x340   : > { %3665 = vmatprep.mubr.msk.bf16.mxu0 %vm727_vm1, %v1737_v10 }
 0x347   : > { %3666 = vmatmul.mubr.msk.bf16.gmra.mxu0 %vm727_vm1, %v1738_v4 }
 0x348   : > { %3669 = vmatprep.mubr.msk.bf16.mxu0 %vm727_vm1, %v1739_v11 }
 0x34f   : > { %3670 = vmatmul.mubr.msk.bf16.gmra.mxu0 %vm727_vm1, %v1740_v59 }
 0x350   : > { %3673 = vmatprep.mubr.msk.bf16.mxu0 %vm727_vm1, %v1741_v44 }
 0x357   : > { %3674 = vmatmul.mubr.msk.bf16.gmra.mxu0 %vm727_vm1, %v1742_v25 }
 0x358   : > { %3677 = vmatprep.mubr.msk.bf16.mxu0 %vm727_vm1, %v1743_v7 }
 0x35f   : > { %3678 = vmatmul.mubr.msk.bf16.gmra.mxu0 %vm727_vm1, %v1744_v24 }
 0x3a6   : > { %v4817_v16 = vpop.f32.mrf.mxu0 }
 0x3a8   : > { %v4819_v54 = vpop.f32.mrf.mxu0 }
 0x3aa   : > { %v4821_v27 = vpop.f32.mrf.mxu0 }
 0x3ac   : > { %v4825_v2 = vpop.f32.mrf.mxu0 }
 0x3af   : > { %v4829_v29 = vpop.f32.mrf.mxu0 }
 0x3b1   : > { %v4831_v47 = vpop.f32.mrf.mxu0 }
 0x3b3   : > { %v4833_v52 = vpop.f32.mrf.mxu0 }
 0x3b5   : > { %v4837_v35 = vpop.f32.mrf.mxu0 }
 0x3b7   : > { %v4841_v12 = vpop.f32.mrf.mxu0 }
 0x3b9   : > { %v4843_v20 = vpop.f32.mrf.mxu0 }
 0x3bb   : > { %v4845_v26 = vpop.f32.mrf.mxu0 }
 0x3bd   : > { %v4849_v38 = vpop.f32.mrf.mxu0 }
 0x3bf   : > { %v4853_v0 = vpop.f32.mrf.mxu0 }
 0x3c1   : > { %v4855_v42 = vpop.f32.mrf.mxu0 }
 0x3c3   : > { %v4857_v33 = vpop.f32.mrf.mxu0 }
 0x3c5   : > { %v4861_v56 = vpop.f32.mrf.mxu0 }
 0x3c7   : > { %v4865_v8 = vpop.f32.mrf.mxu0 }
 0x3c8   : > { %5489 = vst [vmem:[#allocation2_spill] sm:$0xff] %v4865_v8 }
 0x3c9   : > { %v4867_v23 = vpop.f32.mrf.mxu0 }
 0x3cb   : > { %v4869_v31 = vpop.f32.mrf.mxu0 }
 0x3cc   : > { %5490 = vst [vmem:[#allocation3_spill] sm:$0xff] %v4869_v31 }
 0x3cd   : > { %v4873_v14 = vpop.f32.mrf.mxu0 }
 0x3cf   : > { %v4877_v18 = vpop.f32.mrf.mxu0 }
 0x3d0   : > { %5491 = vst [vmem:[#allocation4_spill] sm:$0xff] %v4877_v18 }
 0x3d1   : > { %v4879_v58 = vpop.f32.mrf.mxu0 }
 0x3d2   : > { %5492 = vst [vmem:[#allocation5_spill] sm:$0xff] %v4879_v58 }
 0x3d3   : > { %v4881_v32 = vpop.f32.mrf.mxu0 }
 0x3d4   : > { %5493 = vst [vmem:[#allocation6_spill] sm:$0xff] %v4881_v32 }
 0x3d5   : > { %v4885_v45 = vpop.f32.mrf.mxu0 }
 0x3d6   : > { %5494 = vst [vmem:[#allocation7_spill] sm:$0xff] %v4885_v45 }
 0x3d7   : > { %v4889_v10 = vpop.f32.mrf.mxu0 }
 0x3d8   : > { %5495 = vst [vmem:[#allocation8_spill] sm:$0xff] %v4889_v10 }
 0x3d9   : > { %v4891_v62 = vpop.f32.mrf.mxu0 }
 0x3da   : > { %5496 = vst [vmem:[#allocation9_spill] sm:$0xff] %v4891_v62 }
 0x3db   : > { %v4893_v37 = vpop.f32.mrf.mxu0 }
 0x3dc   : > { %5497 = vst [vmem:[#allocation10_spill] sm:$0xff] %v4893_v37  ;;  %v3832_v37 = vld [vmem:[%s4279_s19 + $0x8] sm:$0xff]  }
 0x3dd   : > { %v4897_v55 = vpop.f32.mrf.mxu0  ;;  %3681 = vmatprep.subr.bf16.mxu1 %v3832_v37 }
 0x3de   : > { %5498 = vst [vmem:[#allocation11_spill] sm:$0xff] %v4897_v55  ;;  %3682 = vmatpush3.bf16.msra.mxu1 %v3832_v37 }
 0x3df   : > { %v4901_v43 = vpop.f32.mrf.mxu0 }
 0x3e0   : > { %5499 = vst [vmem:[#allocation12_spill] sm:$0xff] %v4901_v43 }
 0x3e1   : > { %v4903_v48 = vpop.f32.mrf.mxu0 }
 0x3e2   : > { %5500 = vst [vmem:[#allocation13_spill] sm:$0xff] %v4903_v48 }
 0x3e3   : > { %v4905_v11 = vpop.f32.mrf.mxu0 }
 0x3e4   : > { %5501 = vst [vmem:[#allocation14_spill] sm:$0xff] %v4905_v11 }
 0x3e5   : > { %v4909_v61 = vpop.f32.mrf.mxu0 }
 0x3e6   : > { %5502 = vst [vmem:[#allocation15_spill] sm:$0xff] %v4909_v61 }
 0x3e7   : > { %v4913_v21 = vpop.f32.mrf.mxu0 }
 0x3e8   : > { %v1971_v59 = vsel %vm727_vm1, %v4913_v21, -inf }
 0x3e9   : > { %v4915_v46 = vpop.f32.mrf.mxu0 }
 0x3ea   : > { %v1965_v22 = vsel %vm727_vm1, %v4915_v46, -inf }
 0x3eb   : > { %1966 = vmax.xlane.f32.xlu0 %v1965_v22  ;;  %v4919_v19 = vpop.f32.mrf.mxu0 }
 0x3ec   : > { %v1974_v63 = vsel %vm727_vm1, %v4919_v19, -inf }
 0x3ed   : > { %v4921_v44 = vpop.f32.mrf.mxu0 }
 0x3ee   : > { %v1968_v28 = vsel %vm727_vm1, %v4921_v44, -inf }
 0x3ef   : > { %1972 = vmax.xlane.f32.xlu0 %v1971_v59  ;;  %1969 = vmax.xlane.f32.xlu1 %v1968_v28  ;;  %v4927_v6 = vpop.f32.mrf.mxu0 }
 0x3f0   : > { %v1983_v49 = vsel %vm727_vm1, %v4927_v6, -inf }
 0x3f1   : > { %v4929_v30 = vpop.f32.mrf.mxu0 }
 0x3f2   : > { %v1977_v13 = vsel %vm727_vm1, %v4929_v30, -inf }
 0x3f3   : > { %1975 = vmax.xlane.f32.xlu1 %v1974_v63  ;;  %1978 = vmax.xlane.f32.xlu0 %v1977_v13  ;;  %v4935_v7 = vpop.f32.mrf.mxu0 }
 0x3f4   : > { %v1986_v59 = vsel %vm727_vm1, %v4935_v7, -inf }
 0x3f5   : > { %v4937_v25 = vpop.f32.mrf.mxu0 }
 0x3f6   : > { %v1980_v57 = vsel %vm727_vm1, %v4937_v25, -inf }
 0x3f7   : > { %1984 = vmax.xlane.f32.xlu0 %v1983_v49  ;;  %1981 = vmax.xlane.f32.xlu1 %v1980_v57  ;;  %v4943_v24 = vpop.f32.mrf.mxu0 }
 0x3f8   : > { %v1995_v49 = vsel %vm727_vm1, %v4943_v24, -inf }
 0x3f9   : > { %v4945_v22 = vpop.f32.mrf.mxu0 }
 0x3fa   : > { %v1989_v28 = vsel %vm727_vm1, %v4945_v22, -inf }
 0x3fb   : > { %1987 = vmax.xlane.f32.xlu1 %v1986_v59  ;;  %1990 = vmax.xlane.f32.xlu0 %v1989_v28  ;;  %v4951_v63 = vpop.f32.mrf.mxu0 }
 0x3fc   : > { %v1998_v59 = vsel %vm727_vm1, %v4951_v63, -inf }
 0x3fd   : > { %v4953_v13 = vpop.f32.mrf.mxu0 }
 0x3fe   : > { %v1992_v57 = vsel %vm727_vm1, %v4953_v13, -inf }
 0x3ff   : > { %1996 = vmax.xlane.f32.xlu0 %v1995_v49  ;;  %1993 = vmax.xlane.f32.xlu1 %v1992_v57  ;;  %v4959_v4 = vpop.f32.mrf.mxu0 }
 0x400   : > { %v2007_v49 = vsel %vm727_vm1, %v4959_v4, -inf }
 0x401   : > { %v4961_v5 = vpop.f32.mrf.mxu0 }
 0x402   : > { %v2001_v28 = vsel %vm727_vm1, %v4961_v5, -inf }
 0x403   : > { %1999 = vmax.xlane.f32.xlu1 %v1998_v59  ;;  %2002 = vmax.xlane.f32.xlu0 %v2001_v28  ;;  %v4967_v60 = vpop.f32.mrf.mxu0 }
 0x404   : > { %v2010_v59 = vsel %vm727_vm1, %v4967_v60, -inf }
 0x405   : > { %v4969_v1 = vpop.f32.mrf.mxu0 }
 0x406   : > { %v2004_v57 = vsel %vm727_vm1, %v4969_v1, -inf }
 0x407   : > { %2008 = vmax.xlane.f32.xlu0 %v2007_v49  ;;  %2005 = vmax.xlane.f32.xlu1 %v2004_v57  ;;  %v4975_v53 = vpop.f32.mrf.mxu0 }
 0x408   : > { %v2019_v49 = vsel %vm727_vm1, %v4975_v53, -inf }
 0x409   : > { %v4977_v41 = vpop.f32.mrf.mxu0 }
 0x40a   : > { %v2013_v28 = vsel %vm727_vm1, %v4977_v41, -inf }
 0x40b   : > { %2011 = vmax.xlane.f32.xlu1 %v2010_v59  ;;  %2014 = vmax.xlane.f32.xlu0 %v2013_v28  ;;  %v4983_v39 = vpop.f32.mrf.mxu0 }
 0x40c   : > { %v2022_v59 = vsel %vm727_vm1, %v4983_v39, -inf }
 0x40d   : > { %v4985_v15 = vpop.f32.mrf.mxu0 }
 0x40e   : > { %v2016_v57 = vsel %vm727_vm1, %v4985_v15, -inf }
 0x40f   : > { %2020 = vmax.xlane.f32.xlu0 %v2019_v49  ;;  %2017 = vmax.xlane.f32.xlu1 %v2016_v57  ;;  %v4991_v3 = vpop.f32.mrf.mxu0 }
 0x410   : > { %v2031_v49 = vsel %vm727_vm1, %v4991_v3, -inf }
 0x411   : > { %v4993_v50 = vpop.f32.mrf.mxu0 }
 0x412   : > { %v2025_v28 = vsel %vm727_vm1, %v4993_v50, -inf }
 0x413   : > { %2023 = vmax.xlane.f32.xlu1 %v2022_v59  ;;  %2026 = vmax.xlane.f32.xlu0 %v2025_v28  ;;  %v4999_v51 = vpop.f32.mrf.mxu0 }
 0x414   : > { %v2034_v59 = vsel %vm727_vm1, %v4999_v51, -inf }
 0x415   : > { %v5001_v34 = vpop.f32.mrf.mxu0 }
 0x416   : > { %v2028_v57 = vsel %vm727_vm1, %v5001_v34, -inf }
 0x417   : > { %2032 = vmax.xlane.f32.xlu0 %v2031_v49  ;;  %2029 = vmax.xlane.f32.xlu1 %v2028_v57  ;;  %v5007_v40 = vpop.f32.mrf.mxu0 }
 0x418   : > { %v2043_v49 = vsel %vm727_vm1, %v5007_v40, -inf }
 0x419   : > { %v5009_v9 = vpop.f32.mrf.mxu0 }
 0x41a   : > { %v2037_v28 = vsel %vm727_vm1, %v5009_v9, -inf }
 0x41b   : > { %2035 = vmax.xlane.f32.xlu1 %v2034_v59  ;;  %2038 = vmax.xlane.f32.xlu0 %v2037_v28  ;;  %v5015_v17 = vpop.f32.mrf.mxu0 }
 0x41c   : > { %v2046_v59 = vsel %vm727_vm1, %v5015_v17, -inf }
 0x41d   : > { %v5017_v36 = vpop.f32.mrf.mxu0 }
 0x41e   : > { %v2040_v57 = vsel %vm727_vm1, %v5017_v36, -inf }
 0x41f   : > { %2044 = vmax.xlane.f32.xlu0 %v2043_v49  ;;  %2041 = vmax.xlane.f32.xlu1 %v2040_v57  ;;  %v5023_v43 = vpop.f32.mrf.mxu0 }
 0x420   : > { %v2055_v49 = vsel %vm727_vm1, %v5023_v43, -inf }
 0x421   : > { %v5025_v11 = vpop.f32.mrf.mxu0 }
 0x422   : > { %v2049_v28 = vsel %vm727_vm1, %v5025_v11, -inf }
 0x423   : > { %2047 = vmax.xlane.f32.xlu1 %v2046_v59  ;;  %2050 = vmax.xlane.f32.xlu0 %v2049_v28  ;;  %v5031_v48 = vpop.f32.mrf.mxu0 }
 0x424   : > { %v2058_v10 = vsel %vm727_vm1, %v5031_v48, -inf }
 0x425   : > { %v5033_v61 = vpop.f32.mrf.mxu0 }
 0x426   : > { %v2052_v57 = vsel %vm727_vm1, %v5033_v61, -inf }
 0x427   : > { %2056 = vmax.xlane.f32.xlu0 %v2055_v49  ;;  %2053 = vmax.xlane.f32.xlu1 %v2052_v57 }
 0x42b   : > { %2059 = vmax.xlane.f32.xlu1 %v2058_v10 }
 0x474   : > { %v1967_v59 = vpop.xlane.xlu0 %1966 }
 0x475   : > { %v2061_v28 = vsub.f32 %v4915_v46, %v1967_v59 }
 0x477   : > { %v2093_v62 = vmul.f32 1.442695, %v2061_v28 }
 0x478   : > { %v1973_v55 = vpop.xlane.xlu0 %1972  ;;  %v1970_v18 = vpop.xlane.xlu1 %1969 }
 0x479   : > { %3963 = vpow2.f32 %v2093_v62  ;;  %v2063_v32 = vsub.f32 %v4913_v21, %v1973_v55  ;;  %v2062_v58 = vsub.f32 %v4921_v44, %v1970_v18 }
 0x47b   : > { %v2097_v49 = vmul.f32 1.442695, %v2063_v32  ;;  %v2095_v57 = vmul.f32 1.442695, %v2062_v58 }
 0x47c   : > { %v1976_v45 = vpop.xlane.xlu1 %1975  ;;  %v1979_v8 = vpop.xlane.xlu0 %1978 }
 0x47d   : > { %3965 = vpow2.f32 %v2097_v49  ;;  %v2064_v10 = vsub.f32 %v4919_v19, %v1976_v45  ;;  %v2065_v37 = vsub.f32 %v4929_v30, %v1979_v8 }
 0x47e   : > { %3967 = vpow2.f32 %v2095_v57 }
 0x47f   : > { %v2099_v31 = vmul.f32 1.442695, %v2064_v10  ;;  %v2101_v46 = vmul.f32 1.442695, %v2065_v37 }
 0x480   : > { %v1985_v59 = vpop.xlane.xlu0 %1984  ;;  %v1982_v28 = vpop.xlane.xlu1 %1981 }
 0x481   : > { %3969 = vpow2.f32 %v2099_v31  ;;  %v2067_v62 = vsub.f32 %v4927_v6, %v1985_v59  ;;  %v2066_v55 = vsub.f32 %v4937_v25, %v1982_v28 }
 0x482   : > { %3971 = vpow2.f32 %v2101_v46 }
 0x483   : > { %v2105_v18 = vmul.f32 1.442695, %v2067_v62  ;;  %v2103_v58 = vmul.f32 1.442695, %v2066_v55 }
 0x484   : > { %v1988_v32 = vpop.xlane.xlu1 %1987  ;;  %v1991_v21 = vpop.xlane.xlu0 %1990 }
 0x485   : > { %3973 = vpow2.f32 %v2105_v18  ;;  %v2068_v45 = vsub.f32 %v4935_v7, %v1988_v32  ;;  %v2069_v8 = vsub.f32 %v4945_v22, %v1991_v21 }
 0x486   : > { %v5051_v19 = vpop.eup %3963  ;;  %3975 = vpow2.f32 %v2103_v58 }
 0x487   : > { %v2107_v44 = vmul.f32 1.442695, %v2068_v45  ;;  %v2109_v30 = vmul.f32 1.442695, %v2069_v8  ;;  %v2157_v31 = vsel %vm727_vm1, %v5051_v19, 0.0 }
 0x488   : > { %v1997_v6 = vpop.xlane.xlu0 %1996  ;;  %v1994_v25 = vpop.xlane.xlu1 %1993  ;;  %2158 = vadd.xlane.f32.xlu0 %v2157_v31 }
 0x489   : > { %3977 = vpow2.f32 %v2107_v44  ;;  %v2071_v49 = vsub.f32 %v4943_v24, %v1997_v6  ;;  %v2070_v57 = vsub.f32 %v4953_v13, %v1994_v25 }
 0x48a   : > { %v5057_v10 = vpop.eup %3965  ;;  %3979 = vpow2.f32 %v2109_v30 }
 0x48b   : > { %v5059_v7 = vpop.eup %3967  ;;  %v2113_v22 = vmul.f32 1.442695, %v2071_v49  ;;  %v2111_v37 = vmul.f32 1.442695, %v2070_v57  ;;  %v2163_v46 = vsel %vm727_vm1, %v5057_v10, 0.0 }
 0x48c   : > { %v2000_v59 = vpop.xlane.xlu1 %1999  ;;  %v2003_v28 = vpop.xlane.xlu0 %2002  ;;  %2164 = vadd.xlane.f32.xlu0 %v2163_v46  ;;  %v2160_v62 = vsel %vm727_vm1, %v5059_v7, 0.0 }
 0x48d   : > { %3981 = vpow2.f32 %v2113_v22  ;;  %v2072_v24 = vsub.f32 %v4951_v63, %v2000_v59  ;;  %v2073_v13 = vsub.f32 %v4961_v5, %v2003_v28  ;;  %2161 = vadd.xlane.f32.xlu1 %v2160_v62 }
 0x48e   : > { %v5067_v55 = vpop.eup %3969  ;;  %3983 = vpow2.f32 %v2111_v37 }
 0x48f   : > { %v5069_v18 = vpop.eup %3971  ;;  %v2115_v58 = vmul.f32 1.442695, %v2072_v24  ;;  %v2117_v32 = vmul.f32 1.442695, %v2073_v13  ;;  %v2166_v21 = vsel %vm727_vm1, %v5067_v55, 0.0 }
 0x490   : > { %v2009_v45 = vpop.xlane.xlu0 %2008  ;;  %v2006_v8 = vpop.xlane.xlu1 %2005  ;;  %v2169_v44 = vsel %vm727_vm1, %v5069_v18, 0.0 }
 0x491   : > { %3985 = vpow2.f32 %v2115_v58  ;;  %v2075_v63 = vsub.f32 %v4959_v4, %v2009_v45  ;;  %v2074_v5 = vsub.f32 %v4969_v1, %v2006_v8  ;;  %2170 = vadd.xlane.f32.xlu0 %v2169_v44  ;;  %2167 = vadd.xlane.f32.xlu1 %v2166_v21 }
 0x492   : > { %v5077_v30 = vpop.eup %3973  ;;  %3987 = vpow2.f32 %v2117_v32 }
 0x493   : > { %v5079_v31 = vpop.eup %3975  ;;  %v2121_v6 = vmul.f32 1.442695, %v2075_v63  ;;  %v2119_v25 = vmul.f32 1.442695, %v2074_v5  ;;  %v2175_v49 = vsel %vm727_vm1, %v5077_v30, 0.0 }
 0x494   : > { %v2012_v57 = vpop.xlane.xlu1 %2011  ;;  %v2015_v22 = vpop.xlane.xlu0 %2014  ;;  %v2172_v37 = vsel %vm727_vm1, %v5079_v31, 0.0 }
 0x495   : > { %3989 = vpow2.f32 %v2121_v6  ;;  %v2076_v1 = vsub.f32 %v4967_v60, %v2012_v57  ;;  %v2077_v4 = vsub.f32 %v4977_v41, %v2015_v22  ;;  %2176 = vadd.xlane.f32.xlu0 %v2175_v49  ;;  %2173 = vadd.xlane.f32.xlu1 %v2172_v37 }
 0x496   : > { %v5087_v46 = vpop.eup %3977  ;;  %3991 = vpow2.f32 %v2119_v25 }
 0x497   : > { %v5089_v59 = vpop.eup %3979  ;;  %v2123_v28 = vmul.f32 1.442695, %v2076_v1  ;;  %v2125_v62 = vmul.f32 1.442695, %v2077_v4  ;;  %v2178_v24 = vsel %vm727_vm1, %v5087_v46, 0.0 }
 0x498   : > { %v2021_v13 = vpop.xlane.xlu0 %2020  ;;  %v2018_v58 = vpop.xlane.xlu1 %2017  ;;  %v2181_v32 = vsel %vm727_vm1, %v5089_v59, 0.0 }
 0x499   : > { %3993 = vpow2.f32 %v2123_v28  ;;  %v2079_v41 = vsub.f32 %v4975_v53, %v2021_v13  ;;  %v2078_v60 = vsub.f32 %v4985_v15, %v2018_v58  ;;  %2182 = vadd.xlane.f32.xlu0 %v2181_v32  ;;  %2179 = vadd.xlane.f32.xlu1 %v2178_v24 }
 0x49a   : > { %v5097_v21 = vpop.eup %3981  ;;  %3995 = vpow2.f32 %v2125_v62 }
 0x49b   : > { %v5099_v45 = vpop.eup %3983  ;;  %v2129_v8 = vmul.f32 1.442695, %v2079_v41  ;;  %v2127_v44 = vmul.f32 1.442695, %v2078_v60  ;;  %v2187_v63 = vsel %vm727_vm1, %v5097_v21, 0.0 }
 0x49c   : > { %v2024_v5 = vpop.xlane.xlu1 %2023  ;;  %v2027_v6 = vpop.xlane.xlu0 %2026  ;;  %v2184_v25 = vsel %vm727_vm1, %v5099_v45, 0.0 }
 0x49d   : > { %3997 = vpow2.f32 %v2129_v8  ;;  %v2080_v15 = vsub.f32 %v4983_v39, %v2024_v5  ;;  %v2081_v53 = vsub.f32 %v4993_v50, %v2027_v6  ;;  %2188 = vadd.xlane.f32.xlu0 %v2187_v63  ;;  %2185 = vadd.xlane.f32.xlu1 %v2184_v25 }
 0x49e   : > { %v5107_v49 = vpop.eup %3985  ;;  %3999 = vpow2.f32 %v2127_v44 }
 0x49f   : > { %v5109_v57 = vpop.eup %3987  ;;  %v2131_v22 = vmul.f32 1.442695, %v2080_v15  ;;  %v2133_v37 = vmul.f32 1.442695, %v2081_v53  ;;  %v2190_v1 = vsel %vm727_vm1, %v5107_v49, 0.0 }
 0x4a0   : > { %v2033_v4 = vpop.xlane.xlu0 %2032  ;;  %v2030_v28 = vpop.xlane.xlu1 %2029  ;;  %v2193_v62 = vsel %vm727_vm1, %v5109_v57, 0.0 }
 0x4a1   : > { %4001 = vpow2.f32 %v2131_v22  ;;  %v2083_v50 = vsub.f32 %v4991_v3, %v2033_v4  ;;  %v2082_v39 = vsub.f32 %v5001_v34, %v2030_v28  ;;  %2194 = vadd.xlane.f32.xlu0 %v2193_v62  ;;  %2191 = vadd.xlane.f32.xlu1 %v2190_v1 }
 0x4a2   : > { %v5117_v24 = vpop.eup %3989  ;;  %4003 = vpow2.f32 %v2133_v37 }
 0x4a3   : > { %v5119_v13 = vpop.eup %3991  ;;  %v2137_v58 = vmul.f32 1.442695, %v2083_v50  ;;  %v2135_v32 = vmul.f32 1.442695, %v2082_v39  ;;  %v2199_v41 = vsel %vm727_vm1, %v5117_v24, 0.0 }
 0x4a4   : > { %v2036_v60 = vpop.xlane.xlu1 %2035  ;;  %v2039_v8 = vpop.xlane.xlu0 %2038  ;;  %v2196_v44 = vsel %vm727_vm1, %v5119_v13, 0.0 }
 0x4a5   : > { %4005 = vpow2.f32 %v2137_v58  ;;  %v2084_v34 = vsub.f32 %v4999_v51, %v2036_v60  ;;  %v2085_v3 = vsub.f32 %v5009_v9, %v2039_v8  ;;  %2200 = vadd.xlane.f32.xlu0 %v2199_v41  ;;  %2197 = vadd.xlane.f32.xlu1 %v2196_v44 }
 0x4a6   : > { %v5127_v63 = vpop.eup %3993  ;;  %4007 = vpow2.f32 %v2135_v32 }
 0x4a7   : > { %v5129_v5 = vpop.eup %3995  ;;  %v2139_v6 = vmul.f32 1.442695, %v2084_v34  ;;  %v2141_v25 = vmul.f32 1.442695, %v2085_v3  ;;  %v2202_v15 = vsel %vm727_vm1, %v5127_v63, 0.0 }
 0x4a8   : > { %v2045_v53 = vpop.xlane.xlu0 %2044  ;;  %v2042_v22 = vpop.xlane.xlu1 %2041  ;;  %v2205_v37 = vsel %vm727_vm1, %v5129_v5, 0.0 }
 0x4a9   : > { %4009 = vpow2.f32 %v2139_v6  ;;  %v2087_v9 = vsub.f32 %v5007_v40, %v2045_v53  ;;  %v2086_v51 = vsub.f32 %v5017_v36, %v2042_v22  ;;  %2206 = vadd.xlane.f32.xlu0 %v2205_v37  ;;  %2203 = vadd.xlane.f32.xlu1 %v2202_v15 }
 0x4aa   : > { %v5137_v1 = vpop.eup %3997  ;;  %4011 = vpow2.f32 %v2141_v25 }
 0x4ab   : > { %v5139_v4 = vpop.eup %3999  ;;  %v2145_v28 = vmul.f32 1.442695, %v2087_v9  ;;  %v2143_v62 = vmul.f32 1.442695, %v2086_v51  ;;  %v2211_v50 = vsel %vm727_vm1, %v5137_v1, 0.0 }
 0x4ac   : > { %v2048_v39 = vpop.xlane.xlu1 %2047  ;;  %v2051_v58 = vpop.xlane.xlu0 %2050  ;;  %v2208_v32 = vsel %vm727_vm1, %v5139_v4, 0.0 }
 0x4ad   : > { %4013 = vpow2.f32 %v2145_v28  ;;  %v2088_v36 = vsub.f32 %v5015_v17, %v2048_v39  ;;  %2212 = vadd.xlane.f32.xlu0 %v2211_v50  ;;  %v2089_v40 = vsub.f32 %v5025_v11, %v2051_v58  ;;  %2209 = vadd.xlane.f32.xlu1 %v2208_v32 }
 0x4ae   : > { %v5147_v41 = vpop.eup %4001  ;;  %4015 = vpow2.f32 %v2143_v62 }
 0x4af   : > { %v5149_v60 = vpop.eup %4003  ;;  %v2147_v8 = vmul.f32 1.442695, %v2088_v36  ;;  %v2149_v44 = vmul.f32 1.442695, %v2089_v40  ;;  %v2214_v34 = vsel %vm727_vm1, %v5147_v41, 0.0 }
 0x4b0   : > { %v2217_v3 = vsel %vm727_vm1, %v5149_v60, 0.0  ;;  %v2057_v6 = vpop.xlane.xlu0 %2056  ;;  %v2054_v25 = vpop.xlane.xlu1 %2053 }
 0x4b1   : > { %4017 = vpow2.f32 %v2147_v8  ;;  %2218 = vadd.xlane.f32.xlu0 %v2217_v3  ;;  %v2091_v17 = vsub.f32 %v5023_v43, %v2057_v6  ;;  %2215 = vadd.xlane.f32.xlu1 %v2214_v34  ;;  %v2090_v11 = vsub.f32 %v5033_v61, %v2054_v25 }
 0x4b2   : > { %v5157_v15 = vpop.eup %4005  ;;  %4019 = vpow2.f32 %v2149_v44 }
 0x4b3   : > { %v5159_v53 = vpop.eup %4007  ;;  %v2153_v22 = vmul.f32 1.442695, %v2091_v17  ;;  %v2151_v37 = vmul.f32 1.442695, %v2090_v11  ;;  %v2223_v9 = vsel %vm727_vm1, %v5157_v15, 0.0 }
 0x4b4   : > { %v2220_v51 = vsel %vm727_vm1, %v5159_v53, 0.0  ;;  %v2060_v28 = vpop.xlane.xlu1 %2059 }
 0x4b5   : > { %4021 = vpow2.f32 %v2153_v22  ;;  %2224 = vadd.xlane.f32.xlu0 %v2223_v9  ;;  %2221 = vadd.xlane.f32.xlu1 %v2220_v51  ;;  %v2092_v43 = vsub.f32 %v5031_v48, %v2060_v28  ;;  %v3833_v9 = vld [vmem:[%s5472_s5] sm:$0xff]  }
 0x4b6   : > { %v5166_v61 = vpop.eup %4009  ;;  %4023 = vpow2.f32 %v2151_v37  ;;  %3749 = vmatprep.subr.bf16.mxu1 %v3833_v9 }
 0x4b7   : > { %v5168_v62 = vpop.eup %4011  ;;  %v2155_v50 = vmul.f32 1.442695, %v2092_v43  ;;  %v2226_v39 = vsel %vm727_vm1, %v5166_v61, 0.0 }
 0x4b8   : > { %v2229_v58 = vsel %vm727_vm1, %v5168_v62, 0.0 }
 0x4b9   : > { %4025 = vpow2.f32 %v2155_v50  ;;  %2230 = vadd.xlane.f32.xlu0 %v2229_v58  ;;  %2227 = vadd.xlane.f32.xlu1 %v2226_v39 }
 0x4ba   : > { %v5174_v32 = vpop.eup %4013 }
 0x4bb   : > { %v5176_v36 = vpop.eup %4015  ;;  %v2235_v48 = vsel %vm727_vm1, %v5174_v32, 0.0 }
 0x4bc   : > { %v2232_v40 = vsel %vm727_vm1, %v5176_v36, 0.0 }
 0x4bd   : > { %2236 = vadd.xlane.f32.xlu0 %v2235_v48  ;;  %2233 = vadd.xlane.f32.xlu1 %v2232_v40 }
 0x4be   : > { %v5182_v8 = vpop.eup %4017 }
 0x4bf   : > { %v5184_v44 = vpop.eup %4019  ;;  %v2238_v34 = vsel %vm727_vm1, %v5182_v8, 0.0 }
 0x4c0   : > { %v2241_v3 = vsel %vm727_vm1, %v5184_v44, 0.0 }
 0x4c1   : > { %2242 = vadd.xlane.f32.xlu0 %v2241_v3  ;;  %2239 = vadd.xlane.f32.xlu1 %v2238_v34 }
 0x4c2   : > { %v5190_v6 = vpop.eup %4021 }
 0x4c3   : > { %v5192_v25 = vpop.eup %4023  ;;  %v2247_v17 = vsel %vm727_vm1, %v5190_v6, 0.0 }
 0x4c4   : > { %v2244_v11 = vsel %vm727_vm1, %v5192_v25, 0.0 }
 0x4c5   : > { %2248 = vadd.xlane.f32.xlu0 %v2247_v17  ;;  %2245 = vadd.xlane.f32.xlu1 %v2244_v11 }
 0x4c6   : > { %v5198_v22 = vpop.eup %4025 }
 0x4c7   : > { %v2250_v37 = vsel %vm727_vm1, %v5198_v22, 0.0 }
 0x4c9   : > { %2251 = vadd.xlane.f32.xlu1 %v2250_v37 }
 0x511   : > { %v2159_v51 = vpop.xlane.xlu0 %2158 }
 0x512   : > { %4027 = vrcp.f32 %v2159_v51 }
 0x515   : > { %v2165_v28 = vpop.xlane.xlu0 %2164 }
 0x516   : > { %v2162_v43 = vpop.xlane.xlu1 %2161 }
 0x517   : > { %4029 = vrcp.f32 %v2162_v43  ;;  %v3834_v43 = vld [vmem:[%s5472_s5 + $0x8] sm:$0xff]  }
 0x518   : > { %4031 = vrcp.f32 %v2165_v28  ;;  %3715 = vmatprep.subr.bf16.mxu0 %v3834_v43 }
 0x519   : > { %3716 = vmatpush3.bf16.msra.mxu0 %v3834_v43 }
 0x51a   : > { %v2171_v50 = vpop.xlane.xlu0 %2170  ;;  %v2168_v39 = vpop.xlane.xlu1 %2167 }
 0x51b   : > { %4033 = vrcp.f32 %v2168_v39 }
 0x51c   : > { %4035 = vrcp.f32 %v2171_v50 }
 0x51e   : > { %v2177_v58 = vpop.xlane.xlu0 %2176  ;;  %v2174_v48 = vpop.xlane.xlu1 %2173 }
 0x51f   : > { %4037 = vrcp.f32 %v2174_v48  ;;  %v4028_v40 = vpop.eup %4027 }
 0x520   : > { %4039 = vrcp.f32 %v2177_v58  ;;  %v2285_v11 = vmul.f32 %v4028_v40, %v5051_v19 }
 0x522   : > { %v2183_v34 = vpop.xlane.xlu0 %2182  ;;  %v2180_v3 = vpop.xlane.xlu1 %2179 }
 0x523   : > { %4041 = vrcp.f32 %v2180_v3 }
 0x524   : > { %v4030_v17 = vpop.eup %4029  ;;  %4043 = vrcp.f32 %v2183_v34 }
 0x525   : > { %v2286_v37 = vmul.f32 %v4030_v17, %v5059_v7  ;;  %v4032_v50 = vpop.eup %4031 }
 0x526   : > { %v2189_v51 = vpop.xlane.xlu0 %2188  ;;  %v2186_v28 = vpop.xlane.xlu1 %2185  ;;  %v2287_v48 = vmul.f32 %v4032_v50, %v5057_v10 }
 0x527   : > { %v2317_v39 = vpack.c.bf16 %v2286_v37, %v2285_v11  ;;  %4045 = vrcp.f32 %v2186_v28 }
 0x528   : > { %v4034_v58 = vpop.eup %4033  ;;  %4047 = vrcp.f32 %v2189_v51 }
 0x529   : > { %3683 = vmatprep.mubr.msk.bf16.mxu1 %vm727_vm1, %v2317_v39  ;;  %v2288_v19 = vmul.f32 %v4034_v58, %v5067_v55  ;;  %v4036_v34 = vpop.eup %4035 }
 0x52a   : > { %v2195_v7 = vpop.xlane.xlu0 %2194  ;;  %v2192_v40 = vpop.xlane.xlu1 %2191  ;;  %v2289_v28 = vmul.f32 %v4036_v34, %v5069_v18 }
 0x52b   : > { %v2318_v3 = vpack.c.bf16 %v2288_v19, %v2287_v48  ;;  %4049 = vrcp.f32 %v2192_v40 }
 0x52c   : > { %v4038_v17 = vpop.eup %4037  ;;  %4051 = vrcp.f32 %v2195_v7 }
 0x52d   : > { %3684 = vmatmul.mubr.msk.bf16.vlgmr.msra.gmra.mxu1 %vm727_vm1, %v2318_v3  ;;  %v2290_v43 = vmul.f32 %v4038_v17, %v5079_v31  ;;  %v4040_v39 = vpop.eup %4039 }
 0x52e   : > { %v2201_v11 = vpop.xlane.xlu0 %2200  ;;  %v2198_v37 = vpop.xlane.xlu1 %2197  ;;  %3750 = vmatpush3.bf16.msra.mxu1 %v3833_v9  ;;  %v2291_v58 = vmul.f32 %v4040_v39, %v5077_v30 }
 0x52f   : > { %4053 = vrcp.f32 %v2198_v37  ;;  %v2319_v10 = vpack.c.bf16 %v2290_v43, %v2289_v28 }
 0x530   : > { %v4042_v55 = vpop.eup %4041  ;;  %4055 = vrcp.f32 %v2201_v11 }
 0x531   : > { %3687 = vmatprep.mubr.msk.bf16.mxu1 %vm727_vm1, %v2319_v10  ;;  %v2292_v48 = vmul.f32 %v4042_v55, %v5087_v46  ;;  %v4044_v19 = vpop.eup %4043 }
 0x532   : > { %v2207_v51 = vpop.xlane.xlu0 %2206  ;;  %v2204_v50 = vpop.xlane.xlu1 %2203  ;;  %v2293_v40 = vmul.f32 %v4044_v19, %v5089_v59 }
 0x533   : > { %4057 = vrcp.f32 %v2204_v50  ;;  %v2320_v7 = vpack.c.bf16 %v2292_v48, %v2291_v58 }
 0x534   : > { %v4046_v18 = vpop.eup %4045  ;;  %4059 = vrcp.f32 %v2207_v51 }
 0x535   : > { %3688 = vmatmul.mubr.msk.bf16.gmra.mxu1 %vm727_vm1, %v2320_v7  ;;  %v2294_v34 = vmul.f32 %v4046_v18, %v5099_v45  ;;  %v4048_v3 = vpop.eup %4047 }
 0x536   : > { %v2213_v31 = vpop.xlane.xlu0 %2212  ;;  %v2210_v9 = vpop.xlane.xlu1 %2209  ;;  %v2295_v37 = vmul.f32 %v4048_v3, %v5097_v21 }
 0x537   : > { %4061 = vrcp.f32 %v2210_v9  ;;  %v2321_v17 = vpack.c.bf16 %v2294_v34, %v2293_v40 }
 0x538   : > { %v4050_v11 = vpop.eup %4049  ;;  %4063 = vrcp.f32 %v2213_v31 }
 0x539   : > { %3691 = vmatprep.mubr.msk.bf16.mxu1 %vm727_vm1, %v2321_v17  ;;  %v2296_v28 = vmul.f32 %v4050_v11, %v5107_v49  ;;  %v4052_v43 = vpop.eup %4051 }
 0x53a   : > { %v2219_v30 = vpop.xlane.xlu0 %2218  ;;  %v2216_v46 = vpop.xlane.xlu1 %2215  ;;  %v2297_v55 = vmul.f32 %v4052_v43, %v5109_v57 }
 0x53b   : > { %4065 = vrcp.f32 %v2216_v46  ;;  %v2322_v39 = vpack.c.bf16 %v2296_v28, %v2295_v37 }
 0x53c   : > { %v4054_v10 = vpop.eup %4053  ;;  %4067 = vrcp.f32 %v2219_v30 }
 0x53d   : > { %3692 = vmatmul.mubr.msk.bf16.gmra.mxu1 %vm727_vm1, %v2322_v39  ;;  %v2298_v51 = vmul.f32 %v4054_v10, %v5119_v13  ;;  %v4056_v50 = vpop.eup %4055 }
 0x53e   : > { %v2225_v59 = vpop.xlane.xlu0 %2224  ;;  %v2222_v45 = vpop.xlane.xlu1 %2221  ;;  %v2299_v19 = vmul.f32 %v4056_v50, %v5117_v24 }
 0x53f   : > { %4069 = vrcp.f32 %v2222_v45  ;;  %v2323_v58 = vpack.c.bf16 %v2298_v51, %v2297_v55 }
 0x540   : > { %v4058_v48 = vpop.eup %4057  ;;  %4071 = vrcp.f32 %v2225_v59 }
 0x541   : > { %3695 = vmatprep.mubr.msk.bf16.mxu1 %vm727_vm1, %v2323_v58  ;;  %v2300_v7 = vmul.f32 %v4058_v48, %v5127_v63  ;;  %v4060_v18 = vpop.eup %4059 }
 0x542   : > { %v2231_v21 = vpop.xlane.xlu0 %2230  ;;  %v2228_v49 = vpop.xlane.xlu1 %2227  ;;  %v2301_v40 = vmul.f32 %v4060_v18, %v5129_v5 }
 0x543   : > { %4073 = vrcp.f32 %v2228_v49  ;;  %v2324_v31 = vpack.c.bf16 %v2300_v7, %v2299_v19 }
 0x544   : > { %v4062_v9 = vpop.eup %4061  ;;  %4075 = vrcp.f32 %v2231_v21 }
 0x545   : > { %3696 = vmatmul.mubr.msk.bf16.gmra.mxu1 %vm727_vm1, %v2324_v31  ;;  %v2302_v34 = vmul.f32 %v4062_v9, %v5139_v4  ;;  %v4064_v3 = vpop.eup %4063 }
 0x546   : > { %v2237_v57 = vpop.xlane.xlu0 %2236  ;;  %v2234_v13 = vpop.xlane.xlu1 %2233  ;;  %v2303_v30 = vmul.f32 %v4064_v3, %v5137_v1 }
 0x547   : > { %4077 = vrcp.f32 %v2234_v13  ;;  %v2325_v17 = vpack.c.bf16 %v2302_v34, %v2301_v40 }
 0x548   : > { %v4066_v11 = vpop.eup %4065  ;;  %4079 = vrcp.f32 %v2237_v57 }
 0x549   : > { %3699 = vmatprep.mubr.msk.bf16.mxu1 %vm727_vm1, %v2325_v17  ;;  %v2304_v46 = vmul.f32 %v4066_v11, %v5147_v41  ;;  %v4068_v37 = vpop.eup %4067  ;;  %v5527_v17 = vld [vmem:[#allocation15_spill] sm:$0xff]  ;;  %v5528_v11 = vld [vmem:[#allocation13_spill] sm:$0xff] }
 0x54a   : > { %v2243_v24 = vpop.xlane.xlu0 %2242  ;;  %v2240_v63 = vpop.xlane.xlu1 %2239  ;;  %v2305_v39 = vmul.f32 %v4068_v37, %v5149_v60 }
 0x54b   : > { %4081 = vrcp.f32 %v2240_v63  ;;  %v2326_v28 = vpack.c.bf16 %v2304_v46, %v2303_v30  ;;  %v5530_v63 = vld [vmem:[#allocation14_spill] sm:$0xff]  ;;  %v5531_v30 = vld [vmem:[#allocation12_spill] sm:$0xff] }
 0x54c   : > { %v4070_v43 = vpop.eup %4069  ;;  %4083 = vrcp.f32 %v2243_v24  ;;  %v5529_v24 = vpack.c.bf16 %v5527_v17, %v5528_v11  ;;  %v5532_v46 = vpack.c.bf16 %v5530_v63, %v5531_v30 }
 0x54d   : > { %3700 = vmatmul.mubr.msk.bf16.gmra.mxu1 %vm727_vm1, %v2326_v28  ;;  %v2306_v10 = vmul.f32 %v4070_v43, %v5159_v53  ;;  %v4072_v59 = vpop.eup %4071 }
 0x54e   : > { %v2249_v5 = vpop.xlane.xlu0 %2248  ;;  %v2246_v4 = vpop.xlane.xlu1 %2245  ;;  %v2307_v41 = vmul.f32 %v4072_v59, %v5157_v15 }
 0x54f   : > { %4085 = vrcp.f32 %v2246_v4  ;;  %v2327_v45 = vpack.c.bf16 %v2306_v10, %v2305_v39 }
 0x550   : > { %v4074_v55 = vpop.eup %4073  ;;  %4087 = vrcp.f32 %v2249_v5 }
 0x551   : > { %3703 = vmatprep.mubr.msk.bf16.mxu1 %vm727_vm1, %v2327_v45  ;;  %v2308_v51 = vmul.f32 %v4074_v55, %v5166_v61  ;;  %v4076_v50 = vpop.eup %4075 }
 0x552   : > { %v2252_v1 = vpop.xlane.xlu1 %2251  ;;  %v2309_v60 = vmul.f32 %v4076_v50, %v5168_v62 }
 0x553   : > { %4089 = vrcp.f32 %v2252_v1  ;;  %v2328_v58 = vpack.c.bf16 %v2308_v51, %v2307_v41 }
 0x554   : > { %v4078_v48 = vpop.eup %4077 }
 0x555   : > { %3704 = vmatmul.mubr.msk.bf16.gmra.mxu1 %vm727_vm1, %v2328_v58  ;;  %v2310_v53 = vmul.f32 %v4078_v48, %v5176_v36  ;;  %v4080_v21 = vpop.eup %4079 }
 0x556   : > { %v2311_v7 = vmul.f32 %v4080_v21, %v5174_v32 }
 0x557   : > { %v2329_v49 = vpack.c.bf16 %v2310_v53, %v2309_v60 }
 0x558   : > { %v4082_v19 = vpop.eup %4081 }
 0x559   : > { %3707 = vmatprep.mubr.msk.bf16.mxu1 %vm727_vm1, %v2329_v49  ;;  %v2312_v15 = vmul.f32 %v4082_v19, %v5182_v8  ;;  %v4084_v61 = vpop.eup %4083  ;;  %v5503_v8 = vpack.c.bf16 %v4825_v2, %v4819_v54  ;;  %v5507_v54 = vpack.c.bf16 %v4849_v38, %v4843_v20  ;;  %v5510_v2 = vpack.c.bf16 %v4857_v33, %v4853_v0  ;;  %v5516_v20 = vld [vmem:[#allocation5_spill] sm:$0xff]  ;;  %v5518_v38 = vld [vmem:[#allocation6_spill] sm:$0xff]  ;;  %v5521_v33 = vld [vmem:[#allocation11_spill] sm:$0xff] }
 0x55a   : > { %v2313_v57 = vmul.f32 %v4084_v61, %v5184_v44  ;;  %v5504_v44 = vpack.c.bf16 %v4821_v27, %v4817_v16  ;;  %v5508_v16 = vpack.c.bf16 %v4845_v26, %v4841_v12  ;;  %v5509_v27 = vpack.c.bf16 %v4861_v56, %v4855_v42  ;;  %v5515_v12 = vld [vmem:[#allocation7_spill] sm:$0xff]  ;;  %v5519_v42 = vld [vmem:[#allocation4_spill] sm:$0xff]  ;;  %v5522_v56 = vld [vmem:[#allocation9_spill] sm:$0xff] }
 0x55b   : > { %v2330_v18 = vpack.c.bf16 %v2312_v15, %v2311_v7  ;;  %v5517_v26 = vpack.c.bf16 %v5515_v12, %v5516_v20  ;;  %v5520_v0 = vpack.c.bf16 %v5518_v38, %v5519_v42 }
 0x55c   : > { %v4086_v31 = vpop.eup %4085 }
 0x55d   : > { %v4088_v9 = vpop.eup %4087  ;;  %3708 = vmatmul.mubr.msk.bf16.gmra.mxu1 %vm727_vm1, %v2330_v18  ;;  %v2314_v62 = vmul.f32 %v4086_v31, %v5192_v25  ;;  %v5506_v25 = vpack.c.bf16 %v4833_v52, %v4829_v29  ;;  %v5511_v29 = vpack.c.bf16 %v4873_v14, %v4867_v23  ;;  %v5513_v52 = vld [vmem:[#allocation2_spill] sm:$0xff]  ;;  %v5523_v23 = vpack.c.bf16 %v5521_v33, %v5522_v56 }
 0x55e   : > { %v2315_v40 = vmul.f32 %v4088_v9, %v5190_v6  ;;  %v5505_v6 = vpack.c.bf16 %v4837_v35, %v4831_v47  ;;  %v5512_v47 = vld [vmem:[#allocation3_spill] sm:$0xff]  ;;  %v5524_v14 = vld [vmem:[#allocation10_spill] sm:$0xff] }
 0x55f   : > { %v2331_v13 = vpack.c.bf16 %v2314_v62, %v2313_v57  ;;  %v5514_v35 = vpack.c.bf16 %v5512_v47, %v5513_v52 }
 0x560   : > { %v4090_v36 = vpop.eup %4089 }
 0x561   : > { %v2316_v34 = vmul.f32 %v4090_v36, %v5198_v22  ;;  %3711 = vmatprep.mubr.msk.bf16.mxu1 %vm727_vm1, %v2331_v13  ;;  %v5525_v22 = vld [vmem:[#allocation8_spill] sm:$0xff] }
 0x562   : > { %v5526_v3 = vpack.c.bf16 %v5524_v14, %v5525_v22 }
 0x563   : > { %v2332_v32 = vpack.c.bf16 %v2316_v34, %v2315_v40 }
 0x565   : > { %3712 = vmatmul.mubr.msk.bf16.gmra.mxu1 %vm727_vm1, %v2332_v32 }
 0x566   : > { %3751 = vmatprep.mubr.msk.bf16.mxu1 %vm727_vm1, %v5503_v8 }
 0x56d   : > { %3752 = vmatmul.mubr.msk.bf16.vlgmr.msra.gmra.mxu1 %vm727_vm1, %v5504_v44 }
 0x56e   : > { %3755 = vmatprep.mubr.msk.bf16.mxu1 %vm727_vm1, %v5505_v6 }
 0x575   : > { %3756 = vmatmul.mubr.msk.bf16.gmra.mxu1 %vm727_vm1, %v5506_v25 }
 0x576   : > { %3759 = vmatprep.mubr.msk.bf16.mxu1 %vm727_vm1, %v5507_v54 }
 0x57d   : > { %3760 = vmatmul.mubr.msk.bf16.gmra.mxu1 %vm727_vm1, %v5508_v16 }
 0x57e   : > { %3763 = vmatprep.mubr.msk.bf16.mxu1 %vm727_vm1, %v5509_v27 }
 0x585   : > { %3764 = vmatmul.mubr.msk.bf16.gmra.mxu1 %vm727_vm1, %v5510_v2 }
 0x586   : > { %3767 = vmatprep.mubr.msk.bf16.mxu1 %vm727_vm1, %v5511_v29 }
 0x58d   : > { %3768 = vmatmul.mubr.msk.bf16.gmra.mxu1 %vm727_vm1, %v5514_v35 }
 0x58e   : > { %3771 = vmatprep.mubr.msk.bf16.mxu1 %vm727_vm1, %v5517_v26 }
 0x595   : > { %3772 = vmatmul.mubr.msk.bf16.gmra.mxu1 %vm727_vm1, %v5520_v0 }
 0x596   : > { %3775 = vmatprep.mubr.msk.bf16.mxu1 %vm727_vm1, %v5523_v23 }
 0x59d   : > { %3776 = vmatmul.mubr.msk.bf16.gmra.mxu1 %vm727_vm1, %v5526_v3 }
 0x59e   : > { %3779 = vmatprep.mubr.msk.bf16.mxu1 %vm727_vm1, %v5529_v24 }
 0x5a5   : > { %3780 = vmatmul.mubr.msk.bf16.gmra.mxu1 %vm727_vm1, %v5532_v46 }
 0x5ed   : > { %v3685_v37 = vpop.f32.mrf.mxu1 }
 0x5ef   : > { %v2424_v28 = vpop.f32.mrf.mxu1 }
 0x5f1   : > { %v3686_v43 = vpop.f32.mrf.mxu1 }
 0x5f2   : > { %v2552_v39 = vpack.c.bf16 %v3686_v43, %v3685_v37 }
 0x5f3   : > { %v2427_v5 = vpop.f32.mrf.mxu1 }
 0x5f4   : > { %v2551_v4 = vpack.c.bf16 %v2427_v5, %v2424_v28  ;;  %v5346_v28 = vld [vmem:[%s5473_s6] ss:$0 sm:$0xff] }
 0x5f5   : > { %v3689_v10 = vpop.f32.mrf.mxu1 }
 0x5f6   : > { %3717 = vmatprep.mubr.msk.bf16.mxu0 %vm727_vm1, %v2551_v4 }
 0x5f7   : > { %v2440_v59 = vpop.f32.mrf.mxu1  ;;  %3718 = vmatmul.mubr.msk.bf16.vlgmr.msra.gmra.mxu0 %vm727_vm1, %v2552_v39 }
 0x5f9   : > { %v3690_v45 = vpop.f32.mrf.mxu1 }
 0x5fa   : > { %v2554_v41 = vpack.c.bf16 %v3690_v45, %v3689_v10 }
 0x5fb   : > { %v2443_v55 = vpop.f32.mrf.mxu1 }
 0x5fc   : > { %v2553_v1 = vpack.c.bf16 %v2443_v55, %v2440_v59 }
 0x5fd   : > { %v3693_v51 = vpop.f32.mrf.mxu1 }
 0x5fe   : > { %3721 = vmatprep.mubr.msk.bf16.mxu0 %vm727_vm1, %v2553_v1 }
 0x5ff   : > { %v2456_v50 = vpop.f32.mrf.mxu1  ;;  %3722 = vmatmul.mubr.msk.bf16.gmra.mxu0 %vm727_vm1, %v2554_v41 }
 0x601   : > { %v3694_v58 = vpop.f32.mrf.mxu1 }
 0x602   : > { %v2556_v53 = vpack.c.bf16 %v3694_v58, %v3693_v51 }
 0x603   : > { %v2459_v48 = vpop.f32.mrf.mxu1 }
 0x604   : > { %v2555_v60 = vpack.c.bf16 %v2459_v48, %v2456_v50 }
 0x605   : > { %v3697_v21 = vpop.f32.mrf.mxu1 }
 0x606   : > { %3725 = vmatprep.mubr.msk.bf16.mxu0 %vm727_vm1, %v2555_v60 }
 0x607   : > { %v2472_v49 = vpop.f32.mrf.mxu1  ;;  %3726 = vmatmul.mubr.msk.bf16.gmra.mxu0 %vm727_vm1, %v2556_v53 }
 0x609   : > { %v3698_v19 = vpop.f32.mrf.mxu1 }
 0x60a   : > { %v2558_v61 = vpack.c.bf16 %v3698_v19, %v3697_v21 }
 0x60b   : > { %v2475_v7 = vpop.f32.mrf.mxu1 }
 0x60c   : > { %v2557_v15 = vpack.c.bf16 %v2475_v7, %v2472_v49 }
 0x60d   : > { %v3701_v18 = vpop.f32.mrf.mxu1 }
 0x60e   : > { %3729 = vmatprep.mubr.msk.bf16.mxu0 %vm727_vm1, %v2557_v15 }
 0x60f   : > { %v2488_v31 = vpop.f32.mrf.mxu1  ;;  %3730 = vmatmul.mubr.msk.bf16.gmra.mxu0 %vm727_vm1, %v2558_v61 }
 0x611   : > { %v3702_v9 = vpop.f32.mrf.mxu1 }
 0x612   : > { %v2560_v36 = vpack.c.bf16 %v3702_v9, %v3701_v18 }
 0x613   : > { %v2491_v57 = vpop.f32.mrf.mxu1 }
 0x614   : > { %v2559_v62 = vpack.c.bf16 %v2491_v57, %v2488_v31 }
 0x615   : > { %v3705_v13 = vpop.f32.mrf.mxu1 }
 0x616   : > { %3733 = vmatprep.mubr.msk.bf16.mxu0 %vm727_vm1, %v2559_v62 }
 0x617   : > { %v2504_v40 = vpop.f32.mrf.mxu1  ;;  %3734 = vmatmul.mubr.msk.bf16.gmra.mxu0 %vm727_vm1, %v2560_v36 }
 0x619   : > { %v3706_v34 = vpop.f32.mrf.mxu1 }
 0x61a   : > { %v2562_v44 = vpack.c.bf16 %v3706_v34, %v3705_v13 }
 0x61b   : > { %v2507_v32 = vpop.f32.mrf.mxu1 }
 0x61c   : > { %v2561_v8 = vpack.c.bf16 %v2507_v32, %v2504_v40 }
 0x61d   : > { %v3709_v6 = vpop.f32.mrf.mxu1 }
 0x61e   : > { %3737 = vmatprep.mubr.msk.bf16.mxu0 %vm727_vm1, %v2561_v8 }
 0x61f   : > { %v2520_v25 = vpop.f32.mrf.mxu1  ;;  %3738 = vmatmul.mubr.msk.bf16.gmra.mxu0 %vm727_vm1, %v2562_v44 }
 0x621   : > { %v3710_v54 = vpop.f32.mrf.mxu1 }
 0x622   : > { %v2564_v2 = vpack.c.bf16 %v3710_v54, %v3709_v6 }
 0x623   : > { %v2523_v16 = vpop.f32.mrf.mxu1 }
 0x624   : > { %v2563_v27 = vpack.c.bf16 %v2523_v16, %v2520_v25 }
 0x625   : > { %v3713_v29 = vpop.f32.mrf.mxu1 }
 0x626   : > { %3741 = vmatprep.mubr.msk.bf16.mxu0 %vm727_vm1, %v2563_v27 }
 0x627   : > { %v2536_v47 = vpop.f32.mrf.mxu1  ;;  %3742 = vmatmul.mubr.msk.bf16.gmra.mxu0 %vm727_vm1, %v2564_v2 }
 0x629   : > { %v3714_v52 = vpop.f32.mrf.mxu1 }
 0x62a   : > { %v2566_v20 = vpack.c.bf16 %v3714_v52, %v3713_v29 }
 0x62b   : > { %v2539_v35 = vpop.f32.mrf.mxu1 }
 0x62c   : > { %v2565_v12 = vpack.c.bf16 %v2539_v35, %v2536_v47 }
 0x62d   : > { %v3753_v26 = vpop.f32.mrf.mxu1 }
 0x62e   : > { %3745 = vmatprep.mubr.msk.bf16.mxu0 %vm727_vm1, %v2565_v12 }
 0x62f   : > { %3746 = vmatmul.mubr.msk.bf16.gmra.mxu0 %vm727_vm1, %v2566_v20  ;;  %v2873_v38 = vpop.f32.mrf.mxu1 }
 0x631   : > { %v3754_v42 = vpop.f32.mrf.mxu1 }
 0x633   : > { %v2876_v0 = vpop.f32.mrf.mxu1 }
 0x635   : > { %v3757_v33 = vpop.f32.mrf.mxu1 }
 0x637   : > { %v2889_v56 = vpop.f32.mrf.mxu1 }
 0x639   : > { %v3758_v23 = vpop.f32.mrf.mxu1 }
 0x63b   : > { %v2892_v14 = vpop.f32.mrf.mxu1 }
 0x63d   : > { %v3761_v22 = vpop.f32.mrf.mxu1 }
 0x63f   : > { %v2905_v3 = vpop.f32.mrf.mxu1 }
 0x641   : > { %v3762_v17 = vpop.f32.mrf.mxu1 }
 0x643   : > { %v2908_v11 = vpop.f32.mrf.mxu1 }
 0x645   : > { %v3765_v24 = vpop.f32.mrf.mxu1 }
 0x647   : > { %v5336_v63 = vpop.f32.mrf.mxu1 }
 0x649   : > { %v5338_v30 = vpop.f32.mrf.mxu1 }
 0x64b   : > { %v5340_v46 = vpop.f32.mrf.mxu1 }
 0x64d   : > { %v5348_v5 = vpop.f32.mrf.mxu1 }
 0x64f   : > { %v5359_v1 = vpop.f32.mrf.mxu1 }
 0x651   : > { %v3770_v53 = vpop.f32.mrf.mxu1 }
 0x653   : > { %v2940_v18 = vpop.f32.mrf.mxu1 }
 0x655   : > { %v3773_v40 = vpop.f32.mrf.mxu1 }
 0x657   : > { %v2953_v54 = vpop.f32.mrf.mxu1 }
 0x659   : > { %v3774_v35 = vpop.f32.mrf.mxu1 }
 0x6b7   : > { %v3719_v37 = vpop.f32.mrf.mxu0 }
 0x6b8   : > { %v2882_v43 = vadd.f32 %v3753_v26, %v3719_v37 }
 0x6b9   : > { %v2658_v4 = vpop.f32.mrf.mxu0 }
 0x6ba   : > { %v3009_v39 = vadd.f32 %v5346_v28, %v2882_v43  ;;  %v2874_v10 = vadd.f32 %v2873_v38, %v2658_v4 }
 0x6bb   : > { %v3720_v59 = vpop.f32.mrf.mxu0 }
 0x6bc   : > { %3041 = vst.msk [vmem:[%s5353_s18 + $0x10] sm:$0xff] %vm494_vm0, %v3009_v39  ;;  %v3007_v45 = vadd.f32 %v5346_v28, %v2874_v10  ;;  %v2885_v55 = vadd.f32 %v3754_v42, %v3720_v59 }
 0x6bd   : > { %v2661_v41 = vpop.f32.mrf.mxu0 }
 0x6be   : > { %3039 = vst.msk [vmem:[%s5353_s18] sm:$0xff] %vm494_vm0, %v3007_v45  ;;  %v3010_v51 = vadd.f32 %v5346_v28, %v2885_v55  ;;  %v2877_v50 = vadd.f32 %v2876_v0, %v2661_v41 }
 0x6bf   : > { %v3723_v58 = vpop.f32.mrf.mxu0 }
 0x6c0   : > { %3042 = vst.msk [vmem:[%s5353_s18 + $0x18] sm:$0xff] %vm494_vm0, %v3010_v51  ;;  %v3008_v48 = vadd.f32 %v5346_v28, %v2877_v50  ;;  %v2898_v60 = vadd.f32 %v3757_v33, %v3723_v58  ;;  %v2956_v33 = vpop.f32.mrf.mxu1 }
 0x6c1   : > { %v2674_v21 = vpop.f32.mrf.mxu0 }
 0x6c2   : > { %3040 = vst.msk [vmem:[%s5353_s18 + $0x8] sm:$0xff] %vm494_vm0, %v3008_v48  ;;  %v3013_v49 = vadd.f32 %v5346_v28, %v2898_v60  ;;  %v2890_v19 = vadd.f32 %v2889_v56, %v2674_v21 }
 0x6c3   : > { %v3724_v7 = vpop.f32.mrf.mxu0 }
 0x6c4   : > { %3045 = vst.msk [vmem:[%s5353_s18 + $0x30] sm:$0xff] %vm494_vm0, %v3013_v49  ;;  %v3011_v15 = vadd.f32 %v5346_v28, %v2890_v19  ;;  %v2901_v61 = vadd.f32 %v3758_v23, %v3724_v7 }
 0x6c5   : > { %v2677_v31 = vpop.f32.mrf.mxu0 }
 0x6c6   : > { %3043 = vst.msk [vmem:[%s5353_s18 + $0x20] sm:$0xff] %vm494_vm0, %v3011_v15  ;;  %v3014_v9 = vadd.f32 %v5346_v28, %v2901_v61  ;;  %v2893_v57 = vadd.f32 %v2892_v14, %v2677_v31 }
 0x6c7   : > { %v3727_v62 = vpop.f32.mrf.mxu0 }
 0x6c8   : > { %3046 = vst.msk [vmem:[%s5353_s18 + $0x38] sm:$0xff] %vm494_vm0, %v3014_v9  ;;  %v3012_v36 = vadd.f32 %v5346_v28, %v2893_v57  ;;  %v2914_v13 = vadd.f32 %v3761_v22, %v3727_v62 }
 0x6c9   : > { %v2690_v34 = vpop.f32.mrf.mxu0 }
 0x6ca   : > { %3044 = vst.msk [vmem:[%s5353_s18 + $0x28] sm:$0xff] %vm494_vm0, %v3012_v36  ;;  %v3017_v32 = vadd.f32 %v5346_v28, %v2914_v13  ;;  %v2906_v8 = vadd.f32 %v2905_v3, %v2690_v34 }
 0x6cb   : > { %v3728_v44 = vpop.f32.mrf.mxu0 }
 0x6cc   : > { %3049 = vst.msk [vmem:[%s5353_s18 + $0x50] sm:$0xff] %vm494_vm0, %v3017_v32  ;;  %v3015_v6 = vadd.f32 %v5346_v28, %v2906_v8  ;;  %v2917_v25 = vadd.f32 %v3762_v17, %v3728_v44 }
 0x6cd   : > { %v2693_v16 = vpop.f32.mrf.mxu0 }
 0x6ce   : > { %3047 = vst.msk [vmem:[%s5353_s18 + $0x40] sm:$0xff] %vm494_vm0, %v3015_v6  ;;  %v3018_v27 = vadd.f32 %v5346_v28, %v2917_v25  ;;  %v2909_v2 = vadd.f32 %v2908_v11, %v2693_v16  ;;  %v3777_v11 = vpop.f32.mrf.mxu1 }
 0x6cf   : > { %v3731_v29 = vpop.f32.mrf.mxu0 }
 0x6d0   : > { %3050 = vst.msk [vmem:[%s5353_s18 + $0x58] sm:$0xff] %vm494_vm0, %v3018_v27  ;;  %v3016_v47 = vadd.f32 %v5346_v28, %v2909_v2  ;;  %v2930_v52 = vadd.f32 %v3765_v24, %v3731_v29  ;;  %v2969_v4 = vpop.f32.mrf.mxu1 }
 0x6d1   : > { %v2706_v12 = vpop.f32.mrf.mxu0 }
 0x6d2   : > { %3048 = vst.msk [vmem:[%s5353_s18 + $0x48] sm:$0xff] %vm494_vm0, %v3016_v47  ;;  %v3021_v20 = vadd.f32 %v5346_v28, %v2930_v52  ;;  %v2922_v26 = vadd.f32 %v5336_v63, %v2706_v12 }
 0x6d3   : > { %v3732_v38 = vpop.f32.mrf.mxu0 }
 0x6d4   : > { %3053 = vst.msk [vmem:[%s5353_s18 + $0x70] sm:$0xff] %vm494_vm0, %v3021_v20  ;;  %v3019_v42 = vadd.f32 %v5346_v28, %v2922_v26  ;;  %v2933_v0 = vadd.f32 %v5338_v30, %v3732_v38 }
 0x6d5   : > { %v2709_v56 = vpop.f32.mrf.mxu0 }
 0x6d6   : > { %3051 = vst.msk [vmem:[%s5353_s18 + $0x60] sm:$0xff] %vm494_vm0, %v3019_v42  ;;  %v3022_v23 = vadd.f32 %v5346_v28, %v2933_v0  ;;  %v2925_v14 = vadd.f32 %v5340_v46, %v2709_v56 }
 0x6d7   : > { %v3735_v22 = vpop.f32.mrf.mxu0 }
 0x6d8   : > { %3054 = vst.msk [vmem:[%s5353_s18 + $0x78] sm:$0xff] %vm494_vm0, %v3022_v23  ;;  %v3020_v3 = vadd.f32 %v5346_v28, %v2925_v14  ;;  %v2946_v17 = vadd.f32 %v5348_v5, %v3735_v22 }
 0x6d9   : > { %v2722_v24 = vpop.f32.mrf.mxu0 }
 0x6da   : > { %3052 = vst.msk [vmem:[%s5353_s18 + $0x68] sm:$0xff] %vm494_vm0, %v3020_v3  ;;  %v3025_v63 = vadd.f32 %v5346_v28, %v2946_v17  ;;  %v2938_v30 = vadd.f32 %v5359_v1, %v2722_v24  ;;  %v3778_v1 = vpop.f32.mrf.mxu1 }
 0x6db   : > { %v3736_v37 = vpop.f32.mrf.mxu0 }
 0x6dc   : > { %3057 = vst.msk [vmem:[%s5353_s18 + $0x90] sm:$0xff] %vm494_vm0, %v3025_v63  ;;  %v3023_v46 = vadd.f32 %v5346_v28, %v2938_v30  ;;  %v2949_v43 = vadd.f32 %v3770_v53, %v3736_v37  ;;  %v2972_v53 = vpop.f32.mrf.mxu1 }
 0x6dd   : > { %v2725_v39 = vpop.f32.mrf.mxu0 }
 0x6de   : > { %3055 = vst.msk [vmem:[%s5353_s18 + $0x80] sm:$0xff] %vm494_vm0, %v3023_v46  ;;  %v3026_v5 = vadd.f32 %v5346_v28, %v2949_v43  ;;  %v2941_v10 = vadd.f32 %v2940_v18, %v2725_v39  ;;  %v3781_v18 = vpop.f32.mrf.mxu1 }
 0x6df   : > { %v3739_v59 = vpop.f32.mrf.mxu0 }
 0x6e0   : > { %3058 = vst.msk [vmem:[%s5353_s18 + $0x98] sm:$0xff] %vm494_vm0, %v3026_v5  ;;  %v3024_v45 = vadd.f32 %v5346_v28, %v2941_v10  ;;  %v2962_v55 = vadd.f32 %v3773_v40, %v3739_v59  ;;  %v2985_v40 = vpop.f32.mrf.mxu1 }
 0x6e1   : > { %v2738_v41 = vpop.f32.mrf.mxu0 }
 0x6e2   : > { %3056 = vst.msk [vmem:[%s5353_s18 + $0x88] sm:$0xff] %vm494_vm0, %v3024_v45  ;;  %v3029_v51 = vadd.f32 %v5346_v28, %v2962_v55  ;;  %v2954_v50 = vadd.f32 %v2953_v54, %v2738_v41  ;;  %v3782_v54 = vpop.f32.mrf.mxu1 }
 0x6e3   : > { %v3740_v58 = vpop.f32.mrf.mxu0 }
 0x6e4   : > { %3061 = vst.msk [vmem:[%s5353_s18 + $0xb0] sm:$0xff] %vm494_vm0, %v3029_v51  ;;  %v3027_v48 = vadd.f32 %v5346_v28, %v2954_v50  ;;  %v2965_v60 = vadd.f32 %v3774_v35, %v3740_v58  ;;  %v2988_v35 = vpop.f32.mrf.mxu1 }
 0x6e5   : > { %v2741_v21 = vpop.f32.mrf.mxu0 }
 0x6e6   : > { %3059 = vst.msk [vmem:[%s5353_s18 + $0xa0] sm:$0xff] %vm494_vm0, %v3027_v48  ;;  %v3030_v49 = vadd.f32 %v5346_v28, %v2965_v60  ;;  %v2957_v19 = vadd.f32 %v2956_v33, %v2741_v21 }
 0x6e7   : > { %v3743_v7 = vpop.f32.mrf.mxu0 }
 0x6e8   : > { %3062 = vst.msk [vmem:[%s5353_s18 + $0xb8] sm:$0xff] %vm494_vm0, %v3030_v49  ;;  %v3028_v15 = vadd.f32 %v5346_v28, %v2957_v19  ;;  %v2978_v61 = vadd.f32 %v3777_v11, %v3743_v7 }
 0x6e9   : > { %v2754_v31 = vpop.f32.mrf.mxu0 }
 0x6ea   : > { %3060 = vst.msk [vmem:[%s5353_s18 + $0xa8] sm:$0xff] %vm494_vm0, %v3028_v15  ;;  %v3033_v9 = vadd.f32 %v5346_v28, %v2978_v61  ;;  %v2970_v57 = vadd.f32 %v2969_v4, %v2754_v31 }
 0x6eb   : > { %v3744_v62 = vpop.f32.mrf.mxu0 }
 0x6ec   : > { %3065 = vst.msk [vmem:[%s5353_s18 + $0xd0] sm:$0xff] %vm494_vm0, %v3033_v9  ;;  %v3031_v36 = vadd.f32 %v5346_v28, %v2970_v57  ;;  %v2981_v13 = vadd.f32 %v3778_v1, %v3744_v62 }
 0x6ed   : > { %v2757_v34 = vpop.f32.mrf.mxu0 }
 0x6ee   : > { %3063 = vst.msk [vmem:[%s5353_s18 + $0xc0] sm:$0xff] %vm494_vm0, %v3031_v36  ;;  %v3034_v32 = vadd.f32 %v5346_v28, %v2981_v13  ;;  %v2973_v8 = vadd.f32 %v2972_v53, %v2757_v34 }
 0x6ef   : > { %v3747_v44 = vpop.f32.mrf.mxu0 }
 0x6f0   : > { %3066 = vst.msk [vmem:[%s5353_s18 + $0xd8] sm:$0xff] %vm494_vm0, %v3034_v32  ;;  %v3032_v6 = vadd.f32 %v5346_v28, %v2973_v8  ;;  %v2994_v25 = vadd.f32 %v3781_v18, %v3747_v44 }
 0x6f1   : > { %v2770_v16 = vpop.f32.mrf.mxu0 }
 0x6f2   : > { %3064 = vst.msk [vmem:[%s5353_s18 + $0xc8] sm:$0xff] %vm494_vm0, %v3032_v6  ;;  %v3037_v27 = vadd.f32 %v5346_v28, %v2994_v25  ;;  %v2986_v2 = vadd.f32 %v2985_v40, %v2770_v16 }
 0x6f3   : > { %v3748_v29 = vpop.f32.mrf.mxu0 }
 0x6f4   : > { %3069 = vst.msk [vmem:[%s5353_s18 + $0xf0] sm:$0xff] %vm494_vm0, %v3037_v27  ;;  %v3035_v47 = vadd.f32 %v5346_v28, %v2986_v2  ;;  %v2997_v52 = vadd.f32 %v3782_v54, %v3748_v29 }
 0x6f5   : > { %v2773_v12 = vpop.f32.mrf.mxu0 }
 0x6f6   : > { %3067 = vst.msk [vmem:[%s5353_s18 + $0xe0] sm:$0xff] %vm494_vm0, %v3035_v47  ;;  %v3038_v20 = vadd.f32 %v5346_v28, %v2997_v52  ;;  %v2989_v26 = vadd.f32 %v2988_v35, %v2773_v12 }
 0x6f8   : > { %3070 = vst.msk [vmem:[%s5353_s18 + $0xf8] sm:$0xff] %vm494_vm0, %v3038_v20  ;;  %v3036_v38 = vadd.f32 %v5346_v28, %v2989_v26 }
 0x6fa   : > { %3068 = vst.msk [vmem:[%s5353_s18 + $0xe8] sm:$0xff] %vm494_vm0, %v3036_v38 }
 0x6fb PF: > { %s17_s26 = sadd.s32 1, %s4113_s26   ;;  %s5533_s24 = smov %s4109_s25 }
 0x6fc   : > { %p14_p5 = scmp.ge.s32.totalorder %s17_s26, 4   ;;  %s5534_s25 = smov %s5536_s27 }
 0x6fe   :  { %16 = sbr.rel (!%p14_p5) target bundleno = 2 (0x2), region = 89 }

</bundles_post_ra>
